<compile_context>
chip_gen: v7x
topology: tpu7x:2x2x1
jax: 0.10.0
libtpu: 0.0.40
codegen_flags: <defaults>
</compile_context>

<pallas_src>
import functools

import jax
import jax.numpy as jnp
from jax.experimental import pallas as pl
from jax.experimental.pallas import tpu as pltpu


_VMEM = pl.BlockSpec(memory_space=pltpu.MemorySpace.VMEM)
_BN_EPS = 1e-5
_LRELU_SLOPE = 0.2
# Raise the scoped VMEM limit (default is 16 MiB on v5e); stay below v7x's
# 64 MiB physical VMEM.
_COMPILER_PARAMS = pltpu.CompilerParams(vmem_limit_bytes=48 * 1024 * 1024)


# ----------------------------- Pallas kernels -----------------------------

def _conv_bn_lrelu_kernel(p_ref, w_ref, g_ref, be_ref, o_ref):
    """(M,K)@(K,C) -> training-mode BatchNorm (batch stats) -> LeakyReLU(0.2).

    The conv bias is intentionally omitted: BN's mean subtraction cancels a
    per-channel bias exactly.  The matmul uses bf16 operands with f32 MXU
    accumulation; all BN math stays in f32.  Output is stored in bf16.
    """
    y = jnp.dot(p_ref[...], w_ref[...], preferred_element_type=jnp.float32)
    inv_m = 1.0 / y.shape[0]
    mean = jnp.sum(y, axis=0, keepdims=True) * inv_m
    d = y - mean
    var = jnp.sum(d * d, axis=0, keepdims=True) * inv_m
    scale = g_ref[...] * jax.lax.rsqrt(var + _BN_EPS)     # (1, C)
    a = d * scale + be_ref[...]                           # fused scale/shift
    o_ref[...] = jnp.where(a > 0, a, _LRELU_SLOPE * a).astype(o_ref.dtype)


def _conv_bn_lrelu_final_kernel(p_ref, w_ref, g_ref, be_ref, w4_ref, b4_ref,
                                z_ref, *, n_img, taps):
    """Fused layer-3 (conv + BN + LeakyReLU) + final full-extent conv.

    p_ref rows are ordered tap-major: row r = t * n_img + n, so tap t of every
    image is the contiguous row block [t*n_img, (t+1)*n_img).  Because the
    final conv's 3x3 kernel covers layer-3's whole 3x3 output, it collapses to
    `taps` small (n_img, C3) @ (C3, z) matmuls accumulated in f32 — the padded
    (M, 2) intermediate never exists and never touches HBM.
    """
    y = jnp.dot(p_ref[...], w_ref[...], preferred_element_type=jnp.float32)
    inv_m = 1.0 / y.shape[0]
    mean = jnp.sum(y, axis=0, keepdims=True) * inv_m
    d = y - mean
    var = jnp.sum(d * d, axis=0, keepdims=True) * inv_m
    scale = g_ref[...] * jax.lax.rsqrt(var + _BN_EPS)
    a = d * scale + be_ref[...]
    a = jnp.where(a > 0, a, _LRELU_SLOPE * a)              # (taps*n_img, C3) f32

    c_out = b4_ref.shape[-1]
    acc = jnp.zeros((n_img, c_out), jnp.float32)
    for t in range(taps):
        a_t = a[t * n_img:(t + 1) * n_img, :].astype(w4_ref.dtype)  # (n_img, C3)
        w_t = w4_ref[t]                                             # (c_out, C3)
        acc = acc + jax.lax.dot_general(
            a_t, w_t, (((1,), (1,)), ((), ())),
            preferred_element_type=jnp.float32)
    z_ref[...] = acc + b4_ref[...]


def _matmul_bias_kernel(p_ref, w_ref, b_ref, o_ref):
    """Plain conv-as-matmul + bias (fallback when the tail fusion doesn't apply)."""
    o_ref[...] = (jnp.dot(p_ref[...], w_ref[...],
                          preferred_element_type=jnp.float32) + b_ref[...])


# ------------------------------- JAX glue ----------------------------------

def _im2col_nhwc(x, kh, kw, stride, pad, hw_major=False):
    """x: (N, H, W, C) -> patches (rows, C*kh*kw); K ordering matches
    w.reshape(Cout, Cin*KH*KW) (channel slowest, then kh, then kw).

    hw_major=False: rows ordered (n, ho, wo)   (standard layers)
    hw_major=True : rows ordered (ho, wo, n)   (tap-major, for the fused tail)
    """
    n, h, w, c = x.shape
    xp = jnp.pad(x, ((0, 0), (pad, pad), (pad, pad), (0, 0)))
    ho = (h + 2 * pad - kh) // stride + 1
    wo = (w + 2 * pad - kw) // stride + 1
    taps = []
    for i in range(kh):
        for j in range(kw):
            taps.append(xp[:, i:i + stride * ho:stride, j:j + stride * wo:stride, :])
    cols = jnp.stack(taps, axis=0)                 # (kh*kw, n, ho, wo, c)
    if hw_major:
        cols = cols.transpose(2, 3, 1, 4, 0).reshape(ho * wo * n, c * kh * kw)
    else:
        cols = cols.transpose(1, 2, 3, 4, 0).reshape(n * ho * wo, c * kh * kw)
    return cols, ho, wo


def _conv_bn_lrelu_layer(x_nhwc, layer):
    """One conv + BN + LeakyReLU layer.  x NHWC; returns NHWC bf16."""
    w, gamma, beta = layer["w"], layer["gamma"], layer["beta"]
    stride, pad = layer["stride"], layer["pad"]
    c_out, c_in, kh, kw = w.shape
    n = x_nhwc.shape[0]

    patches, ho, wo = _im2col_nhwc(x_nhwc.astype(jnp.bfloat16), kh, kw, stride, pad)
    w_mat = w.reshape(c_out, c_in * kh * kw).T.astype(jnp.bfloat16)
    m, k = patches.shape

    cost = pl.CostEstimate(
        flops=int(2 * m * k * c_out + 6 * m * c_out),
        transcendentals=int(c_out),
        bytes_accessed=int(patches.size * 2 + w_mat.size * 2 + m * c_out * 2),
    )
    out = pl.pallas_call(
        _conv_bn_lrelu_kernel,
        out_shape=jax.ShapeDtypeStruct((m, c_out), jnp.bfloat16),
        in_specs=[_VMEM] * 4,
        out_specs=_VMEM,
        compiler_params=_COMPILER_PARAMS,
        cost_estimate=cost,
    )(patches, w_mat, gamma.reshape(1, c_out), beta.reshape(1, c_out))
    return out.reshape(n, ho, wo, c_out)


def _fused_tail(x_nhwc, bn_layer, final_layer):
    """Layer 3 (conv+BN+LReLU) fused with the final conv when the final conv's
    kernel covers layer-3's full spatial output (true for 32x32 inputs)."""
    w3, gamma, beta = bn_layer["w"], bn_layer["gamma"], bn_layer["beta"]
    s3, p3 = bn_layer["stride"], bn_layer["pad"]
    c3, _, kh3, kw3 = w3.shape
    w4, b4 = final_layer["w"], final_layer["b"]
    s4, p4 = final_layer["stride"], final_layer["pad"]
    c4, c4_in, kh4, kw4 = w4.shape
    n, h_in, w_in = x_nhwc.shape[0], x_nhwc.shape[1], x_nhwc.shape[2]

    ho3 = (h_in + 2 * p3 - kh3) // s3 + 1
    wo3 = (w_in + 2 * p3 - kw3) // s3 + 1
    fuse = (s4 == 1 and p4 == 0 and kh4 == ho3 and kw4 == wo3)

    if not fuse:
        # Fallback: separate layer-3 kernel and a plain matmul+bias final conv.
        a3 = _conv_bn_lrelu_layer(x_nhwc, bn_layer)
        patches, ho4, wo4 = _im2col_nhwc(a3, kh4, kw4, s4, p4)
        w4_mat = w4.reshape(c4, c4_in * kh4 * kw4).T.astype(jnp.bfloat16)
        m4 = patches.shape[0]
        z = pl.pallas_call(
            _matmul_bias_kernel,
            out_shape=jax.ShapeDtypeStruct((m4, c4), jnp.float32),
            in_specs=[_VMEM] * 3,
            out_specs=_VMEM,
            compiler_params=_COMPILER_PARAMS,
        )(patches, w4_mat, b4.reshape(1, c4))
        return z.reshape(n, ho4, wo4, c4).transpose(0, 3, 1, 2)

    taps = kh4 * kw4
    patches, _, _ = _im2col_nhwc(x_nhwc.astype(jnp.bfloat16), kh3, kw3, s3, p3,
                                 hw_major=True)
    w3_mat = w3.reshape(c3, -1).T.astype(jnp.bfloat16)
    # (Cout, Cin, KH, KW) -> (taps, Cout, Cin), tap-major to match row ordering.
    w4_taps = jnp.transpose(w4, (2, 3, 0, 1)).reshape(taps, c4, c4_in)
    w4_taps = w4_taps.astype(jnp.bfloat16)
    m, k = patches.shape

    kernel = functools.partial(_conv_bn_lrelu_final_kernel, n_img=n, taps=taps)
    cost = pl.CostEstimate(
        flops=int(2 * m * k * c3 + 8 * m * c3 + 2 * taps * n * c4_in * c4),
        transcendentals=int(c3),
        bytes_accessed=int(patches.size * 2 + w3_mat.size * 2 + w4_taps.size * 2
                           + n * c4 * 4),
    )
    z = pl.pallas_call(
        kernel,
        out_shape=jax.ShapeDtypeStruct((n, c4), jnp.float32),
        in_specs=[_VMEM] * 6,
        out_specs=_VMEM,
        compiler_params=_COMPILER_PARAMS,
        cost_estimate=cost,
    )(patches, w3_mat, gamma.reshape(1, c3), beta.reshape(1, c3),
      w4_taps, b4.reshape(1, c4))
    return z.reshape(n, c4, 1, 1)


# ------------------------------ Parameters ---------------------------------

def init_params(key, num_in_channels=1, z_size=2, num_filters=64):
    """Deterministic parameter init mirroring the module's __init__ shapes.

    Biases are kept in the param dicts for faithfulness to the PyTorch module
    (the pure-JAX reference uses them), but the Pallas path does not pass them
    to the BN layers because training-mode BN cancels them exactly.
    """
    convs = [
        # (Cout, Cin, K, stride, pad, has_bn)
        (num_filters, num_in_channels, 5, 2, 1, True),
        (2 * num_filters, num_filters, 4, 2, 1, True),
        (4 * num_filters, 2 * num_filters, 4, 2, 1, True),
        (z_size, 4 * num_filters, 3, 1, 0, False),
    ]
    params = []
    for (c_out, c_in, k, s, p, has_bn) in convs:
        key, kw_, kb_, kg_ = jax.random.split(key, 4)
        fan_in = c_in * k * k
        fan_out = c_out * k * k
        # xavier_normal (as in weight_init for Conv modules)
        std = (2.0 / (fan_in + fan_out)) ** 0.5
        w = std * jax.random.normal(kw_, (c_out, c_in, k, k), jnp.float32)
        bound = 1.0 / (fan_in ** 0.5)
        b = jax.random.uniform(kb_, (c_out,), jnp.float32, -bound, bound)
        if has_bn:
            # BatchNorm weight_init: gamma ~ N(1, 0.02), beta = 0
            gamma = 1.0 + 0.02 * jax.random.normal(kg_, (c_out,), jnp.float32)
            beta = jnp.zeros((c_out,), jnp.float32)
        else:
            gamma, beta = None, None
        params.append(dict(w=w, b=b, gamma=gamma, beta=beta, stride=s, pad=p))
    return params


# ------------------------------- Forward -----------------------------------

def encoder_forward(params, x):
    """x: (N, C_in, H, W) float32 -> z: (N, z_size, H', W') float32 (NCHW)."""
    y = jnp.transpose(x, (0, 2, 3, 1))          # single NCHW -> NHWC transpose
    for layer in params[:-2]:                   # conv1, conv2 (+BN+LReLU)
        y = _conv_bn_lrelu_layer(y, layer)
    return _fused_tail(y, params[-2], params[-1])   # conv3(+BN+LReLU) + conv4


# Pure-JAX reference (same mixed-precision scheme) for sanity checking.
def _reference_forward(params, x):
    y = x
    for layer in params:
        w, b = layer["w"], layer["b"]
        s, p = layer["stride"], layer["pad"]
        conv = jax.lax.conv_general_dilated(
            y.astype(jnp.bfloat16), w.astype(jnp.bfloat16),
            window_strides=(s, s), padding=[(p, p), (p, p)],
            dimension_numbers=("NCHW", "OIHW", "NCHW"),
            preferred_element_type=jnp.float32)
        conv = conv + b.reshape(1, -1, 1, 1)
        if layer["gamma"] is not None:
            mean = jnp.mean(conv, axis=(0, 2, 3), keepdims=True)
            var = jnp.mean((conv - mean) ** 2, axis=(0, 2, 3), keepdims=True)
            conv = (conv - mean) * jax.lax.rsqrt(var + _BN_EPS)
            conv = (conv * layer["gamma"].reshape(1, -1, 1, 1)
                    + layer["beta"].reshape(1, -1, 1, 1))
            conv = jnp.where(conv > 0, conv, _LRELU_SLOPE * conv)
        y = conv
    return y


if __name__ == "__main__":
    key = jax.random.PRNGKey(0)
    kp, kx = jax.random.split(key)

    params = init_params(kp, num_in_channels=1, z_size=2, num_filters=64)

    # 32x32 single-channel images -> spatial trace 32 -> 15 -> 7 -> 3 -> 1,
    # so z has shape (N, 2, 1, 1).
    x = jax.random.normal(kx, (2, 1, 32, 32), jnp.float32)

    run = jax.jit(lambda inp: encoder_forward(params, inp))
    z = jax.block_until_ready(run(x))
    assert z.shape == (2, 2, 1, 1), z.shape

    z_ref = jax.block_until_ready(
        jax.jit(lambda inp: _reference_forward(params, inp))(x))
    assert jnp.allclose(z, z_ref, rtol=2e-2, atol=2e-2), (z, z_ref)

    print("KERNEL_OK")
</pallas_src>

<mosaic_0001>
module attributes {stable_mosaic.version = 11 : i64} {
  func.func @_conv_bn_lrelu_kernel(%arg0: memref<450x25xbf16, #tpu.memory_space<vmem>>, %arg1: memref<25x64xbf16, #tpu.memory_space<vmem>>, %arg2: memref<1x64xf32, #tpu.memory_space<vmem>>, %arg3: memref<1x64xf32, #tpu.memory_space<vmem>>, %arg4: memref<450x64xbf16, #tpu.memory_space<vmem>>) attributes {dimension_semantics = [], scalar_prefetch = 0 : i64, scratch_operands = 0 : i64, tpu.core_type = #tpu.core_type<tc>} {
    %c0 = arith.constant 0 : index
    %c0_0 = arith.constant 0 : index
    %0 = vector.load %arg0[%c0, %c0_0] : memref<450x25xbf16, #tpu.memory_space<vmem>>, vector<450x25xbf16>
    %c0_1 = arith.constant 0 : index
    %c0_2 = arith.constant 0 : index
    %1 = vector.load %arg1[%c0_1, %c0_2] : memref<25x64xbf16, #tpu.memory_space<vmem>>, vector<25x64xbf16>
    %cst = arith.constant dense<0.000000e+00> : vector<450x64xf32>
    %2 = tpu.matmul %0, %1, %cst {dimension_numbers = #tpu.dot_dimension_numbers<[1], [0], [0], [1], [0, 0, 1, 1], [], []>} : vector<450x25xbf16>, vector<25x64xbf16>, vector<450x64xf32> -> vector<450x64xf32>
    %cst_3 = arith.constant dense<0.000000e+00> : vector<64xf32>
    %3 = vector.multi_reduction <add>, %2, %cst_3 [0] : vector<450x64xf32> to vector<64xf32>
    %4 = vector.shape_cast %3 : vector<64xf32> to vector<1x64xf32>
    %cst_4 = arith.constant 0.00222222228 : f32
    %5 = vector.broadcast %cst_4 : f32 to vector<1x64xf32>
    %6 = arith.mulf %4, %5 : vector<1x64xf32>
    %7 = vector.broadcast %6 : vector<1x64xf32> to vector<450x64xf32>
    %8 = arith.subf %2, %7 : vector<450x64xf32>
    %9 = arith.mulf %8, %8 : vector<450x64xf32>
    %cst_5 = arith.constant dense<0.000000e+00> : vector<64xf32>
    %10 = vector.multi_reduction <add>, %9, %cst_5 [0] : vector<450x64xf32> to vector<64xf32>
    %11 = vector.shape_cast %10 : vector<64xf32> to vector<1x64xf32>
    %cst_6 = arith.constant 0.00222222228 : f32
    %12 = vector.broadcast %cst_6 : f32 to vector<1x64xf32>
    %13 = arith.mulf %11, %12 : vector<1x64xf32>
    %c0_7 = arith.constant 0 : index
    %c0_8 = arith.constant 0 : index
    %14 = vector.load %arg2[%c0_7, %c0_8] : memref<1x64xf32, #tpu.memory_space<vmem>>, vector<1x64xf32>
    %cst_9 = arith.constant 9.99999974E-6 : f32
    %15 = vector.broadcast %cst_9 : f32 to vector<1x64xf32>
    %16 = arith.addf %13, %15 : vector<1x64xf32>
    %17 = math.rsqrt %16 : vector<1x64xf32>
    %18 = arith.mulf %14, %17 : vector<1x64xf32>
    %19 = vector.broadcast %18 : vector<1x64xf32> to vector<450x64xf32>
    %20 = arith.mulf %8, %19 : vector<450x64xf32>
    %c0_10 = arith.constant 0 : index
    %c0_11 = arith.constant 0 : index
    %21 = vector.load %arg3[%c0_10, %c0_11] : memref<1x64xf32, #tpu.memory_space<vmem>>, vector<1x64xf32>
    %22 = vector.broadcast %21 : vector<1x64xf32> to vector<450x64xf32>
    %23 = arith.addf %20, %22 : vector<450x64xf32>
    %cst_12 = arith.constant 0.000000e+00 : f32
    %24 = vector.broadcast %cst_12 : f32 to vector<450x64xf32>
    %25 = arith.cmpf ogt, %23, %24 : vector<450x64xf32>
    %cst_13 = arith.constant 2.000000e-01 : f32
    %26 = vector.broadcast %cst_13 : f32 to vector<450x64xf32>
    %27 = arith.mulf %26, %23 : vector<450x64xf32>
    %28 = arith.select %25, %23, %27 : vector<450x64xi1>, vector<450x64xf32>
    %29 = arith.truncf %28 : vector<450x64xf32> to vector<450x64xbf16>
    %c0_14 = arith.constant 0 : index
    %c0_15 = arith.constant 0 : index
    %30 = vector.load %arg4[%c0_14, %c0_15] : memref<450x64xbf16, #tpu.memory_space<vmem>>, vector<450x64xbf16>
    tpu.vector_store %arg4[%c0_14, %c0_15], %29 {strides = array<i32>} : memref<450x64xbf16, #tpu.memory_space<vmem>>, vector<450x64xbf16>,
    return
  }
}

module attributes {stable_mosaic.version = 11 : i64} {
  func.func @_conv_bn_lrelu_kernel(%arg0: memref<98x1024xbf16, #tpu.memory_space<vmem>>, %arg1: memref<1024x128xbf16, #tpu.memory_space<vmem>>, %arg2: memref<1x128xf32, #tpu.memory_space<vmem>>, %arg3: memref<1x128xf32, #tpu.memory_space<vmem>>, %arg4: memref<98x128xbf16, #tpu.memory_space<vmem>>) attributes {dimension_semantics = [], scalar_prefetch = 0 : i64, scratch_operands = 0 : i64, tpu.core_type = #tpu.core_type<tc>} {
    %c0 = arith.constant 0 : index
    %c0_0 = arith.constant 0 : index
    %0 = vector.load %arg0[%c0, %c0_0] : memref<98x1024xbf16, #tpu.memory_space<vmem>>, vector<98x1024xbf16>
    %c0_1 = arith.constant 0 : index
    %c0_2 = arith.constant 0 : index
    %1 = vector.load %arg1[%c0_1, %c0_2] : memref<1024x128xbf16, #tpu.memory_space<vmem>>, vector<1024x128xbf16>
    %cst = arith.constant dense<0.000000e+00> : vector<98x128xf32>
    %2 = tpu.matmul %0, %1, %cst {dimension_numbers = #tpu.dot_dimension_numbers<[1], [0], [0], [1], [0, 0, 1, 1], [], []>} : vector<98x1024xbf16>, vector<1024x128xbf16>, vector<98x128xf32> -> vector<98x128xf32>
    %cst_3 = arith.constant dense<0.000000e+00> : vector<128xf32>
    %3 = vector.multi_reduction <add>, %2, %cst_3 [0] : vector<98x128xf32> to vector<128xf32>
    %4 = vector.shape_cast %3 : vector<128xf32> to vector<1x128xf32>
    %cst_4 = arith.constant 0.0102040814 : f32
    %5 = vector.broadcast %cst_4 : f32 to vector<1x128xf32>
    %6 = arith.mulf %4, %5 : vector<1x128xf32>
    %7 = vector.broadcast %6 : vector<1x128xf32> to vector<98x128xf32>
    %8 = arith.subf %2, %7 : vector<98x128xf32>
    %9 = arith.mulf %8, %8 : vector<98x128xf32>
    %cst_5 = arith.constant dense<0.000000e+00> : vector<128xf32>
    %10 = vector.multi_reduction <add>, %9, %cst_5 [0] : vector<98x128xf32> to vector<128xf32>
    %11 = vector.shape_cast %10 : vector<128xf32> to vector<1x128xf32>
    %cst_6 = arith.constant 0.0102040814 : f32
    %12 = vector.broadcast %cst_6 : f32 to vector<1x128xf32>
    %13 = arith.mulf %11, %12 : vector<1x128xf32>
    %c0_7 = arith.constant 0 : index
    %c0_8 = arith.constant 0 : index
    %14 = vector.load %arg2[%c0_7, %c0_8] : memref<1x128xf32, #tpu.memory_space<vmem>>, vector<1x128xf32>
    %cst_9 = arith.constant 9.99999974E-6 : f32
    %15 = vector.broadcast %cst_9 : f32 to vector<1x128xf32>
    %16 = arith.addf %13, %15 : vector<1x128xf32>
    %17 = math.rsqrt %16 : vector<1x128xf32>
    %18 = arith.mulf %14, %17 : vector<1x128xf32>
    %19 = vector.broadcast %18 : vector<1x128xf32> to vector<98x128xf32>
    %20 = arith.mulf %8, %19 : vector<98x128xf32>
    %c0_10 = arith.constant 0 : index
    %c0_11 = arith.constant 0 : index
    %21 = vector.load %arg3[%c0_10, %c0_11] : memref<1x128xf32, #tpu.memory_space<vmem>>, vector<1x128xf32>
    %22 = vector.broadcast %21 : vector<1x128xf32> to vector<98x128xf32>
    %23 = arith.addf %20, %22 : vector<98x128xf32>
    %cst_12 = arith.constant 0.000000e+00 : f32
    %24 = vector.broadcast %cst_12 : f32 to vector<98x128xf32>
    %25 = arith.cmpf ogt, %23, %24 : vector<98x128xf32>
    %cst_13 = arith.constant 2.000000e-01 : f32
    %26 = vector.broadcast %cst_13 : f32 to vector<98x128xf32>
    %27 = arith.mulf %26, %23 : vector<98x128xf32>
    %28 = arith.select %25, %23, %27 : vector<98x128xi1>, vector<98x128xf32>
    %29 = arith.truncf %28 : vector<98x128xf32> to vector<98x128xbf16>
    %c0_14 = arith.constant 0 : index
    %c0_15 = arith.constant 0 : index
    %30 = vector.load %arg4[%c0_14, %c0_15] : memref<98x128xbf16, #tpu.memory_space<vmem>>, vector<98x128xbf16>
    tpu.vector_store %arg4[%c0_14, %c0_15], %29 {strides = array<i32>} : memref<98x128xbf16, #tpu.memory_space<vmem>>, vector<98x128xbf16>,
    return
  }
}

module attributes {stable_mosaic.version = 11 : i64} {
  func.func @_conv_bn_lrelu_final_kernel(%arg0: memref<18x2048xbf16, #tpu.memory_space<vmem>>, %arg1: memref<2048x256xbf16, #tpu.memory_space<vmem>>, %arg2: memref<1x256xf32, #tpu.memory_space<vmem>>, %arg3: memref<1x256xf32, #tpu.memory_space<vmem>>, %arg4: memref<9x2x256xbf16, #tpu.memory_space<vmem>>, %arg5: memref<1x2xf32, #tpu.memory_space<vmem>>, %arg6: memref<2x2xf32, #tpu.memory_space<vmem>>) attributes {dimension_semantics = [], scalar_prefetch = 0 : i64, scratch_operands = 0 : i64, tpu.core_type = #tpu.core_type<tc>} {
    %c0 = arith.constant 0 : index
    %c0_0 = arith.constant 0 : index
    %0 = vector.load %arg0[%c0, %c0_0] : memref<18x2048xbf16, #tpu.memory_space<vmem>>, vector<18x2048xbf16>
    %c0_1 = arith.constant 0 : index
    %c0_2 = arith.constant 0 : index
    %1 = vector.load %arg1[%c0_1, %c0_2] : memref<2048x256xbf16, #tpu.memory_space<vmem>>, vector<2048x256xbf16>
    %cst = arith.constant dense<0.000000e+00> : vector<18x256xf32>
    %2 = tpu.matmul %0, %1, %cst {dimension_numbers = #tpu.dot_dimension_numbers<[1], [0], [0], [1], [0, 0, 1, 1], [], []>} : vector<18x2048xbf16>, vector<2048x256xbf16>, vector<18x256xf32> -> vector<18x256xf32>
    %cst_3 = arith.constant dense<0.000000e+00> : vector<256xf32>
    %3 = vector.multi_reduction <add>, %2, %cst_3 [0] : vector<18x256xf32> to vector<256xf32>
    %4 = vector.shape_cast %3 : vector<256xf32> to vector<1x256xf32>
    %cst_4 = arith.constant 0.055555556 : f32
    %5 = vector.broadcast %cst_4 : f32 to vector<1x256xf32>
    %6 = arith.mulf %4, %5 : vector<1x256xf32>
    %7 = vector.broadcast %6 : vector<1x256xf32> to vector<18x256xf32>
    %8 = arith.subf %2, %7 : vector<18x256xf32>
    %9 = arith.mulf %8, %8 : vector<18x256xf32>
    %cst_5 = arith.constant dense<0.000000e+00> : vector<256xf32>
    %10 = vector.multi_reduction <add>, %9, %cst_5 [0] : vector<18x256xf32> to vector<256xf32>
    %11 = vector.shape_cast %10 : vector<256xf32> to vector<1x256xf32>
    %cst_6 = arith.constant 0.055555556 : f32
    %12 = vector.broadcast %cst_6 : f32 to vector<1x256xf32>
    %13 = arith.mulf %11, %12 : vector<1x256xf32>
    %c0_7 = arith.constant 0 : index
    %c0_8 = arith.constant 0 : index
    %14 = vector.load %arg2[%c0_7, %c0_8] : memref<1x256xf32, #tpu.memory_space<vmem>>, vector<1x256xf32>
    %cst_9 = arith.constant 9.99999974E-6 : f32
    %15 = vector.broadcast %cst_9 : f32 to vector<1x256xf32>
    %16 = arith.addf %13, %15 : vector<1x256xf32>
    %17 = math.rsqrt %16 : vector<1x256xf32>
    %18 = arith.mulf %14, %17 : vector<1x256xf32>
    %19 = vector.broadcast %18 : vector<1x256xf32> to vector<18x256xf32>
    %20 = arith.mulf %8, %19 : vector<18x256xf32>
    %c0_10 = arith.constant 0 : index
    %c0_11 = arith.constant 0 : index
    %21 = vector.load %arg3[%c0_10, %c0_11] : memref<1x256xf32, #tpu.memory_space<vmem>>, vector<1x256xf32>
    %22 = vector.broadcast %21 : vector<1x256xf32> to vector<18x256xf32>
    %23 = arith.addf %20, %22 : vector<18x256xf32>
    %cst_12 = arith.constant 0.000000e+00 : f32
    %24 = vector.broadcast %cst_12 : f32 to vector<18x256xf32>
    %25 = arith.cmpf ogt, %23, %24 : vector<18x256xf32>
    %cst_13 = arith.constant 2.000000e-01 : f32
    %26 = vector.broadcast %cst_13 : f32 to vector<18x256xf32>
    %27 = arith.mulf %26, %23 : vector<18x256xf32>
    %28 = arith.select %25, %23, %27 : vector<18x256xi1>, vector<18x256xf32>
    %cst_14 = arith.constant 0.000000e+00 : f32
    %29 = vector.broadcast %cst_14 : f32 to vector<2x2xf32>
    %30 = vector.extract_strided_slice %28 {offsets = [0, 0], sizes = [2, 256], strides = [1, 1]} : vector<18x256xf32> to vector<2x256xf32>
    %31 = arith.truncf %30 : vector<2x256xf32> to vector<2x256xbf16>
    %c0_15 = arith.constant 0 : index
    %c0_16 = arith.constant 0 : index
    %c0_17 = arith.constant 0 : index
    %32 = vector.load %arg4[%c0_15, %c0_16, %c0_17] : memref<9x2x256xbf16, #tpu.memory_space<vmem>>, vector<1x2x256xbf16>
    %33 = vector.shape_cast %32 : vector<1x2x256xbf16> to vector<2x256xbf16>
    %cst_18 = arith.constant dense<0.000000e+00> : vector<2x2xf32>
    %34 = tpu.matmul %31, %33, %cst_18 {dimension_numbers = #tpu.dot_dimension_numbers<[1], [1], [0], [0], [0, 0, 1, 0], [], []>} : vector<2x256xbf16>, vector<2x256xbf16>, vector<2x2xf32> -> vector<2x2xf32>
    %35 = arith.addf %29, %34 : vector<2x2xf32>
    %36 = vector.extract_strided_slice %28 {offsets = [2, 0], sizes = [2, 256], strides = [1, 1]} : vector<18x256xf32> to vector<2x256xf32>
    %37 = arith.truncf %36 : vector<2x256xf32> to vector<2x256xbf16>
    %c1 = arith.constant 1 : index
    %c0_19 = arith.constant 0 : index
    %c0_20 = arith.constant 0 : index
    %38 = vector.load %arg4[%c1, %c0_19, %c0_20] : memref<9x2x256xbf16, #tpu.memory_space<vmem>>, vector<1x2x256xbf16>
    %39 = vector.shape_cast %38 : vector<1x2x256xbf16> to vector<2x256xbf16>
    %cst_21 = arith.constant dense<0.000000e+00> : vector<2x2xf32>
    %40 = tpu.matmul %37, %39, %cst_21 {dimension_numbers = #tpu.dot_dimension_numbers<[1], [1], [0], [0], [0, 0, 1, 0], [], []>} : vector<2x256xbf16>, vector<2x256xbf16>, vector<2x2xf32> -> vector<2x2xf32>
    %41 = arith.addf %35, %40 : vector<2x2xf32>
    %42 = vector.extract_strided_slice %28 {offsets = [4, 0], sizes = [2, 256], strides = [1, 1]} : vector<18x256xf32> to vector<2x256xf32>
    %43 = arith.truncf %42 : vector<2x256xf32> to vector<2x256xbf16>
    %c2 = arith.constant 2 : index
    %c0_22 = arith.constant 0 : index
    %c0_23 = arith.constant 0 : index
    %44 = vector.load %arg4[%c2, %c0_22, %c0_23] : memref<9x2x256xbf16, #tpu.memory_space<vmem>>, vector<1x2x256xbf16>
    %45 = vector.shape_cast %44 : vector<1x2x256xbf16> to vector<2x256xbf16>
    %cst_24 = arith.constant dense<0.000000e+00> : vector<2x2xf32>
    %46 = tpu.matmul %43, %45, %cst_24 {dimension_numbers = #tpu.dot_dimension_numbers<[1], [1], [0], [0], [0, 0, 1, 0], [], []>} : vector<2x256xbf16>, vector<2x256xbf16>, vector<2x2xf32> -> vector<2x2xf32>
    %47 = arith.addf %41, %46 : vector<2x2xf32>
    %48 = vector.extract_strided_slice %28 {offsets = [6, 0], sizes = [2, 256], strides = [1, 1]} : vector<18x256xf32> to vector<2x256xf32>
    %49 = arith.truncf %48 : vector<2x256xf32> to vector<2x256xbf16>
    %c3 = arith.constant 3 : index
    %c0_25 = arith.constant 0 : index
    %c0_26 = arith.constant 0 : index
    %50 = vector.load %arg4[%c3, %c0_25, %c0_26] : memref<9x2x256xbf16, #tpu.memory_space<vmem>>, vector<1x2x256xbf16>
    %51 = vector.shape_cast %50 : vector<1x2x256xbf16> to vector<2x256xbf16>
    %cst_27 = arith.constant dense<0.000000e+00> : vector<2x2xf32>
    %52 = tpu.matmul %49, %51, %cst_27 {dimension_numbers = #tpu.dot_dimension_numbers<[1], [1], [0], [0], [0, 0, 1, 0], [], []>} : vector<2x256xbf16>, vector<2x256xbf16>, vector<2x2xf32> -> vector<2x2xf32>
    %53 = arith.addf %47, %52 : vector<2x2xf32>
    %54 = vector.extract_strided_slice %28 {offsets = [8, 0], sizes = [2, 256], strides = [1, 1]} : vector<18x256xf32> to vector<2x256xf32>
    %55 = arith.truncf %54 : vector<2x256xf32> to vector<2x256xbf16>
    %c4 = arith.constant 4 : index
    %c0_28 = arith.constant 0 : index
    %c0_29 = arith.constant 0 : index
    %56 = vector.load %arg4[%c4, %c0_28, %c0_29] : memref<9x2x256xbf16, #tpu.memory_space<vmem>>, vector<1x2x256xbf16>
    %57 = vector.shape_cast %56 : vector<1x2x256xbf16> to vector<2x256xbf16>
    %cst_30 = arith.constant dense<0.000000e+00> : vector<2x2xf32>
    %58 = tpu.matmul %55, %57, %cst_30 {dimension_numbers = #tpu.dot_dimension_numbers<[1], [1], [0], [0], [0, 0, 1, 0], [], []>} : vector<2x256xbf16>, vector<2x256xbf16>, vector<2x2xf32> -> vector<2x2xf32>
    %59 = arith.addf %53, %58 : vector<2x2xf32>
    %60 = vector.extract_strided_slice %28 {offsets = [10, 0], sizes = [2, 256], strides = [1, 1]} : vector<18x256xf32> to vector<2x256xf32>
    %61 = arith.truncf %60 : vector<2x256xf32> to vector<2x256xbf16>
    %c5 = arith.constant 5 : index
    %c0_31 = arith.constant 0 : index
    %c0_32 = arith.constant 0 : index
    %62 = vector.load %arg4[%c5, %c0_31, %c0_32] : memref<9x2x256xbf16, #tpu.memory_space<vmem>>, vector<1x2x256xbf16>
    %63 = vector.shape_cast %62 : vector<1x2x256xbf16> to vector<2x256xbf16>
    %cst_33 = arith.constant dense<0.000000e+00> : vector<2x2xf32>
    %64 = tpu.matmul %61, %63, %cst_33 {dimension_numbers = #tpu.dot_dimension_numbers<[1], [1], [0], [0], [0, 0, 1, 0], [], []>} : vector<2x256xbf16>, vector<2x256xbf16>, vector<2x2xf32> -> vector<2x2xf32>
    %65 = arith.addf %59, %64 : vector<2x2xf32>
    %66 = vector.extract_strided_slice %28 {offsets = [12, 0], sizes = [2, 256], strides = [1, 1]} : vector<18x256xf32> to vector<2x256xf32>
    %67 = arith.truncf %66 : vector<2x256xf32> to vector<2x256xbf16>
    %c6 = arith.constant 6 : index
    %c0_34 = arith.constant 0 : index
    %c0_35 = arith.constant 0 : index
    %68 = vector.load %arg4[%c6, %c0_34, %c0_35] : memref<9x2x256xbf16, #tpu.memory_space<vmem>>, vector<1x2x256xbf16>
    %69 = vector.shape_cast %68 : vector<1x2x256xbf16> to vector<2x256xbf16>
    %cst_36 = arith.constant dense<0.000000e+00> : vector<2x2xf32>
    %70 = tpu.matmul %67, %69, %cst_36 {dimension_numbers = #tpu.dot_dimension_numbers<[1], [1], [0], [0], [0, 0, 1, 0], [], []>} : vector<2x256xbf16>, vector<2x256xbf16>, vector<2x2xf32> -> vector<2x2xf32>
    %71 = arith.addf %65, %70 : vector<2x2xf32>
    %72 = vector.extract_strided_slice %28 {offsets = [14, 0], sizes = [2, 256], strides = [1, 1]} : vector<18x256xf32> to vector<2x256xf32>
    %73 = arith.truncf %72 : vector<2x256xf32> to vector<2x256xbf16>
    %c7 = arith.constant 7 : index
    %c0_37 = arith.constant 0 : index
    %c0_38 = arith.constant 0 : index
    %74 = vector.load %arg4[%c7, %c0_37, %c0_38] : memref<9x2x256xbf16, #tpu.memory_space<vmem>>, vector<1x2x256xbf16>
    %75 = vector.shape_cast %74 : vector<1x2x256xbf16> to vector<2x256xbf16>
    %cst_39 = arith.constant dense<0.000000e+00> : vector<2x2xf32>
    %76 = tpu.matmul %73, %75, %cst_39 {dimension_numbers = #tpu.dot_dimension_numbers<[1], [1], [0], [0], [0, 0, 1, 0], [], []>} : vector<2x256xbf16>, vector<2x256xbf16>, vector<2x2xf32> -> vector<2x2xf32>
    %77 = arith.addf %71, %76 : vector<2x2xf32>
    %78 = vector.extract_strided_slice %28 {offsets = [16, 0], sizes = [2, 256], strides = [1, 1]} : vector<18x256xf32> to vector<2x256xf32>
    %79 = arith.truncf %78 : vector<2x256xf32> to vector<2x256xbf16>
    %c8 = arith.constant 8 : index
    %c0_40 = arith.constant 0 : index
    %c0_41 = arith.constant 0 : index
    %80 = vector.load %arg4[%c8, %c0_40, %c0_41] : memref<9x2x256xbf16, #tpu.memory_space<vmem>>, vector<1x2x256xbf16>
    %81 = vector.shape_cast %80 : vector<1x2x256xbf16> to vector<2x256xbf16>
    %cst_42 = arith.constant dense<0.000000e+00> : vector<2x2xf32>
    %82 = tpu.matmul %79, %81, %cst_42 {dimension_numbers = #tpu.dot_dimension_numbers<[1], [1], [0], [0], [0, 0, 1, 0], [], []>} : vector<2x256xbf16>, vector<2x256xbf16>, vector<2x2xf32> -> vector<2x2xf32>
    %83 = arith.addf %77, %82 : vector<2x2xf32>
    %c0_43 = arith.constant 0 : index
    %c0_44 = arith.constant 0 : index
    %84 = vector.load %arg5[%c0_43, %c0_44] : memref<1x2xf32, #tpu.memory_space<vmem>>, vector<1x2xf32>
    %85 = vector.broadcast %84 : vector<1x2xf32> to vector<2x2xf32>
    %86 = arith.addf %83, %85 : vector<2x2xf32>
    %c0_45 = arith.constant 0 : index
    %c0_46 = arith.constant 0 : index
    %87 = vector.load %arg6[%c0_45, %c0_46] : memref<2x2xf32, #tpu.memory_space<vmem>>, vector<2x2xf32>
    tpu.vector_store %arg6[%c0_45, %c0_46], %86 {strides = array<i32>} : memref<2x2xf32, #tpu.memory_space<vmem>>, vector<2x2xf32>,
    return
  }
}

</mosaic_0001>

<bundles_post_ra>
// kernel: _lambda_.3
= control target key start
LH: loop header
LB: loop body
LE: loop exit
PB: predicated region body
PF: predicated region fallthrough
CT: control target
= control target key end

     0   :  { %9 = vsyncpa [#allocation3], 0  ;;  %s3880_s0 = inlined_call_operand.vmem [shape: bf16[450,25], index: 0, kind: input, shape index: {}]   ;;  %s3881_s1 = inlined_call_operand.hbm [shape: bf16[25,64], index: 1, kind: input, shape index: {}]   ;;  %s3882_s2 = inlined_call_operand.hbm [shape: f32[1,64], index: 2, kind: input, shape index: {}]   ;;  %s3883_s3 = inlined_call_operand.vmem [shape: f32[1,64], index: 3, kind: input, shape index: {}]   ;;  %s3884_s4 = inlined_call_operand.vmem [shape: bf16[450,64], index: 4, kind: output, shape index: {}]  }
   0x1   :  { %10 = vsyncpa [#allocation5], 0  ;;  %s1988_s15 = smov [#allocation2]   ;;  %s1940_s19 = scalar_lea.hbm %s3881_s1, 256 }
   0x2   :  { %s18_s16 = sshll.u32 %s1988_s15, 4  ;;  %p1941_p0 = scmp.ne.s32.totalorder %s3881_s1, %s1940_s19  ;;  %s19_s16 = int_to_ptr.vmem [resolvable:$true] %s18_s16 }
   0x3   :  { %p1944_p1 = scmp.lt.u32.totalorder %s1940_s19, %s3881_s1 }
   0x5   :  { %p1946_p2 = pnand %p1944_p1, %p1941_p0 }
   0x7   :  { %1949 = shalt.err (!%p1946_p2)
}
   0x8   :  { %s1950_s24 = scalar_lea.vmem %s19_s16, 256  ;;  %p1955_p4 = scmp.lt.s32.totalorder %s19_s16, %s19_s16 }
   0x9   :  { %p1951_p3 = scmp.ne.s32.totalorder %s19_s16, %s1950_s24  ;;  %p1956_p5 = scmp.lt.s32.totalorder %s1950_s24, %s1950_s24 }
   0xb   :  { %p1957_p6 = por %p1956_p5, %p1955_p4 }
   0xd   :  { %p1958_p7 = pnand %p1957_p6, %p1951_p3 }
   0xf   :  { %1961 = shalt.err (!%p1958_p7)
}
  0x10   :  { %s1989_s25 = smov 64   ;;  %s1990_s26 = smov 4  }
  0x11   :  { %24 = dma.hbm_to_vmem [thread:$0]  %s3881_s1, 256, %s19_s16, [#allocation3], %s1989_s25, %s1989_s25, %s1990_s26  }
  0x12   :  { %s1991_s29 = smov [#allocation4]   ;;  %s1962_s7 = scalar_lea.hbm %s3882_s2, 16 }
  0x13   :  { %s31_s30 = sshll.u32 %s1991_s29, 4  ;;  %p1963_p8 = scmp.ne.s32.totalorder %s3882_s2, %s1962_s7  ;;  %s32_s30 = int_to_ptr.vmem [resolvable:$true] %s31_s30 }
  0x14   :  { %p1966_p9 = scmp.lt.u32.totalorder %s1962_s7, %s3882_s2 }
  0x16   :  { %p1968_p10 = pnand %p1966_p9, %p1963_p8 }
  0x18   :  { %1971 = shalt.err (!%p1968_p10)
}
  0x19   :  { %s1972_s12 = scalar_lea.vmem %s32_s30, 16  ;;  %s1976_s1 = scalar_lea.vmem %s32_s30, 32 }
  0x1a   :  { %p1973_p11 = scmp.ne.s32.totalorder %s32_s30, %s1972_s12  ;;  %p1977_p12 = scmp.lt.s32.totalorder %s32_s30, %s32_s30 }
  0x1b   :  { %p1978_p13 = scmp.lt.s32.totalorder %s1976_s1, %s1972_s12 }
  0x1d   :  { %p1979_p0 = por %p1978_p13, %p1977_p12 }
  0x1f   :  { %p1980_p1 = pnand %p1979_p0, %p1973_p11 }
  0x21   :  { %1983 = shalt.err (!%p1980_p1)
}
  0x22   :  { %34 = dma.hbm_to_vmem [thread:$0]  %s3882_s2, 16, %s32_s30, [#allocation5]  }
  0x23   :  { %1984 = dma.done.wait [#allocation3], 256  }
  0x24   :  { %1985 = vsyncadd [#allocation3], 4294967040 }
  0x25   :  { %1986 = dma.done.wait [#allocation5], 16  }
  0x26   :  { %1987 = vsyncadd [#allocation5], 4294967280  ;;  %v1992_v0 = vmov 0.0   ;;  %vm347_vm0 = vcmask 1043456   ;;  %vm1993_vm1 = vmmov 0   ;;  %vm348_vm2 = vcmask 1044480  }
  0x27   :  { %1776 = vmatprep.subr.bf16.mxu0 %v1992_v0  ;;  %1896 = vmatprep.subr.bf16.mxu1 %v1992_v0  ;;  %v1994_v1 = vmov 65535   ;;  %v1907_v3 = vld [vmem:[#allocation2] sm:$0xff]   ;;  %v1908_v5 = vld [vmem:[#allocation2 + $0x8] sm:$0x1f]   ;;  %vm259_vm3 = vcmask 203776   ;;  %v1917_v8 = vld [vmem:[%s3880_s0 + $0x78] sm:$0xff]  }
  0x28   :  { %1780 = vmatprep.mubr.msk.bf16.mxu0 %vm1993_vm1, %v1992_v0  ;;  %1840 = vmatprep.mubr.msk.bf16.mxu1 %vm1993_vm1, %v1992_v0  ;;  %v349_v2 = vsel %vm347_vm0, 4294967295, %v1994_v1  ;;  %v1909_v7 = vld [vmem:[%s3880_s0] sm:$0xff]   ;;  %v1910_v9 = vld [vmem:[%s3880_s0 + $0x8] sm:$0xff]   ;;  %v1911_v11 = vld [vmem:[%s3880_s0 + $0x10] sm:$0xff]   ;;  %vm618_vm4 = vcmask 523264   ;;  %vm730_vm5 = vcmask 517120  }
  0x29   :  { %v350_v4 = vsel %vm348_vm2, %v349_v2, 0  ;;  %1777 = vmatpush3.bf16.msra.mxu0 %v1907_v3  ;;  %1898 = vmatpush3.bf16.msra.mxu1 %v1907_v3  ;;  %v1919_v10 = vld [vmem:[%s3880_s0 + $0x80] sm:$0xff]   ;;  %v1921_v12 = vld [vmem:[%s3880_s0 + $0x88] sm:$0xff]   ;;  %v1912_v13 = vld [vmem:[%s3880_s0 + $0x18] sm:$0xff]  }
  0x2a   :  { %1778 = vmatprep.subr.bf16.mxu0 %v1992_v0  ;;  %v352_v6 = vand.u32 %v1908_v5, %v350_v4  ;;  %1897 = vmatprep.subr.bf16.mxu1 %v1992_v0  ;;  %v1923_v14 = vld [vmem:[%s3880_s0 + $0x90] sm:$0xff]   ;;  %v1913_v15 = vld [vmem:[%s3880_s0 + $0x20] sm:$0xff]   ;;  %v1925_v16 = vld [vmem:[%s3880_s0 + $0x98] sm:$0xff]  }
  0x2b   :  { %v1914_v17 = vld [vmem:[%s3880_s0 + $0x28] sm:$0xff]   ;;  %v1927_v18 = vld [vmem:[%s3880_s0 + $0xa0] sm:$0xff]   ;;  %v1915_v19 = vld [vmem:[%s3880_s0 + $0x30] sm:$0xff]  }
  0x2c   :  { %v1929_v20 = vld [vmem:[%s3880_s0 + $0xa8] sm:$0xff]   ;;  %v1916_v21 = vld [vmem:[%s3880_s0 + $0x38] sm:$0xff]   ;;  %v1931_v22 = vld [vmem:[%s3880_s0 + $0xb0] sm:$0xff]  }
  0x2d   :  { %1779 = vmatpush3.bf16.msra.mxu0 %v352_v6  ;;  %1899 = vmatpush3.bf16.msra.mxu1 %v352_v6  ;;  %v1918_v23 = vld [vmem:[%s3880_s0 + $0x40] sm:$0xff]   ;;  %v1932_v24 = vld [vmem:[%s3880_s0 + $0xb8] sm:$0xff]   ;;  %v1920_v25 = vld [vmem:[%s3880_s0 + $0x48] sm:$0xff]  }
  0x2e   :  { %v1933_v26 = vld [vmem:[%s3880_s0 + $0xc0] sm:$0xff]   ;;  %v1922_v27 = vld [vmem:[%s3880_s0 + $0x50] sm:$0xff]   ;;  %v1934_v28 = vld [vmem:[%s3880_s0 + $0xc8] sm:$0xff]  }
  0x2f   :  { %v1924_v29 = vld [vmem:[%s3880_s0 + $0x58] sm:$0xff]   ;;  %v1935_v30 = vld [vmem:[%s3880_s0 + $0xd0] sm:$0xff]   ;;  %v1926_v31 = vld [vmem:[%s3880_s0 + $0x60] sm:$0xff]  }
  0x30   :  { %1781 = vmatmul.mubr.msk.bf16.vlgmr.msra.gmra.mrb[0].mxu0 %vm259_vm3, %v1909_v7  ;;  %1841 = vmatmul.mubr.msk.bf16.vlgmr.msra.gmra.mrb[0].mxu1 %vm259_vm3, %v1917_v8  ;;  %v1936_v32 = vld [vmem:[%s3880_s0 + $0xd8] sm:$0xff]   ;;  %v1928_v33 = vld [vmem:[%s3880_s0 + $0x68] sm:$0xff]   ;;  %v1937_v34 = vld [vmem:[%s3880_s0 + $0xe0] ss:$0 sps:$4 sm:$0x11]  }
  0x31   :  { %1784 = vmatprep.mubr.msk.bf16.mxu0 %vm1993_vm1, %v1992_v0  ;;  %1844 = vmatprep.mubr.msk.bf16.mxu1 %vm1993_vm1, %v1992_v0  ;;  %v1930_v35 = vld [vmem:[%s3880_s0 + $0x70] sm:$0xff]  }
  0x38   :  { %1785 = vmatmul.mubr.msk.bf16.gmra.mrb[4].mxu0 %vm259_vm3, %v1910_v9  ;;  %1845 = vmatmul.mubr.msk.bf16.gmra.mrb[4].mxu1 %vm259_vm3, %v1919_v10 }
  0x39   :  { %1788 = vmatprep.mubr.msk.bf16.mxu0 %vm1993_vm1, %v1992_v0  ;;  %1848 = vmatprep.mubr.msk.bf16.mxu1 %vm1993_vm1, %v1992_v0 }
  0x40   :  { %1789 = vmatmul.mubr.msk.bf16.gmra.mrb[8].mxu0 %vm259_vm3, %v1911_v11  ;;  %1849 = vmatmul.mubr.msk.bf16.gmra.mrb[8].mxu1 %vm259_vm3, %v1921_v12 }
  0x41   :  { %1792 = vmatprep.mubr.msk.bf16.mxu0 %vm1993_vm1, %v1992_v0  ;;  %1852 = vmatprep.mubr.msk.bf16.mxu1 %vm1993_vm1, %v1992_v0 }
  0x48   :  { %1793 = vmatmul.mubr.msk.bf16.gmra.mrb[12].mxu0 %vm259_vm3, %v1912_v13  ;;  %1853 = vmatmul.mubr.msk.bf16.gmra.mrb[12].mxu1 %vm259_vm3, %v1923_v14 }
  0x49   :  { %1796 = vmatprep.mubr.msk.bf16.mxu0 %vm1993_vm1, %v1992_v0  ;;  %1856 = vmatprep.mubr.msk.bf16.mxu1 %vm1993_vm1, %v1992_v0 }
  0x50   :  { %1797 = vmatmul.mubr.msk.bf16.gmra.mrb[16].mxu0 %vm259_vm3, %v1913_v15  ;;  %1857 = vmatmul.mubr.msk.bf16.gmra.mrb[16].mxu1 %vm259_vm3, %v1925_v16 }
  0x51   :  { %1800 = vmatprep.mubr.msk.bf16.mxu0 %vm1993_vm1, %v1992_v0  ;;  %1860 = vmatprep.mubr.msk.bf16.mxu1 %vm1993_vm1, %v1992_v0 }
  0x58   :  { %1801 = vmatmul.mubr.msk.bf16.gmra.mrb[20].mxu0 %vm259_vm3, %v1914_v17  ;;  %1861 = vmatmul.mubr.msk.bf16.gmra.mrb[20].mxu1 %vm259_vm3, %v1927_v18 }
  0x59   :  { %1804 = vmatprep.mubr.msk.bf16.mxu0 %vm1993_vm1, %v1992_v0  ;;  %1864 = vmatprep.mubr.msk.bf16.mxu1 %vm1993_vm1, %v1992_v0 }
  0x60   :  { %1805 = vmatmul.mubr.msk.bf16.gmra.mrb[24].mxu0 %vm259_vm3, %v1915_v19  ;;  %1865 = vmatmul.mubr.msk.bf16.gmra.mrb[24].mxu1 %vm259_vm3, %v1929_v20 }
  0x61   :  { %1808 = vmatprep.mubr.msk.bf16.mxu0 %vm1993_vm1, %v1992_v0  ;;  %1868 = vmatprep.mubr.msk.bf16.mxu1 %vm1993_vm1, %v1992_v0 }
  0x68   :  { %1809 = vmatmul.mubr.msk.bf16.gmra.mrb[28].mxu0 %vm259_vm3, %v1916_v21  ;;  %1869 = vmatmul.mubr.msk.bf16.gmra.mrb[28].mxu1 %vm259_vm3, %v1931_v22 }
  0x69   :  { %1812 = vmatprep.mubr.msk.bf16.mxu0 %vm1993_vm1, %v1992_v0  ;;  %1872 = vmatprep.mubr.msk.bf16.mxu1 %vm1993_vm1, %v1992_v0 }
  0x70   :  { %1813 = vmatmul.mubr.msk.bf16.gmra.mrb[32].mxu0 %vm259_vm3, %v1918_v23  ;;  %1873 = vmatmul.mubr.msk.bf16.gmra.mrb[32].mxu1 %vm259_vm3, %v1932_v24 }
  0x71   :  { %1816 = vmatprep.mubr.msk.bf16.mxu0 %vm1993_vm1, %v1992_v0  ;;  %1876 = vmatprep.mubr.msk.bf16.mxu1 %vm1993_vm1, %v1992_v0 }
  0x78   :  { %1817 = vmatmul.mubr.msk.bf16.gmra.mrb[36].mxu0 %vm259_vm3, %v1920_v25  ;;  %1877 = vmatmul.mubr.msk.bf16.gmra.mrb[36].mxu1 %vm259_vm3, %v1933_v26 }
  0x79   :  { %1820 = vmatprep.mubr.msk.bf16.mxu0 %vm1993_vm1, %v1992_v0  ;;  %1880 = vmatprep.mubr.msk.bf16.mxu1 %vm1993_vm1, %v1992_v0 }
  0x80   :  { %1821 = vmatmul.mubr.msk.bf16.gmra.mrb[40].mxu0 %vm259_vm3, %v1922_v27  ;;  %1881 = vmatmul.mubr.msk.bf16.gmra.mrb[40].mxu1 %vm259_vm3, %v1934_v28 }
  0x81   :  { %1824 = vmatprep.mubr.msk.bf16.mxu0 %vm1993_vm1, %v1992_v0  ;;  %1884 = vmatprep.mubr.msk.bf16.mxu1 %vm1993_vm1, %v1992_v0 }
  0x88   :  { %1825 = vmatmul.mubr.msk.bf16.gmra.mrb[44].mxu0 %vm259_vm3, %v1924_v29  ;;  %1885 = vmatmul.mubr.msk.bf16.gmra.mrb[44].mxu1 %vm259_vm3, %v1935_v30 }
  0x89   :  { %1828 = vmatprep.mubr.msk.bf16.mxu0 %vm1993_vm1, %v1992_v0  ;;  %1888 = vmatprep.mubr.msk.bf16.mxu1 %vm1993_vm1, %v1992_v0 }
  0x90   :  { %1829 = vmatmul.mubr.msk.bf16.gmra.mrb[48].mxu0 %vm259_vm3, %v1926_v31  ;;  %1889 = vmatmul.mubr.msk.bf16.gmra.mrb[48].mxu1 %vm259_vm3, %v1936_v32 }
  0x91   :  { %1832 = vmatprep.mubr.msk.bf16.mxu0 %vm1993_vm1, %v1992_v0  ;;  %1892 = vmatprep.mubr.msk.bf16.mxu1 %vm1993_vm1, %v1992_v0 }
  0x98   :  { %1833 = vmatmul.mubr.msk.bf16.gmra.mrb[52].mxu0 %vm259_vm3, %v1928_v33  ;;  %1893 = vmatmul.mubr.msk.bf16.gmra.mrb[52].mxu1 %vm259_vm3, %v1937_v34 }
  0x99   :  { %1836 = vmatprep.mubr.msk.bf16.mxu0 %vm1993_vm1, %v1992_v0 }
  0xa0   :  { %1837 = vmatmul.mubr.msk.bf16.gmra.mrb[56].mxu0 %vm259_vm3, %v1930_v35 }
 0x103   :  { %v2222_v36 = vpop.f32.mrb[0].mxu0  ;;  %v2230_v42 = vpop.f32.mrb[0].mxu1 }
 0x104   :  { %v1782_v37 = vpop.f32.mrb[1].mxu0  ;;  %v619_v39 = vsel %vm618_vm4, %v2222_v36, 0.0  ;;  %v1842_v44 = vpop.f32.mrb[1].mxu1 }
 0x105   :  { %v2224_v38 = vpop.f32.mrb[2].mxu0  ;;  %v2232_v45 = vpop.f32.mrb[2].mxu1 }
 0x106   :  { %v620_v40 = vsel %vm618_vm4, %v2224_v38, 0.0  ;;  %v1783_v41 = vpop.f32.mrb[3].mxu0  ;;  %v1843_v46 = vpop.f32.mrb[3].mxu1 }
 0x107   :  { %v621_v43 = vadd.f32 %v620_v40, %v619_v39 }
 0x10b   :  { %v2234_v47 = vpop.f32.mrb[4].mxu0  ;;  %v2242_v54 = vpop.f32.mrb[4].mxu1 }
 0x10c   :  { %v622_v48 = vsel %vm618_vm4, %v2234_v47, 0.0  ;;  %v1786_v49 = vpop.f32.mrb[5].mxu0  ;;  %v1846_v56 = vpop.f32.mrb[5].mxu1 }
 0x10d   :  { %v623_v50 = vadd.f32 %v622_v48, %v621_v43  ;;  %v2238_v51 = vpop.f32.mrb[6].mxu0  ;;  %v2244_v57 = vpop.f32.mrb[6].mxu1 }
 0x10e   :  { %v624_v52 = vsel %vm618_vm4, %v2238_v51, 0.0  ;;  %v1787_v53 = vpop.f32.mrb[7].mxu0  ;;  %v1847_v58 = vpop.f32.mrb[7].mxu1 }
 0x10f   :  { %v625_v55 = vadd.f32 %v624_v52, %v623_v50 }
 0x113   :  { %v2246_v59 = vpop.f32.mrb[8].mxu0  ;;  %v2254_v2 = vpop.f32.mrb[8].mxu1 }
 0x114   :  { %v626_v60 = vsel %vm618_vm4, %v2246_v59, 0.0  ;;  %v1790_v61 = vpop.f32.mrb[9].mxu0  ;;  %v1850_v4 = vpop.f32.mrb[9].mxu1 }
 0x115   :  { %v627_v62 = vadd.f32 %v626_v60, %v625_v55  ;;  %v2250_v63 = vpop.f32.mrb[10].mxu0  ;;  %v2256_v5 = vpop.f32.mrb[10].mxu1 }
 0x116   :  { %v628_v0 = vsel %vm618_vm4, %v2250_v63, 0.0  ;;  %v1791_v1 = vpop.f32.mrb[11].mxu0  ;;  %v1851_v6 = vpop.f32.mrb[11].mxu1 }
 0x117   :  { %v629_v3 = vadd.f32 %v628_v0, %v627_v62 }
 0x11b   :  { %v2258_v7 = vpop.f32.mrb[12].mxu0  ;;  %v2266_v14 = vpop.f32.mrb[12].mxu1 }
 0x11c   :  { %v630_v8 = vsel %vm618_vm4, %v2258_v7, 0.0  ;;  %v1794_v9 = vpop.f32.mrb[13].mxu0  ;;  %v1854_v16 = vpop.f32.mrb[13].mxu1 }
 0x11d   :  { %v631_v10 = vadd.f32 %v630_v8, %v629_v3  ;;  %v2262_v11 = vpop.f32.mrb[14].mxu0  ;;  %v2268_v17 = vpop.f32.mrb[14].mxu1 }
 0x11e   :  { %v632_v12 = vsel %vm618_vm4, %v2262_v11, 0.0  ;;  %v1795_v13 = vpop.f32.mrb[15].mxu0  ;;  %v1855_v18 = vpop.f32.mrb[15].mxu1 }
 0x11f   :  { %v633_v15 = vadd.f32 %v632_v12, %v631_v10 }
 0x123   :  { %v2270_v19 = vpop.f32.mrb[16].mxu0  ;;  %v2278_v26 = vpop.f32.mrb[16].mxu1 }
 0x124   :  { %v634_v20 = vsel %vm618_vm4, %v2270_v19, 0.0  ;;  %v1798_v21 = vpop.f32.mrb[17].mxu0  ;;  %v1858_v28 = vpop.f32.mrb[17].mxu1 }
 0x125   :  { %v635_v22 = vadd.f32 %v634_v20, %v633_v15  ;;  %v2274_v23 = vpop.f32.mrb[18].mxu0  ;;  %v2280_v29 = vpop.f32.mrb[18].mxu1 }
 0x126   :  { %v636_v24 = vsel %vm618_vm4, %v2274_v23, 0.0  ;;  %v1799_v25 = vpop.f32.mrb[19].mxu0  ;;  %v1859_v30 = vpop.f32.mrb[19].mxu1 }
 0x127   :  { %v637_v27 = vadd.f32 %v636_v24, %v635_v22 }
 0x12b   :  { %v2282_v31 = vpop.f32.mrb[20].mxu0  ;;  %v2290_v40 = vpop.f32.mrb[20].mxu1 }
 0x12c   :  { %v638_v32 = vsel %vm618_vm4, %v2282_v31, 0.0  ;;  %v1802_v33 = vpop.f32.mrb[21].mxu0  ;;  %v1862_v43 = vpop.f32.mrb[21].mxu1 }
 0x12d   :  { %v639_v34 = vadd.f32 %v638_v32, %v637_v27  ;;  %v2286_v35 = vpop.f32.mrb[22].mxu0  ;;  %v2292_v44 = vpop.f32.mrb[22].mxu1 }
 0x12e   :  { %v640_v37 = vsel %vm618_vm4, %v2286_v35, 0.0  ;;  %v1803_v39 = vpop.f32.mrb[23].mxu0  ;;  %v1863_v46 = vpop.f32.mrb[23].mxu1 }
 0x12f   :  { %v641_v41 = vadd.f32 %v640_v37, %v639_v34 }
 0x133   :  { %v2294_v48 = vpop.f32.mrb[24].mxu0  ;;  %v2302_v58 = vpop.f32.mrb[24].mxu1 }
 0x134   :  { %v642_v49 = vsel %vm618_vm4, %v2294_v48, 0.0  ;;  %v1806_v50 = vpop.f32.mrb[25].mxu0  ;;  %v1866_v61 = vpop.f32.mrb[25].mxu1 }
 0x135   :  { %v643_v52 = vadd.f32 %v642_v49, %v641_v41  ;;  %v2298_v53 = vpop.f32.mrb[26].mxu0  ;;  %v2304_v62 = vpop.f32.mrb[26].mxu1 }
 0x136   :  { %v644_v55 = vsel %vm618_vm4, %v2298_v53, 0.0  ;;  %v1807_v56 = vpop.f32.mrb[27].mxu0  ;;  %v1867_v0 = vpop.f32.mrb[27].mxu1 }
 0x137   :  { %v645_v60 = vadd.f32 %v644_v55, %v643_v52 }
 0x13b   :  { %v2306_v1 = vpop.f32.mrb[28].mxu0  ;;  %v2314_v12 = vpop.f32.mrb[28].mxu1 }
 0x13c   :  { %v646_v3 = vsel %vm618_vm4, %v2306_v1, 0.0  ;;  %v1810_v4 = vpop.f32.mrb[29].mxu0  ;;  %v1870_v15 = vpop.f32.mrb[29].mxu1 }
 0x13d   :  { %v647_v6 = vadd.f32 %v646_v3, %v645_v60  ;;  %v2310_v8 = vpop.f32.mrb[30].mxu0  ;;  %v2316_v16 = vpop.f32.mrb[30].mxu1 }
 0x13e   :  { %v648_v9 = vsel %vm618_vm4, %v2310_v8, 0.0  ;;  %v1811_v10 = vpop.f32.mrb[31].mxu0  ;;  %v1871_v18 = vpop.f32.mrb[31].mxu1 }
 0x13f   :  { %v649_v13 = vadd.f32 %v648_v9, %v647_v6 }
 0x143   :  { %v2318_v20 = vpop.f32.mrb[32].mxu0  ;;  %v2326_v30 = vpop.f32.mrb[32].mxu1 }
 0x144   :  { %v650_v21 = vsel %vm618_vm4, %v2318_v20, 0.0  ;;  %v1814_v22 = vpop.f32.mrb[33].mxu0  ;;  %v1874_v33 = vpop.f32.mrb[33].mxu1 }
 0x145   :  { %v651_v24 = vadd.f32 %v650_v21, %v649_v13  ;;  %v2322_v25 = vpop.f32.mrb[34].mxu0  ;;  %v2328_v34 = vpop.f32.mrb[34].mxu1 }
 0x146   :  { %v652_v27 = vsel %vm618_vm4, %v2322_v25, 0.0  ;;  %v1815_v28 = vpop.f32.mrb[35].mxu0  ;;  %v1875_v37 = vpop.f32.mrb[35].mxu1 }
 0x147   :  { %v653_v32 = vadd.f32 %v652_v27, %v651_v24 }
 0x14b   :  { %v2330_v39 = vpop.f32.mrb[36].mxu0  ;;  %v2338_v55 = vpop.f32.mrb[36].mxu1 }
 0x14c   :  { %v654_v41 = vsel %vm618_vm4, %v2330_v39, 0.0  ;;  %v1818_v43 = vpop.f32.mrb[37].mxu0  ;;  %v1878_v60 = vpop.f32.mrb[37].mxu1 }
 0x14d   :  { %v655_v46 = vadd.f32 %v654_v41, %v653_v32  ;;  %v2334_v49 = vpop.f32.mrb[38].mxu0  ;;  %v2340_v61 = vpop.f32.mrb[38].mxu1 }
 0x14e   :  { %v656_v50 = vsel %vm618_vm4, %v2334_v49, 0.0  ;;  %v1819_v52 = vpop.f32.mrb[39].mxu0  ;;  %v1879_v0 = vpop.f32.mrb[39].mxu1 }
 0x14f   :  { %v657_v56 = vadd.f32 %v656_v50, %v655_v46 }
 0x153   :  { %v2342_v3 = vpop.f32.mrb[40].mxu0  ;;  %v2350_v18 = vpop.f32.mrb[40].mxu1 }
 0x154   :  { %v658_v4 = vsel %vm618_vm4, %v2342_v3, 0.0  ;;  %v1822_v6 = vpop.f32.mrb[41].mxu0  ;;  %v1882_v22 = vpop.f32.mrb[41].mxu1 }
 0x155   :  { %v659_v9 = vadd.f32 %v658_v4, %v657_v56  ;;  %v2346_v10 = vpop.f32.mrb[42].mxu0  ;;  %v2352_v24 = vpop.f32.mrb[42].mxu1 }
 0x156   :  { %v660_v13 = vsel %vm618_vm4, %v2346_v10, 0.0  ;;  %v1823_v15 = vpop.f32.mrb[43].mxu0  ;;  %3946 = vst [vmem:[#allocation8_spill] sm:$0xff] %v2352_v24  ;;  %v1883_v27 = vpop.f32.mrb[43].mxu1 }
 0x157   :  { %v661_v21 = vadd.f32 %v660_v13, %v659_v9 }
 0x15b   :  { %v2354_v28 = vpop.f32.mrb[44].mxu0  ;;  %v2362_v50 = vpop.f32.mrb[44].mxu1 }
 0x15c   :  { %v662_v32 = vsel %vm618_vm4, %v2354_v28, 0.0  ;;  %v1826_v33 = vpop.f32.mrb[45].mxu0  ;;  %3948 = vst [vmem:[#allocation10_spill] sm:$0xff] %v2362_v50  ;;  %v1886_v56 = vpop.f32.mrb[45].mxu1 }
 0x15d   :  { %v663_v37 = vadd.f32 %v662_v32, %v661_v21  ;;  %v2358_v41 = vpop.f32.mrb[46].mxu0  ;;  %v2364_v60 = vpop.f32.mrb[46].mxu1 }
 0x15e   :  { %3947 = vst [vmem:[#allocation9_spill] sm:$0xff] %v2358_v41  ;;  %v664_v43 = vsel %vm618_vm4, %v2358_v41, 0.0  ;;  %v1827_v46 = vpop.f32.mrb[47].mxu0  ;;  %3949 = vst [vmem:[#allocation11_spill] sm:$0xff] %v2364_v60  ;;  %v1887_v0 = vpop.f32.mrb[47].mxu1 }
 0x15f   :  { %v665_v52 = vadd.f32 %v664_v43, %v663_v37 }
 0x163   :  { %v2366_v4 = vpop.f32.mrb[48].mxu0  ;;  %v2374_v27 = vpop.f32.mrb[48].mxu1 }
 0x164   :  { %3950 = vst [vmem:[#allocation12_spill] sm:$0xff] %v2366_v4  ;;  %v666_v6 = vsel %vm618_vm4, %v2366_v4, 0.0  ;;  %v1830_v9 = vpop.f32.mrb[49].mxu0  ;;  %v1890_v33 = vpop.f32.mrb[49].mxu1 }
 0x165   :  { %v667_v13 = vadd.f32 %v666_v6, %v665_v52  ;;  %v2370_v15 = vpop.f32.mrb[50].mxu0  ;;  %v2376_v37 = vpop.f32.mrb[50].mxu1 }
 0x166   :  { %3951 = vst [vmem:[#allocation13_spill] sm:$0xff] %v2370_v15  ;;  %v668_v21 = vsel %vm618_vm4, %v2370_v15, 0.0  ;;  %v1831_v22 = vpop.f32.mrb[51].mxu0  ;;  %v1891_v43 = vpop.f32.mrb[51].mxu1 }
 0x167   :  { %v669_v32 = vadd.f32 %v668_v21, %v667_v13 }
 0x16b   :  { %v2378_v46 = vpop.f32.mrb[52].mxu0  ;;  %v2386_v15 = vpop.f32.mrb[52].mxu1 }
 0x16c   :  { %3952 = vst [vmem:[#allocation14_spill] sm:$0xff] %v2378_v46  ;;  %v670_v56 = vsel %vm618_vm4, %v2378_v46, 0.0  ;;  %v1834_v0 = vpop.f32.mrb[53].mxu0  ;;  %3954 = vst [vmem:[#allocation16_spill] sm:$0xff] %v2386_v15  ;;  %v1894_v21 = vpop.f32.mrb[53].mxu1 }
 0x16d   :  { %v671_v52 = vadd.f32 %v670_v56, %v669_v32  ;;  %v2382_v6 = vpop.f32.mrb[54].mxu0  ;;  %v615_v33 = vpop.f32.mrb[54].mxu1 }
 0x16e   :  { %3953 = vst [vmem:[#allocation15_spill] sm:$0xff] %v2382_v6  ;;  %v672_v9 = vsel %vm618_vm4, %v2382_v6, 0.0  ;;  %v1835_v22 = vpop.f32.mrb[55].mxu0  ;;  %v1895_v4 = vpop.f32.mrb[55].mxu1  ;;  %v682_v33 = vsel %vm618_vm4, %v2242_v54, 0.0 }
 0x16f   :  { %v673_v13 = vadd.f32 %v672_v9, %v671_v52  ;;  %v678_v52 = vsel %vm618_vm4, %v2230_v42, 0.0  ;;  %v680_v4 = vsel %vm618_vm4, %v2232_v45, 0.0 }
 0x173   :  { %v2388_v43 = vpop.f32.mrb[56].mxu0 }
 0x174   :  { %v674_v41 = vsel %vm618_vm4, %v2388_v43, 0.0  ;;  %v1838_v46 = vpop.f32.mrb[57].mxu0 }
 0x175   :  { %v675_v0 = vadd.f32 %v674_v41, %v673_v13  ;;  %v2392_v32 = vpop.f32.mrb[58].mxu0  ;;  %v684_v41 = vsel %vm618_vm4, %v2244_v57, 0.0 }
 0x176   :  { %v676_v56 = vsel %vm618_vm4, %v2392_v32, 0.0  ;;  %v1839_v6 = vpop.f32.mrb[59].mxu0 }
 0x177   :  { %v677_v22 = vadd.f32 %v676_v56, %v675_v0  ;;  %v686_v6 = vsel %vm618_vm4, %v2254_v2, 0.0  ;;  %v688_v56 = vsel %vm618_vm4, %v2256_v5, 0.0 }
 0x179   :  { %v679_v9 = vadd.f32 %v678_v52, %v677_v22  ;;  %v690_v52 = vsel %vm618_vm4, %v2266_v14, 0.0 }
 0x17b   :  { %v681_v21 = vadd.f32 %v680_v4, %v679_v9  ;;  %v692_v4 = vsel %vm618_vm4, %v2268_v17, 0.0 }
 0x17d   :  { %v683_v46 = vadd.f32 %v682_v33, %v681_v21  ;;  %v694_v33 = vsel %vm618_vm4, %v2278_v26, 0.0 }
 0x17f   :  { %v685_v13 = vadd.f32 %v684_v41, %v683_v46  ;;  %v696_v41 = vsel %vm618_vm4, %v2280_v29, 0.0 }
 0x181   :  { %v687_v0 = vadd.f32 %v686_v6, %v685_v13  ;;  %v698_v6 = vsel %vm618_vm4, %v2290_v40, 0.0 }
 0x183   :  { %v689_v22 = vadd.f32 %v688_v56, %v687_v0  ;;  %v700_v56 = vsel %vm618_vm4, %v2292_v44, 0.0 }
 0x185   :  { %v691_v9 = vadd.f32 %v690_v52, %v689_v22  ;;  %v702_v52 = vsel %vm618_vm4, %v2302_v58, 0.0 }
 0x187   :  { %v693_v21 = vadd.f32 %v692_v4, %v691_v9  ;;  %v704_v4 = vsel %vm618_vm4, %v2304_v62, 0.0 }
 0x189   :  { %v695_v46 = vadd.f32 %v694_v33, %v693_v21  ;;  %v706_v33 = vsel %vm618_vm4, %v2314_v12, 0.0 }
 0x18b   :  { %v697_v13 = vadd.f32 %v696_v41, %v695_v46  ;;  %v708_v41 = vsel %vm618_vm4, %v2316_v16, 0.0 }
 0x18d   :  { %v699_v0 = vadd.f32 %v698_v6, %v697_v13  ;;  %v710_v6 = vsel %vm618_vm4, %v2326_v30, 0.0 }
 0x18f   :  { %v701_v22 = vadd.f32 %v700_v56, %v699_v0  ;;  %v712_v56 = vsel %vm618_vm4, %v2328_v34, 0.0 }
 0x191   :  { %v703_v9 = vadd.f32 %v702_v52, %v701_v22  ;;  %v714_v52 = vsel %vm618_vm4, %v2338_v55, 0.0 }
 0x193   :  { %v705_v21 = vadd.f32 %v704_v4, %v703_v9  ;;  %v716_v4 = vsel %vm618_vm4, %v2340_v61, 0.0 }
 0x195   :  { %v707_v46 = vadd.f32 %v706_v33, %v705_v21  ;;  %v718_v33 = vsel %vm618_vm4, %v2350_v18, 0.0 }
 0x197   :  { %v709_v13 = vadd.f32 %v708_v41, %v707_v46  ;;  %v720_v41 = vsel %vm618_vm4, %v2352_v24, 0.0 }
 0x199   :  { %v711_v0 = vadd.f32 %v710_v6, %v709_v13  ;;  %v722_v6 = vsel %vm618_vm4, %v2362_v50, 0.0 }
 0x19b   :  { %v713_v22 = vadd.f32 %v712_v56, %v711_v0  ;;  %v724_v56 = vsel %vm618_vm4, %v2364_v60, 0.0 }
 0x19d   :  { %v715_v9 = vadd.f32 %v714_v52, %v713_v22  ;;  %v726_v52 = vsel %vm618_vm4, %v2374_v27, 0.0 }
 0x19f   :  { %v717_v21 = vadd.f32 %v716_v4, %v715_v9  ;;  %v728_v4 = vsel %vm618_vm4, %v2376_v37, 0.0 }
 0x1a1   :  { %v719_v46 = vadd.f32 %v718_v33, %v717_v21  ;;  %v731_v21 = vsel %vm730_vm5, %v2386_v15, 0.0 }
 0x1a3   :  { %v721_v13 = vadd.f32 %v720_v41, %v719_v46 }
 0x1a5   :  { %v723_v0 = vadd.f32 %v722_v6, %v721_v13 }
 0x1a7   :  { %v725_v22 = vadd.f32 %v724_v56, %v723_v0 }
 0x1a9   :  { %v727_v9 = vadd.f32 %v726_v52, %v725_v22 }
 0x1ab   :  { %v729_v33 = vadd.f32 %v728_v4, %v727_v9 }
 0x1ad   :  { %v732_v46 = vadd.f32 %v731_v21, %v729_v33 }
 0x1af   :  { %v733_v41 = vrot.slane %v732_v46, 4 }
 0x1b1   :  { %v734_v50 = vadd.f32 %v733_v41, %v732_v46 }
 0x1b3   :  { %v735_v13 = vrot.slane %v734_v50, 2 }
 0x1b5   :  { %v736_v6 = vadd.f32 %v735_v13, %v734_v50 }
 0x1b7   :  { %v737_v24 = vrot.slane %v736_v6, 1 }
 0x1b9   :  { %v738_v60 = vadd.f32 %v737_v24, %v736_v6 }
 0x1bb   :  { %v739_v0 = vmul.f32 0.0022222223, %v738_v60 }
 0x1bd   :  { %v2451_v56 = vsub.f32 %v2222_v36, %v739_v0  ;;  %v2454_v22 = vsub.f32 %v2224_v38, %v739_v0  ;;  %v2457_v52 = vsub.f32 %v2234_v47, %v739_v0  ;;  %v2460_v15 = vsub.f32 %v2238_v51, %v739_v0 }
 0x1be   :  { %v2463_v9 = vsub.f32 %v2246_v59, %v739_v0  ;;  %v2466_v50 = vsub.f32 %v2250_v63, %v739_v0  ;;  %v2469_v24 = vsub.f32 %v2258_v7, %v739_v0  ;;  %v2472_v36 = vsub.f32 %v2262_v11, %v739_v0 }
 0x1bf   :  { %3955 = vst [vmem:[#allocation17_spill] sm:$0xff] %v2451_v56  ;;  %3956 = vst [vmem:[#allocation18_spill] sm:$0xff] %v2454_v22  ;;  %v2475_v38 = vsub.f32 %v2270_v19, %v739_v0  ;;  %v2478_v47 = vsub.f32 %v2274_v23, %v739_v0  ;;  %v2481_v51 = vsub.f32 %v2282_v31, %v739_v0 }
 0x1c0   :  { %3957 = vst [vmem:[#allocation19_spill] sm:$0xff] %v2457_v52  ;;  %3958 = vst [vmem:[#allocation20_spill] sm:$0xff] %v2460_v15  ;;  %v2484_v59 = vsub.f32 %v2286_v35, %v739_v0  ;;  %v2487_v63 = vsub.f32 %v2294_v48, %v739_v0  ;;  %v2490_v7 = vsub.f32 %v2298_v53, %v739_v0 }
 0x1c1   :  { %v2493_v11 = vsub.f32 %v2306_v1, %v739_v0  ;;  %v2496_v19 = vsub.f32 %v2310_v8, %v739_v0  ;;  %v2499_v23 = vsub.f32 %v2318_v20, %v739_v0  ;;  %v2502_v31 = vsub.f32 %v2322_v25, %v739_v0  ;;  %v3959_v20 = vld [vmem:[#allocation9_spill] sm:$0xff]  ;;  %v3960_v25 = vld [vmem:[#allocation12_spill] sm:$0xff] }
 0x1c2   :  { %v2505_v35 = vsub.f32 %v2330_v39, %v739_v0  ;;  %v2508_v48 = vsub.f32 %v2334_v49, %v739_v0  ;;  %v2511_v53 = vsub.f32 %v2342_v3, %v739_v0  ;;  %v2514_v1 = vsub.f32 %v2346_v10, %v739_v0  ;;  %v3961_v39 = vld [vmem:[#allocation13_spill] sm:$0xff]  ;;  %v3962_v49 = vld [vmem:[#allocation14_spill] sm:$0xff]  ;;  %v3963_v3 = vld [vmem:[#allocation15_spill] sm:$0xff] }
 0x1c3   :  { %v2517_v8 = vsub.f32 %v2354_v28, %v739_v0  ;;  %v2520_v60 = vsub.f32 %v3959_v20, %v739_v0  ;;  %v2523_v4 = vsub.f32 %v3960_v25, %v739_v0  ;;  %v2526_v21 = vsub.f32 %v3961_v39, %v739_v0 }
 0x1c4   :  { %v2529_v33 = vsub.f32 %v3962_v49, %v739_v0  ;;  %v2532_v46 = vsub.f32 %v3963_v3, %v739_v0  ;;  %v2535_v10 = vsub.f32 %v2388_v43, %v739_v0  ;;  %v2538_v28 = vsub.f32 %v2392_v32, %v739_v0 }
 0x1c5   :  { %v2541_v41 = vsub.f32 %v2230_v42, %v739_v0  ;;  %v2544_v13 = vsub.f32 %v2232_v45, %v739_v0  ;;  %v2547_v6 = vsub.f32 %v2242_v54, %v739_v0  ;;  %v2550_v20 = vsub.f32 %v2244_v57, %v739_v0 }
 0x1c6   :  { %v2553_v25 = vsub.f32 %v2254_v2, %v739_v0  ;;  %v2556_v43 = vsub.f32 %v2256_v5, %v739_v0  ;;  %v2559_v32 = vsub.f32 %v2266_v14, %v739_v0  ;;  %v2562_v42 = vsub.f32 %v2268_v17, %v739_v0 }
 0x1c7   :  { %v2565_v45 = vsub.f32 %v2278_v26, %v739_v0  ;;  %v2568_v54 = vsub.f32 %v2280_v29, %v739_v0  ;;  %v2571_v57 = vsub.f32 %v2290_v40, %v739_v0  ;;  %v2574_v2 = vsub.f32 %v2292_v44, %v739_v0 }
 0x1c8   :  { %v2577_v5 = vsub.f32 %v2302_v58, %v739_v0  ;;  %v2580_v14 = vsub.f32 %v2304_v62, %v739_v0  ;;  %v2583_v17 = vsub.f32 %v2314_v12, %v739_v0  ;;  %v2586_v26 = vsub.f32 %v2316_v16, %v739_v0  ;;  %v3975_v12 = vld [vmem:[#allocation8_spill] sm:$0xff]  ;;  %v3976_v16 = vld [vmem:[#allocation10_spill] sm:$0xff] }
 0x1c9   :  { %3964 = vst [vmem:[#allocation9_spill] sm:$0xff] %v2565_v45  ;;  %3965 = vst [vmem:[#allocation12_spill] sm:$0xff] %v2568_v54  ;;  %v2589_v29 = vsub.f32 %v2326_v30, %v739_v0  ;;  %v2592_v40 = vsub.f32 %v2328_v34, %v739_v0  ;;  %v2595_v44 = vsub.f32 %v2338_v55, %v739_v0  ;;  %v3977_v30 = vld [vmem:[#allocation11_spill] sm:$0xff] }
 0x1ca   :  { %3966 = vst [vmem:[#allocation13_spill] sm:$0xff] %v2571_v57  ;;  %3967 = vst [vmem:[#allocation14_spill] sm:$0xff] %v2574_v2  ;;  %v2598_v58 = vsub.f32 %v2340_v61, %v739_v0  ;;  %v2601_v62 = vsub.f32 %v2350_v18, %v739_v0  ;;  %v2604_v39 = vsub.f32 %v3975_v12, %v739_v0  ;;  %v3980_v61 = vld [vmem:[#allocation16_spill] sm:$0xff] }
 0x1cb   :  { %3968 = vst [vmem:[#allocation15_spill] sm:$0xff] %v2577_v5  ;;  %3969 = vst [vmem:[#allocation21_spill] sm:$0xff] %v2580_v14  ;;  %v2607_v49 = vsub.f32 %v3976_v16, %v739_v0  ;;  %v2610_v3 = vsub.f32 %v3977_v30, %v739_v0  ;;  %v2613_v34 = vsub.f32 %v2374_v27, %v739_v0 }
 0x1cc   :  { %3970 = vst [vmem:[#allocation22_spill] sm:$0xff] %v2583_v17  ;;  %3971 = vst [vmem:[#allocation23_spill] sm:$0xff] %v2586_v26  ;;  %v2616_v55 = vsub.f32 %v2376_v37, %v739_v0  ;;  %v797_v18 = vmul.f32 %v2451_v56, %v2451_v56  ;;  %v798_v12 = vmul.f32 %v2454_v22, %v2454_v22 }
 0x1cd   :  { %3972 = vst [vmem:[#allocation24_spill] sm:$0xff] %v2589_v29  ;;  %3973 = vst [vmem:[#allocation25_spill] sm:$0xff] %v2592_v40  ;;  %v799_v16 = vmul.f32 %v2457_v52, %v2457_v52  ;;  %v800_v30 = vmul.f32 %v2460_v15, %v2460_v15  ;;  %v802_v22 = vmul.f32 %v2466_v50, %v2466_v50 }
 0x1ce   :  { %3974 = vst [vmem:[#allocation26_spill] sm:$0xff] %v2598_v58  ;;  %3978 = vst [vmem:[#allocation8_spill] sm:$0xff] %v2613_v34  ;;  %v2619_v58 = vsub.f32 %v3980_v61, %v739_v0  ;;  %v854_v27 = vsel %vm618_vm4, %v797_v18, 0.0  ;;  %v855_v37 = vsel %vm618_vm4, %v798_v12, 0.0  ;;  %v801_v0 = vmul.f32 %v2463_v9, %v2463_v9 }
 0x1cf   :  { %3979 = vst [vmem:[#allocation10_spill] sm:$0xff] %v2616_v55  ;;  %v856_v55 = vadd.f32 %v855_v37, %v854_v27  ;;  %v857_v61 = vsel %vm618_vm4, %v799_v16, 0.0  ;;  %v803_v15 = vmul.f32 %v2469_v24, %v2469_v24  ;;  %v804_v12 = vmul.f32 %v2472_v36, %v2472_v36 }
 0x1d0   :  { %3981 = vst [vmem:[#allocation11_spill] sm:$0xff] %v2619_v58  ;;  %v859_v58 = vsel %vm618_vm4, %v800_v30, 0.0  ;;  %v861_v18 = vsel %vm618_vm4, %v801_v0, 0.0  ;;  %v863_v27 = vsel %vm618_vm4, %v802_v22, 0.0  ;;  %v808_v22 = vmul.f32 %v2484_v59, %v2484_v59 }
 0x1d1   :  { %v858_v56 = vadd.f32 %v857_v61, %v856_v55  ;;  %v805_v55 = vmul.f32 %v2475_v38, %v2475_v38  ;;  %v865_v16 = vsel %vm618_vm4, %v803_v15, 0.0  ;;  %v809_v15 = vmul.f32 %v2487_v63, %v2487_v63 }
 0x1d3   :  { %v860_v52 = vadd.f32 %v859_v58, %v858_v56  ;;  %v806_v56 = vmul.f32 %v2478_v47, %v2478_v47  ;;  %v867_v58 = vsel %vm618_vm4, %v804_v12, 0.0  ;;  %v869_v0 = vsel %vm618_vm4, %v805_v55, 0.0 }
 0x1d4   :  { %v810_v12 = vmul.f32 %v2490_v7, %v2490_v7  ;;  %v811_v55 = vmul.f32 %v2493_v11, %v2493_v11 }
 0x1d5   :  { %v862_v34 = vadd.f32 %v861_v18, %v860_v52  ;;  %v807_v52 = vmul.f32 %v2481_v51, %v2481_v51 }
 0x1d7   :  { %v864_v37 = vadd.f32 %v863_v27, %v862_v34  ;;  %v871_v34 = vsel %vm618_vm4, %v806_v56, 0.0  ;;  %v812_v56 = vmul.f32 %v2496_v19, %v2496_v19 }
 0x1d9   :  { %v866_v61 = vadd.f32 %v865_v16, %v864_v37  ;;  %v873_v37 = vsel %vm618_vm4, %v807_v52, 0.0  ;;  %v813_v52 = vmul.f32 %v2499_v23, %v2499_v23 }
 0x1db   :  { %v868_v30 = vadd.f32 %v867_v58, %v866_v61  ;;  %v875_v61 = vsel %vm618_vm4, %v808_v22, 0.0  ;;  %v814_v22 = vmul.f32 %v2502_v31, %v2502_v31 }
 0x1dd   :  { %v870_v18 = vadd.f32 %v869_v0, %v868_v30  ;;  %v877_v30 = vsel %vm618_vm4, %v809_v15, 0.0  ;;  %v815_v15 = vmul.f32 %v2505_v35, %v2505_v35 }
 0x1df   :  { %v872_v27 = vadd.f32 %v871_v34, %v870_v18  ;;  %v879_v18 = vsel %vm618_vm4, %v810_v12, 0.0  ;;  %v816_v12 = vmul.f32 %v2508_v48, %v2508_v48 }
 0x1e1   :  { %v874_v16 = vadd.f32 %v873_v37, %v872_v27  ;;  %v881_v27 = vsel %vm618_vm4, %v811_v55, 0.0  ;;  %v817_v55 = vmul.f32 %v2511_v53, %v2511_v53 }
 0x1e3   :  { %v876_v58 = vadd.f32 %v875_v61, %v874_v16  ;;  %v883_v16 = vsel %vm618_vm4, %v812_v56, 0.0  ;;  %v818_v56 = vmul.f32 %v2514_v1, %v2514_v1 }
 0x1e5   :  { %v878_v0 = vadd.f32 %v877_v30, %v876_v58  ;;  %v885_v58 = vsel %vm618_vm4, %v813_v52, 0.0  ;;  %v819_v52 = vmul.f32 %v2517_v8, %v2517_v8 }
 0x1e7   :  { %v880_v34 = vadd.f32 %v879_v18, %v878_v0  ;;  %v887_v0 = vsel %vm618_vm4, %v814_v22, 0.0  ;;  %v820_v22 = vmul.f32 %v2520_v60, %v2520_v60 }
 0x1e9   :  { %v882_v37 = vadd.f32 %v881_v27, %v880_v34  ;;  %v889_v34 = vsel %vm618_vm4, %v815_v15, 0.0  ;;  %v821_v15 = vmul.f32 %v2523_v4, %v2523_v4 }
 0x1eb   :  { %v884_v61 = vadd.f32 %v883_v16, %v882_v37  ;;  %v891_v37 = vsel %vm618_vm4, %v816_v12, 0.0  ;;  %v822_v12 = vmul.f32 %v2526_v21, %v2526_v21 }
 0x1ed   :  { %v886_v30 = vadd.f32 %v885_v58, %v884_v61  ;;  %v893_v61 = vsel %vm618_vm4, %v817_v55, 0.0  ;;  %v823_v55 = vmul.f32 %v2529_v33, %v2529_v33 }
 0x1ef   :  { %v888_v18 = vadd.f32 %v887_v0, %v886_v30  ;;  %v895_v30 = vsel %vm618_vm4, %v818_v56, 0.0  ;;  %v824_v56 = vmul.f32 %v2532_v46, %v2532_v46 }
 0x1f1   :  { %v890_v27 = vadd.f32 %v889_v34, %v888_v18  ;;  %v897_v18 = vsel %vm618_vm4, %v819_v52, 0.0  ;;  %v825_v52 = vmul.f32 %v2535_v10, %v2535_v10 }
 0x1f3   :  { %v892_v16 = vadd.f32 %v891_v37, %v890_v27  ;;  %v899_v27 = vsel %vm618_vm4, %v820_v22, 0.0  ;;  %v826_v22 = vmul.f32 %v2538_v28, %v2538_v28 }
 0x1f5   :  { %v894_v58 = vadd.f32 %v893_v61, %v892_v16  ;;  %v901_v16 = vsel %vm618_vm4, %v821_v15, 0.0  ;;  %v827_v15 = vmul.f32 %v2541_v41, %v2541_v41 }
 0x1f7   :  { %v896_v0 = vadd.f32 %v895_v30, %v894_v58  ;;  %v903_v58 = vsel %vm618_vm4, %v822_v12, 0.0  ;;  %v828_v12 = vmul.f32 %v2544_v13, %v2544_v13 }
 0x1f9   :  { %v898_v34 = vadd.f32 %v897_v18, %v896_v0  ;;  %v905_v0 = vsel %vm618_vm4, %v823_v55, 0.0  ;;  %v829_v55 = vmul.f32 %v2547_v6, %v2547_v6 }
 0x1fb   :  { %v900_v37 = vadd.f32 %v899_v27, %v898_v34  ;;  %v907_v34 = vsel %vm618_vm4, %v824_v56, 0.0  ;;  %v830_v56 = vmul.f32 %v2550_v20, %v2550_v20 }
 0x1fd   :  { %v902_v61 = vadd.f32 %v901_v16, %v900_v37  ;;  %v909_v37 = vsel %vm618_vm4, %v825_v52, 0.0  ;;  %v831_v52 = vmul.f32 %v2553_v25, %v2553_v25 }
 0x1ff   :  { %v904_v30 = vadd.f32 %v903_v58, %v902_v61  ;;  %v911_v61 = vsel %vm618_vm4, %v826_v22, 0.0  ;;  %v832_v22 = vmul.f32 %v2556_v43, %v2556_v43 }
 0x201   :  { %v906_v18 = vadd.f32 %v905_v0, %v904_v30  ;;  %v913_v30 = vsel %vm618_vm4, %v827_v15, 0.0  ;;  %v833_v15 = vmul.f32 %v2559_v32, %v2559_v32 }
 0x203   :  { %v908_v27 = vadd.f32 %v907_v34, %v906_v18  ;;  %v915_v18 = vsel %vm618_vm4, %v828_v12, 0.0  ;;  %v834_v12 = vmul.f32 %v2562_v42, %v2562_v42 }
 0x205   :  { %v910_v16 = vadd.f32 %v909_v37, %v908_v27  ;;  %v917_v27 = vsel %vm618_vm4, %v829_v55, 0.0  ;;  %v835_v55 = vmul.f32 %v2565_v45, %v2565_v45 }
 0x207   :  { %v912_v58 = vadd.f32 %v911_v61, %v910_v16  ;;  %v919_v16 = vsel %vm618_vm4, %v830_v56, 0.0  ;;  %v836_v56 = vmul.f32 %v2568_v54, %v2568_v54 }
 0x209   :  { %v914_v0 = vadd.f32 %v913_v30, %v912_v58  ;;  %v921_v58 = vsel %vm618_vm4, %v831_v52, 0.0  ;;  %v837_v52 = vmul.f32 %v2571_v57, %v2571_v57 }
 0x20b   :  { %v916_v34 = vadd.f32 %v915_v18, %v914_v0  ;;  %v923_v0 = vsel %vm618_vm4, %v832_v22, 0.0  ;;  %v838_v22 = vmul.f32 %v2574_v2, %v2574_v2 }
 0x20d   :  { %v918_v37 = vadd.f32 %v917_v27, %v916_v34  ;;  %v925_v34 = vsel %vm618_vm4, %v833_v15, 0.0  ;;  %v839_v15 = vmul.f32 %v2577_v5, %v2577_v5 }
 0x20f   :  { %v920_v61 = vadd.f32 %v919_v16, %v918_v37  ;;  %v927_v37 = vsel %vm618_vm4, %v834_v12, 0.0  ;;  %v840_v12 = vmul.f32 %v2580_v14, %v2580_v14 }
 0x211   :  { %v922_v30 = vadd.f32 %v921_v58, %v920_v61  ;;  %v929_v61 = vsel %vm618_vm4, %v835_v55, 0.0  ;;  %v841_v55 = vmul.f32 %v2583_v17, %v2583_v17 }
 0x213   :  { %v924_v18 = vadd.f32 %v923_v0, %v922_v30  ;;  %v931_v30 = vsel %vm618_vm4, %v836_v56, 0.0  ;;  %v842_v56 = vmul.f32 %v2586_v26, %v2586_v26 }
 0x215   :  { %v926_v27 = vadd.f32 %v925_v34, %v924_v18  ;;  %v933_v18 = vsel %vm618_vm4, %v837_v52, 0.0  ;;  %v843_v52 = vmul.f32 %v2589_v29, %v2589_v29 }
 0x217   :  { %v928_v16 = vadd.f32 %v927_v37, %v926_v27  ;;  %v935_v27 = vsel %vm618_vm4, %v838_v22, 0.0  ;;  %v844_v22 = vmul.f32 %v2592_v40, %v2592_v40 }
 0x219   :  { %v930_v58 = vadd.f32 %v929_v61, %v928_v16  ;;  %v937_v16 = vsel %vm618_vm4, %v839_v15, 0.0  ;;  %v845_v15 = vmul.f32 %v2595_v44, %v2595_v44 }
 0x21b   :  { %v932_v0 = vadd.f32 %v931_v30, %v930_v58  ;;  %v939_v58 = vsel %vm618_vm4, %v840_v12, 0.0  ;;  %v3982_v12 = vld [vmem:[#allocation26_spill] sm:$0xff] }
 0x21d   :  { %v934_v34 = vadd.f32 %v933_v18, %v932_v0  ;;  %v941_v0 = vsel %vm618_vm4, %v841_v55, 0.0  ;;  %v847_v55 = vmul.f32 %v2601_v62, %v2601_v62 }
 0x21f   :  { %v936_v37 = vadd.f32 %v935_v27, %v934_v34  ;;  %v943_v34 = vsel %vm618_vm4, %v842_v56, 0.0  ;;  %v848_v56 = vmul.f32 %v2604_v39, %v2604_v39 }
 0x221   :  { %v938_v61 = vadd.f32 %v937_v16, %v936_v37  ;;  %v945_v37 = vsel %vm618_vm4, %v843_v52, 0.0  ;;  %v849_v52 = vmul.f32 %v2607_v49, %v2607_v49 }
 0x223   :  { %v940_v30 = vadd.f32 %v939_v58, %v938_v61  ;;  %v846_v61 = vmul.f32 %v3982_v12, %v3982_v12  ;;  %v947_v58 = vsel %vm618_vm4, %v844_v22, 0.0  ;;  %v850_v22 = vmul.f32 %v2610_v3, %v2610_v3 }
 0x225   :  { %v942_v18 = vadd.f32 %v941_v0, %v940_v30  ;;  %v949_v30 = vsel %vm618_vm4, %v845_v15, 0.0  ;;  %v3983_v15 = vld [vmem:[#allocation8_spill] sm:$0xff] }
 0x227   :  { %v944_v27 = vadd.f32 %v943_v34, %v942_v18  ;;  %v951_v18 = vsel %vm618_vm4, %v846_v61, 0.0  ;;  %v3984_v61 = vld [vmem:[#allocation10_spill] sm:$0xff] }
 0x229   :  { %v946_v16 = vadd.f32 %v945_v37, %v944_v27  ;;  %v953_v27 = vsel %vm618_vm4, %v847_v55, 0.0  ;;  %v3985_v55 = vld [vmem:[#allocation11_spill] sm:$0xff] }
 0x22b   :  { %v948_v29 = vadd.f32 %v947_v58, %v946_v16  ;;  %v955_v16 = vsel %vm618_vm4, %v848_v56, 0.0 }
 0x22d   :  { %v950_v0 = vadd.f32 %v949_v30, %v948_v29  ;;  %v851_v29 = vmul.f32 %v3983_v15, %v3983_v15  ;;  %v957_v30 = vsel %vm618_vm4, %v849_v52, 0.0 }
 0x22f   :  { %v952_v34 = vadd.f32 %v951_v18, %v950_v0  ;;  %v852_v0 = vmul.f32 %v3984_v61, %v3984_v61  ;;  %v959_v18 = vsel %vm618_vm4, %v850_v22, 0.0 }
 0x231   :  { %v954_v37 = vadd.f32 %v953_v27, %v952_v34  ;;  %v853_v34 = vmul.f32 %v3985_v55, %v3985_v55  ;;  %v961_v27 = vsel %vm618_vm4, %v851_v29, 0.0  ;;  %v963_v56 = vsel %vm618_vm4, %v852_v0, 0.0  ;;  %v974_v29 = vld [vmem:[#allocation4] sm:$0x1] }
 0x233   :  { %v956_v58 = vadd.f32 %v955_v16, %v954_v37  ;;  %v965_v16 = vsel %vm730_vm5, %v853_v34, 0.0 }
 0x235   :  { %v958_v40 = vadd.f32 %v957_v30, %v956_v58 }
 0x237   :  { %v960_v26 = vadd.f32 %v959_v18, %v958_v40  ;;  %v979_v18 = vlaneseq }
 0x239   :  { %v962_v17 = vadd.f32 %v961_v27, %v960_v26  ;;  %v980_v54 = vshrl.u32 %v979_v18, 7 }
 0x23b   :  { %v964_v37 = vadd.f32 %v963_v56, %v962_v17  ;;  %v981_v27 = vsub.s32 0, %v980_v54  ;;  %v3991_v56 = vld [vmem:[#allocation18_spill] sm:$0xff] }
 0x23d   :  { %v966_v14 = vadd.f32 %v965_v16, %v964_v37  ;;  %v3992_v37 = vld [vmem:[#allocation19_spill] sm:$0xff] }
 0x23f   :  { %v967_v52 = vrot.slane %v966_v14, 4 }
 0x241   :  { %v968_v58 = vadd.f32 %v967_v52, %v966_v14 }
 0x243   :  { %v969_v30 = vrot.slane %v968_v58, 2 }
 0x245   :  { %v970_v5 = vadd.f32 %v969_v30, %v968_v58 }
 0x247   :  { %v971_v2 = vrot.slane %v970_v5, 1 }
 0x249   :  { %v972_v57 = vadd.f32 %v971_v2, %v970_v5 }
 0x24b   :  { %v973_v22 = vmul.f32 0.0022222223, %v972_v57 }
 0x24d   :  { %v975_v40 = vadd.f32 1e-05, %v973_v22 }
 0x24f   :  { %1938 = vrsqrt.f32 %v975_v40 }
 0x259   :  { %v1939_v45 = vpop.eup %1938 }
 0x25a   :  { %v977_v26 = vmul.f32 %v1939_v45, %v974_v29 }
 0x25c   :  { %v982_v0 = vrot.slane %v977_v26, %v981_v27  ;;  %v3995_v26 = vld [vmem:[#allocation9_spill] sm:$0xff] }
 0x25e   :  { %v2793_v17 = vmul.f32 %v982_v0, %v2595_v44  ;;  %v2796_v34 = vmul.f32 %v982_v0, %v3982_v12  ;;  %v2799_v14 = vmul.f32 %v982_v0, %v2601_v62  ;;  %v2802_v57 = vmul.f32 %v982_v0, %v2604_v39  ;;  %v3990_v44 = vld [vmem:[#allocation17_spill] sm:$0xff] }
 0x25f   :  { %v2805_v2 = vmul.f32 %v982_v0, %v2607_v49  ;;  %v2808_v5 = vmul.f32 %v982_v0, %v2610_v3  ;;  %v2811_v45 = vmul.f32 %v982_v0, %v3983_v15  ;;  %v2814_v54 = vmul.f32 %v982_v0, %v3984_v61  ;;  %v3994_v49 = vld [vmem:[#allocation20_spill] sm:$0xff] }
 0x260   :  { %v984_v12 = vmul.f32 %v982_v0, %v3990_v44  ;;  %v985_v62 = vmul.f32 %v982_v0, %v3991_v56  ;;  %v986_v16 = vmul.f32 %v982_v0, %v3992_v37  ;;  %v2820_v39 = vmul.f32 %v982_v0, %v3985_v55 }
 0x261   :  { %3986 = vst [vmem:[#allocation16_spill] sm:$0xff] %v2805_v2  ;;  %3987 = vst [vmem:[#allocation26_spill] sm:$0xff] %v2808_v5  ;;  %v987_v52 = vmul.f32 %v982_v0, %v3994_v49  ;;  %v988_v3 = vmul.f32 %v982_v0, %v2463_v9  ;;  %v989_v58 = vmul.f32 %v982_v0, %v2466_v50 }
 0x262   :  { %3988 = vst [vmem:[#allocation8_spill] sm:$0xff] %v2811_v45  ;;  %3989 = vst [vmem:[#allocation10_spill] sm:$0xff] %v2814_v54  ;;  %v990_v15 = vmul.f32 %v982_v0, %v2469_v24  ;;  %v991_v61 = vmul.f32 %v982_v0, %v2472_v36  ;;  %v992_v30 = vmul.f32 %v982_v0, %v2475_v38  ;;  %v4004_v45 = vld [vmem:[#allocation25_spill] sm:$0xff] }
 0x263   :  { %3993 = vst [vmem:[#allocation11_spill] sm:$0xff] %v2820_v39  ;;  %v993_v22 = vmul.f32 %v982_v0, %v2478_v47  ;;  %v994_v40 = vmul.f32 %v982_v0, %v2481_v51  ;;  %v995_v18 = vmul.f32 %v982_v0, %v2484_v59  ;;  %v996_v55 = vmul.f32 %v982_v0, %v2487_v63 }
 0x264   :  { %v997_v29 = vmul.f32 %v982_v0, %v2490_v7  ;;  %v998_v9 = vmul.f32 %v982_v0, %v2493_v11  ;;  %v999_v50 = vmul.f32 %v982_v0, %v2496_v19  ;;  %v1000_v24 = vmul.f32 %v982_v0, %v2499_v23 }
 0x265   :  { %v1001_v36 = vmul.f32 %v982_v0, %v2502_v31  ;;  %v1002_v38 = vmul.f32 %v982_v0, %v2505_v35  ;;  %v1003_v47 = vmul.f32 %v982_v0, %v2508_v48  ;;  %v1004_v51 = vmul.f32 %v982_v0, %v2511_v53 }
 0x266   :  { %v1005_v59 = vmul.f32 %v982_v0, %v2514_v1  ;;  %v1006_v63 = vmul.f32 %v982_v0, %v2517_v8  ;;  %v1007_v7 = vmul.f32 %v982_v0, %v2520_v60  ;;  %v1008_v11 = vmul.f32 %v982_v0, %v2523_v4 }
 0x267   :  { %v1009_v19 = vmul.f32 %v982_v0, %v2526_v21  ;;  %v1010_v23 = vmul.f32 %v982_v0, %v2529_v33  ;;  %v1011_v31 = vmul.f32 %v982_v0, %v2532_v46  ;;  %v1012_v35 = vmul.f32 %v982_v0, %v2535_v10 }
 0x268   :  { %v1013_v48 = vmul.f32 %v982_v0, %v2538_v28  ;;  %v1014_v53 = vmul.f32 %v982_v0, %v2541_v41  ;;  %v1015_v1 = vmul.f32 %v982_v0, %v2544_v13  ;;  %v1016_v8 = vmul.f32 %v982_v0, %v2547_v6  ;;  %v2861_v28 = vld [vmem:[%s3883_s3] ss:$0 sm:$0xff]  ;;  %v3996_v41 = vld [vmem:[#allocation12_spill] sm:$0xff] }
 0x269   :  { %v1017_v60 = vmul.f32 %v982_v0, %v2550_v20  ;;  %v1018_v4 = vmul.f32 %v982_v0, %v2553_v25  ;;  %v1019_v21 = vmul.f32 %v982_v0, %v2556_v43  ;;  %v1020_v33 = vmul.f32 %v982_v0, %v2559_v32  ;;  %v3997_v6 = vld [vmem:[#allocation13_spill] sm:$0xff]  ;;  %v3998_v20 = vld [vmem:[#allocation14_spill] sm:$0xff]  ;;  %v3999_v25 = vld [vmem:[#allocation15_spill] sm:$0xff] }
 0x26a   :  { %v1021_v46 = vmul.f32 %v982_v0, %v2562_v42  ;;  %v1022_v10 = vmul.f32 %v982_v0, %v3995_v26  ;;  %v1023_v13 = vmul.f32 %v982_v0, %v3996_v41  ;;  %v1024_v27 = vmul.f32 %v982_v0, %v3997_v6  ;;  %v4000_v43 = vld [vmem:[#allocation21_spill] sm:$0xff]  ;;  %v4001_v32 = vld [vmem:[#allocation22_spill] sm:$0xff]  ;;  %v4002_v42 = vld [vmem:[#allocation23_spill] sm:$0xff] }
 0x26b   :  { %v1025_v44 = vmul.f32 %v982_v0, %v3998_v20  ;;  %v1026_v56 = vmul.f32 %v982_v0, %v3999_v25  ;;  %v1027_v37 = vmul.f32 %v982_v0, %v4000_v43  ;;  %v1028_v49 = vmul.f32 %v982_v0, %v4001_v32  ;;  %v4003_v26 = vld [vmem:[#allocation24_spill] sm:$0xff] }
 0x26c   :  { %v1029_v39 = vmul.f32 %v982_v0, %v4002_v42  ;;  %v1030_v54 = vmul.f32 %v982_v0, %v4003_v26  ;;  %v1031_v5 = vmul.f32 %v982_v0, %v4004_v45  ;;  %v2873_v2 = vadd.f32 %v2861_v28, %v984_v12  ;;  %v4023_v32 = vld [vmem:[#allocation8_spill] sm:$0xff]  ;;  %v4027_v42 = vld [vmem:[#allocation11_spill] sm:$0xff] }
 0x26d   :  { %v2876_v41 = vadd.f32 %v2861_v28, %v985_v62  ;;  %v2879_v6 = vadd.f32 %v2861_v28, %v986_v16  ;;  %v2882_v20 = vadd.f32 %v2861_v28, %v987_v52  ;;  %v2885_v25 = vadd.f32 %v2861_v28, %v988_v3 }
 0x26e   :  { %v2888_v43 = vadd.f32 %v2861_v28, %v989_v58  ;;  %v2891_v0 = vadd.f32 %v2861_v28, %v990_v15  ;;  %v2894_v45 = vadd.f32 %v2861_v28, %v991_v61  ;;  %v2897_v12 = vadd.f32 %v2861_v28, %v992_v30 }
 0x26f   :  { %v2900_v62 = vadd.f32 %v2861_v28, %v993_v22  ;;  %v2903_v16 = vadd.f32 %v2861_v28, %v994_v40  ;;  %v2906_v52 = vadd.f32 %v2861_v28, %v995_v18  ;;  %v2909_v3 = vadd.f32 %v2861_v28, %v996_v55 }
 0x270   :  { %v2912_v58 = vadd.f32 %v2861_v28, %v997_v29  ;;  %v2915_v15 = vadd.f32 %v2861_v28, %v998_v9  ;;  %v2918_v61 = vadd.f32 %v2861_v28, %v999_v50  ;;  %v2921_v30 = vadd.f32 %v2861_v28, %v1000_v24 }
 0x271   :  { %v2924_v22 = vadd.f32 %v2861_v28, %v1001_v36  ;;  %v2927_v40 = vadd.f32 %v2861_v28, %v1002_v38  ;;  %v2930_v18 = vadd.f32 %v2861_v28, %v1003_v47  ;;  %v2933_v55 = vadd.f32 %v2861_v28, %v1004_v51 }
 0x272   :  { %v2936_v29 = vadd.f32 %v2861_v28, %v1005_v59  ;;  %v2939_v9 = vadd.f32 %v2861_v28, %v1006_v63  ;;  %v2942_v50 = vadd.f32 %v2861_v28, %v1007_v7  ;;  %v2945_v24 = vadd.f32 %v2861_v28, %v1008_v11 }
 0x273   :  { %v2948_v36 = vadd.f32 %v2861_v28, %v1009_v19  ;;  %v2951_v38 = vadd.f32 %v2861_v28, %v1010_v23  ;;  %v2954_v47 = vadd.f32 %v2861_v28, %v1011_v31  ;;  %v2957_v51 = vadd.f32 %v2861_v28, %v1012_v35 }
 0x274   :  { %v2960_v59 = vadd.f32 %v2861_v28, %v1013_v48  ;;  %v2963_v63 = vadd.f32 %v2861_v28, %v1014_v53  ;;  %v2966_v7 = vadd.f32 %v2861_v28, %v1015_v1  ;;  %v2969_v11 = vadd.f32 %v2861_v28, %v1016_v8 }
 0x275   :  { %v2972_v19 = vadd.f32 %v2861_v28, %v1017_v60  ;;  %v2975_v23 = vadd.f32 %v2861_v28, %v1018_v4  ;;  %v2978_v31 = vadd.f32 %v2861_v28, %v1019_v21  ;;  %v2981_v35 = vadd.f32 %v2861_v28, %v1020_v33 }
 0x276   :  { %v2984_v48 = vadd.f32 %v2861_v28, %v1021_v46  ;;  %v2987_v53 = vadd.f32 %v2861_v28, %v1022_v10  ;;  %v2990_v1 = vadd.f32 %v2861_v28, %v1023_v13  ;;  %v2993_v8 = vadd.f32 %v2861_v28, %v1024_v27 }
 0x277   :  { %v2996_v60 = vadd.f32 %v2861_v28, %v1025_v44  ;;  %v2999_v4 = vadd.f32 %v2861_v28, %v1026_v56  ;;  %v3002_v21 = vadd.f32 %v2861_v28, %v1027_v37  ;;  %v3005_v33 = vadd.f32 %v2861_v28, %v1028_v49  ;;  %v4021_v37 = vld [vmem:[#allocation26_spill] sm:$0xff] }
 0x278   :  { %4005 = vst [vmem:[#allocation17_spill] sm:$0xff] %v2987_v53  ;;  %4006 = vst [vmem:[#allocation18_spill] sm:$0xff] %v2990_v1  ;;  %v3008_v46 = vadd.f32 %v2861_v28, %v1029_v39  ;;  %v3011_v10 = vadd.f32 %v2861_v28, %v1030_v54  ;;  %v3014_v13 = vadd.f32 %v2861_v28, %v1031_v5  ;;  %v4019_v54 = vld [vmem:[#allocation16_spill] sm:$0xff]  ;;  %v4025_v49 = vld [vmem:[#allocation10_spill] sm:$0xff]  ;;  %vm1105_vm6 = vcmp.gt.f32.partialorder %v2873_v2, 0.0 }
 0x279   :  { %4007 = vst [vmem:[#allocation19_spill] sm:$0xff] %v2993_v8  ;;  %4008 = vst [vmem:[#allocation20_spill] sm:$0xff] %v2996_v60  ;;  %v3018_v27 = vadd.f32 %v2861_v28, %v2793_v17  ;;  %v3022_v44 = vadd.f32 %v2861_v28, %v2796_v34  ;;  %v3026_v56 = vadd.f32 %v2861_v28, %v2799_v14  ;;  %vm1106_vm7 = vcmp.gt.f32.partialorder %v2876_v41, 0.0 }
 0x27a   :  { %4009 = vst [vmem:[#allocation9_spill] sm:$0xff] %v2999_v4  ;;  %4010 = vst [vmem:[#allocation12_spill] sm:$0xff] %v3002_v21  ;;  %v3030_v39 = vadd.f32 %v2861_v28, %v2802_v57  ;;  %v3034_v5 = vadd.f32 %v2861_v28, %v4019_v54  ;;  %v3038_v17 = vadd.f32 %v2861_v28, %v4021_v37  ;;  %vm1107_vm8 = vcmp.gt.f32.partialorder %v2879_v6, 0.0 }
 0x27b   :  { %4011 = vst [vmem:[#allocation13_spill] sm:$0xff] %v3005_v33  ;;  %4012 = vst [vmem:[#allocation14_spill] sm:$0xff] %v3008_v46  ;;  %v3042_v34 = vadd.f32 %v2861_v28, %v4023_v32  ;;  %v3046_v14 = vadd.f32 %v2861_v28, %v4025_v49  ;;  %vm1108_vm9 = vcmp.gt.f32.partialorder %v2882_v20, 0.0  ;;  %vm1109_vm10 = vcmp.gt.f32.partialorder %v2885_v25, 0.0 }
 0x27c   :  { %4013 = vst [vmem:[#allocation15_spill] sm:$0xff] %v3011_v10  ;;  %4014 = vst [vmem:[#allocation21_spill] sm:$0xff] %v3014_v13  ;;  %vm1110_vm11 = vcmp.gt.f32.partialorder %v2888_v43, 0.0  ;;  %vm1111_vm12 = vcmp.gt.f32.partialorder %v2891_v0, 0.0  ;;  %vm1112_vm13 = vcmp.gt.f32.partialorder %v2894_v45, 0.0  ;;  %vm1113_vm14 = vcmp.gt.f32.partialorder %v2897_v12, 0.0 }
 0x27d   :  { %4015 = vst [vmem:[#allocation22_spill] sm:$0xff] %v3018_v27  ;;  %4016 = vst [vmem:[#allocation23_spill] sm:$0xff] %v3022_v44  ;;  %vm1114_vm15 = vcmp.gt.f32.partialorder %v2900_v62, 0.0  ;;  %v1162_v57 = vmul.f32 0.2, %v2873_v2  ;;  %v3061_v26 = vadd.f32 %v2861_v28, %v4027_v42  ;;  %vm1115_vm0 = vcmp.gt.f32.partialorder %v2903_v16, 0.0 }
 0x27e   :  { %4017 = vst [vmem:[#allocation24_spill] sm:$0xff] %v3026_v56  ;;  %4018 = vst [vmem:[#allocation25_spill] sm:$0xff] %v3030_v39  ;;  %v1163_v54 = vmul.f32 0.2, %v2876_v41  ;;  %v1164_v37 = vmul.f32 0.2, %v2879_v6 }
 0x27f   :  { %4020 = vst [vmem:[#allocation16_spill] sm:$0xff] %v3034_v5  ;;  %4022 = vst [vmem:[#allocation26_spill] sm:$0xff] %v3038_v17  ;;  %v1165_v32 = vmul.f32 0.2, %v2882_v20  ;;  %vm1116_vm1 = vcmp.gt.f32.partialorder %v2906_v52, 0.0  ;;  %v3074_v28 = vsel %vm1105_vm6, %v2873_v2, %v1162_v57  ;;  %vm1117_vm2 = vcmp.gt.f32.partialorder %v2909_v3, 0.0 }
 0x280   :  { %4024 = vst [vmem:[#allocation8_spill] sm:$0xff] %v3042_v34  ;;  %4026 = vst [vmem:[#allocation10_spill] sm:$0xff] %v3046_v14  ;;  %v1166_v49 = vmul.f32 0.2, %v2885_v25  ;;  %v1167_v14 = vmul.f32 0.2, %v2888_v43  ;;  %v3083_v5 = vsel %vm1106_vm7, %v2876_v41, %v1163_v54 }
 0x281   :  { %4028 = vst [vmem:[#allocation11_spill] sm:$0xff] %v3061_v26  ;;  %v1168_v34 = vmul.f32 0.2, %v2891_v0  ;;  %4029 = vst [vmem:[#allocation27_spill] sm:$0xff] %v3074_v28  ;;  %v1169_v42 = vmul.f32 0.2, %v2894_v45  ;;  %v3096_v28 = vsel %vm1107_vm8, %v2879_v6, %v1164_v37  ;;  %v3111_v56 = vsel %vm1108_vm9, %v2882_v20, %v1165_v32 }
 0x282   :  { %v1170_v26 = vmul.f32 0.2, %v2897_v12  ;;  %v1171_v17 = vmul.f32 0.2, %v2900_v62  ;;  %4030 = vst [vmem:[#allocation28_spill] sm:$0xff] %v3083_v5  ;;  %vm1118_vm3 = vcmp.gt.f32.partialorder %v2912_v58, 0.0 }
 0x283   :  { %v1172_v39 = vmul.f32 0.2, %v2903_v16  ;;  %v3088_v2 = vmul.f32 0.2, %v2906_v52  ;;  %v3091_v57 = vmul.f32 0.2, %v2909_v3 }
 0x284   :  { %4031 = vst [vmem:[#allocation29_spill] sm:$0xff] %v3096_v28  ;;  %vm1119_vm4 = vcmp.gt.f32.partialorder %v2915_v15, 0.0  ;;  %v3100_v41 = vmul.f32 0.2, %v2912_v58  ;;  %v3103_v54 = vmul.f32 0.2, %v2915_v15 }
 0x285   :  { %v3106_v5 = vmul.f32 0.2, %v2918_v61  ;;  %4033 = vst [vmem:[#allocation31_spill] sm:$0xff] %v3111_v56  ;;  %vm1120_vm5 = vcmp.gt.f32.partialorder %v2918_v61, 0.0  ;;  %v3115_v6 = vmul.f32 0.2, %v2921_v30 }
 0x286   :  { %v3118_v37 = vmul.f32 0.2, %v2924_v22  ;;  %v3121_v28 = vmul.f32 0.2, %v2927_v40  ;;  %vm1121_vm6 = vcmp.gt.f32.partialorder %v2921_v30, 0.0  ;;  %vm1122_vm7 = vcmp.gt.f32.partialorder %v2924_v22, 0.0 }
 0x287   :  { %4032 = vst [vmem:[#allocation30_spill] sm:$0xff] %v3106_v5  ;;  %v3126_v5 = vsel %vm1109_vm10, %v2885_v25, %v1166_v49  ;;  %v3130_v20 = vmul.f32 0.2, %v2930_v18  ;;  %v3133_v32 = vmul.f32 0.2, %v2933_v55  ;;  %vm1124_vm9 = vcmp.gt.f32.partialorder %v2930_v18, 0.0 }
 0x288   :  { %4034 = vst [vmem:[#allocation32_spill] sm:$0xff] %v3121_v28  ;;  %4035 = vst [vmem:[#allocation33_spill] sm:$0xff] %v3126_v5  ;;  %v3136_v56 = vmul.f32 0.2, %v2936_v29  ;;  %v3141_v28 = vsel %vm1110_vm11, %v2888_v43, %v1167_v14  ;;  %v3146_v25 = vmul.f32 0.2, %v2939_v9 }
 0x289   :  { %4037 = vst [vmem:[#allocation35_spill] sm:$0xff] %v3141_v28  ;;  %v3149_v49 = vmul.f32 0.2, %v2942_v50  ;;  %v3152_v5 = vmul.f32 0.2, %v2945_v24 }
 0x28a   :  { %4036 = vst [vmem:[#allocation34_spill] sm:$0xff] %v3136_v56  ;;  %v3157_v56 = vsel %vm1111_vm12, %v2891_v0, %v1168_v34  ;;  %v3164_v43 = vmul.f32 0.2, %v2948_v36  ;;  %v3167_v14 = vmul.f32 0.2, %v2951_v38  ;;  %v3175_v0 = vsel %vm1112_vm13, %v2894_v45, %v1169_v42 }
 0x28b   :  { %4038 = vst [vmem:[#allocation36_spill] sm:$0xff] %v3157_v56  ;;  %v3170_v28 = vmul.f32 0.2, %v2954_v47  ;;  %4040 = vst [vmem:[#allocation38_spill] sm:$0xff] %v3175_v0  ;;  %vm1128_vm12 = vcmp.gt.f32.partialorder %v2942_v50, 0.0  ;;  %v3193_v45 = vsel %vm1113_vm14, %v2897_v12, %v1170_v26  ;;  %vm1132_vm13 = vcmp.gt.f32.partialorder %v2954_v47, 0.0 }
 0x28c   :  { %v3182_v34 = vmul.f32 0.2, %v2957_v51  ;;  %v3185_v56 = vmul.f32 0.2, %v2960_v59  ;;  %4042 = vst [vmem:[#allocation40_spill] sm:$0xff] %v3193_v45  ;;  %v3211_v12 = vsel %vm1114_vm15, %v2900_v62, %v1171_v17  ;;  %vm1136_vm14 = vcmp.gt.f32.partialorder %v2966_v7, 0.0 }
 0x28d   :  { %4039 = vst [vmem:[#allocation37_spill] sm:$0xff] %v3170_v28  ;;  %v3188_v28 = vmul.f32 0.2, %v2963_v63  ;;  %v3200_v42 = vmul.f32 0.2, %v2966_v7  ;;  %4044 = vst [vmem:[#allocation42_spill] sm:$0xff] %v3211_v12  ;;  %v3229_v62 = vsel %vm1115_vm0, %v2903_v16, %v1172_v39  ;;  %v3248_v16 = vsel %vm1116_vm1, %v2906_v52, %v3088_v2 }
 0x28e   :  { %v3203_v0 = vmul.f32 0.2, %v2969_v11  ;;  %v3218_v26 = vmul.f32 0.2, %v2975_v23  ;;  %v3221_v45 = vmul.f32 0.2, %v2978_v31  ;;  %v3261_v52 = vsel %vm1117_vm2, %v2909_v3, %v3091_v57 }
 0x28f   :  { %4041 = vst [vmem:[#allocation39_spill] sm:$0xff] %v3188_v28  ;;  %v3206_v28 = vmul.f32 0.2, %v2972_v19  ;;  %4046 = vst [vmem:[#allocation44_spill] sm:$0xff] %v3229_v62  ;;  %vm1140_vm15 = vcmp.gt.f32.partialorder %v2978_v31, 0.0  ;;  %vm1144_vm0 = vcmp.gt.f32.partialorder %v2990_v1, 0.0  ;;  %v3274_v3 = vsel %vm1118_vm3, %v2912_v58, %v3100_v41 }
 0x290   :  { %v3236_v17 = vmul.f32 0.2, %v2984_v48  ;;  %v3239_v12 = vmul.f32 0.2, %v2987_v53  ;;  %4048 = vst [vmem:[#allocation46_spill] sm:$0xff] %v3248_v16  ;;  %4049 = vst [vmem:[#allocation47_spill] sm:$0xff] %v3261_v52  ;;  %v3287_v58 = vsel %vm1119_vm4, %v2915_v15, %v3103_v54 }
 0x291   :  { %4043 = vst [vmem:[#allocation41_spill] sm:$0xff] %v3206_v28  ;;  %v3224_v28 = vmul.f32 0.2, %v2981_v35  ;;  %v1202_v39 = vmul.f32 0.2, %v2993_v8  ;;  %vm1148_vm1 = vcmp.gt.f32.partialorder %v3002_v21, 0.0 }
 0x292   :  { %v1203_v62 = vmul.f32 0.2, %v2996_v60  ;;  %v1205_v2 = vmul.f32 0.2, %v3002_v21  ;;  %v1206_v16 = vmul.f32 0.2, %v3005_v33 }
 0x293   :  { %4045 = vst [vmem:[#allocation43_spill] sm:$0xff] %v3224_v28  ;;  %v3242_v28 = vmul.f32 0.2, %v2990_v1  ;;  %4050 = vst [vmem:[#allocation48_spill] sm:$0xff] %v3274_v3  ;;  %vm1152_vm2 = vcmp.gt.f32.partialorder %v3014_v13, 0.0  ;;  %v4051_v57 = vld [vmem:[#allocation24_spill] sm:$0xff] }
 0x294   :  { %v1208_v52 = vmul.f32 0.2, %v3011_v10  ;;  %v1209_v33 = vmul.f32 0.2, %v3014_v13  ;;  %4052 = vst [vmem:[#allocation49_spill] sm:$0xff] %v3287_v58  ;;  %v4053_v41 = vld [vmem:[#allocation25_spill] sm:$0xff] }
 0x295   :  { %4047 = vst [vmem:[#allocation45_spill] sm:$0xff] %v3242_v28  ;;  %v1204_v28 = vmul.f32 0.2, %v2999_v4  ;;  %v1207_v4 = vmul.f32 0.2, %v3008_v46  ;;  %vm1156_vm3 = vcmp.gt.f32.partialorder %v4053_v41, 0.0 }
 0x296   :  { %v1210_v46 = vmul.f32 0.2, %v3018_v27  ;;  %v4054_v3 = vld [vmem:[#allocation16_spill] sm:$0xff]  ;;  %v4055_v21 = vld [vmem:[#allocation26_spill] sm:$0xff]  ;;  %v1211_v10 = vmul.f32 0.2, %v3022_v44 }
 0x297   :  { %vm1158_vm10 = vcmp.gt.f32.partialorder %v4055_v21, 0.0  ;;  %v4056_v60 = vld [vmem:[#allocation8_spill] sm:$0xff]  ;;  %v1212_v13 = vmul.f32 0.2, %v4051_v57  ;;  %v1213_v27 = vmul.f32 0.2, %v4053_v41  ;;  %v3311_v41 = vsel %vm1121_vm6, %v2921_v30, %v3115_v6 }
 0x298   :  { %vm1159_vm11 = vcmp.gt.f32.partialorder %v4056_v60, 0.0  ;;  %v4057_v8 = vld [vmem:[#allocation30_spill] sm:$0xff]  ;;  %v4060_v58 = vld [vmem:[#allocation11_spill] sm:$0xff]  ;;  %v1214_v1 = vmul.f32 0.2, %v4054_v3  ;;  %v3331_v30 = vsel %vm1124_vm9, %v2930_v18, %v3130_v20  ;;  %vm4063_vm6 = vcmp.gt.f32.partialorder %v2933_v55, 0.0 }
 0x299   :  { %v3300_v15 = vsel %vm1120_vm5, %v2918_v61, %v4057_v8  ;;  %v4059_v54 = vld [vmem:[#allocation10_spill] sm:$0xff]  ;;  %vm1161_vm8 = vcmp.gt.f32.partialorder %v4060_v58, 0.0  ;;  %v1215_v53 = vmul.f32 0.2, %v4055_v21  ;;  %v1216_v44 = vmul.f32 0.2, %v4056_v60 }
 0x29a   :  { %4058 = vst [vmem:[#allocation16_spill] sm:$0xff] %v3300_v15  ;;  %vm1160_vm4 = vcmp.gt.f32.partialorder %v4059_v54, 0.0  ;;  %v1217_v57 = vmul.f32 0.2, %v4059_v54  ;;  %v1218_v61 = vmul.f32 0.2, %v4060_v58  ;;  %v3319_v8 = vsel %vm1122_vm7, %v2924_v22, %v3118_v37 }
 0x29b   :  { %v4061_v15 = vld [vmem:[#allocation32_spill] sm:$0xff]  ;;  %vm4062_vm5 = vcmp.gt.f32.partialorder %v2927_v40, 0.0  ;;  %v3337_v6 = vsel %vm4063_vm6, %v2933_v55, %v3133_v32  ;;  %v4064_v22 = vld [vmem:[#allocation34_spill] sm:$0xff]  ;;  %vm4065_vm7 = vcmp.gt.f32.partialorder %v2936_v29, 0.0  ;;  %vm1505_vm9 = vcmask 519168  }
 0x29c   :  { %v3325_v60 = vsel %vm4062_vm5, %v2927_v40, %v4061_v15  ;;  %v3343_v37 = vsel %vm4065_vm7, %v2936_v29, %v4064_v22  ;;  %vm4066_vm5 = vcmp.gt.f32.partialorder %v2939_v9, 0.0  ;;  %v3355_v18 = vsel %vm1128_vm12, %v2942_v50, %v3149_v49  ;;  %v4070_v50 = vld [vmem:[#allocation37_spill] sm:$0xff]  ;;  %v4085_v49 = vld [vmem:[#allocation18_spill] sm:$0xff]  ;;  %v4097_v15 = vld [vmem:[#allocation15_spill] sm:$0xff] }
 0x29d   :  { %v3349_v40 = vsel %vm4066_vm5, %v2939_v9, %v3146_v25  ;;  %vm4067_vm6 = vcmp.gt.f32.partialorder %v2945_v24, 0.0  ;;  %vm4068_vm7 = vcmp.gt.f32.partialorder %v2948_v36, 0.0  ;;  %vm4069_vm5 = vcmp.gt.f32.partialorder %v2951_v38, 0.0  ;;  %v4099_v22 = vld [vmem:[#allocation21_spill] sm:$0xff] }
 0x29e   :  { %v3361_v55 = vsel %vm4067_vm6, %v2945_v24, %v3152_v5  ;;  %v3367_v29 = vsel %vm4068_vm7, %v2948_v36, %v3164_v43  ;;  %v3373_v9 = vsel %vm4069_vm5, %v2951_v38, %v3167_v14  ;;  %v3379_v20 = vsel %vm1132_vm13, %v2954_v47, %v4070_v50  ;;  %v4073_v38 = vld [vmem:[#allocation39_spill] sm:$0xff]  ;;  %v4100_v50 = vld [vmem:[#allocation22_spill] sm:$0xff] }
 0x29f   :  { %vm4071_vm12 = vcmp.gt.f32.partialorder %v2957_v51, 0.0  ;;  %vm4072_vm6 = vcmp.gt.f32.partialorder %v2960_v59, 0.0  ;;  %vm4074_vm7 = vcmp.gt.f32.partialorder %v2963_v63, 0.0  ;;  %v3403_v47 = vsel %vm1136_vm14, %v2966_v7, %v3200_v42  ;;  %v4092_v42 = vld [vmem:[#allocation12_spill] sm:$0xff] }
 0x2a0   :  { %v3385_v24 = vsel %vm4071_vm12, %v2957_v51, %v3182_v34  ;;  %v3391_v36 = vsel %vm4072_vm6, %v2960_v59, %v3185_v56  ;;  %v3397_v5 = vsel %vm4074_vm7, %v2963_v63, %v4073_v38  ;;  %vm4075_vm13 = vcmp.gt.f32.partialorder %v2969_v11, 0.0  ;;  %v4076_v59 = vld [vmem:[#allocation41_spill] sm:$0xff]  ;;  %v4102_v38 = vld [vmem:[#allocation23_spill] sm:$0xff] }
 0x2a1   :  { %v3409_v51 = vsel %vm4075_vm13, %v2969_v11, %v3203_v0  ;;  %vm4077_vm5 = vcmp.gt.f32.partialorder %v2972_v19, 0.0  ;;  %vm4078_vm12 = vcmp.gt.f32.partialorder %v2975_v23, 0.0  ;;  %v3427_v7 = vsel %vm1140_vm15, %v2978_v31, %v3221_v45  ;;  %v4079_v11 = vld [vmem:[#allocation43_spill] sm:$0xff]  ;;  %v4084_v31 = vld [vmem:[#allocation45_spill] sm:$0xff]  ;;  %v4088_v0 = vld [vmem:[#allocation20_spill] sm:$0xff] }
 0x2a2   :  { %v3415_v56 = vsel %vm4077_vm5, %v2972_v19, %v4076_v59  ;;  %v3421_v63 = vsel %vm4078_vm12, %v2975_v23, %v3218_v26  ;;  %vm4080_vm14 = vcmp.gt.f32.partialorder %v2981_v35, 0.0  ;;  %vm4081_vm6 = vcmp.gt.f32.partialorder %v2984_v48, 0.0  ;;  %v4082_v23 = vld [vmem:[#allocation17_spill] sm:$0xff]  ;;  %v4104_v59 = vld [vmem:[#allocation24_spill] sm:$0xff] }
 0x2a3   :  { %v3433_v32 = vsel %vm4080_vm14, %v2981_v35, %v4079_v11  ;;  %v3439_v19 = vsel %vm4081_vm6, %v2984_v48, %v3236_v17  ;;  %vm4083_vm7 = vcmp.gt.f32.partialorder %v4082_v23, 0.0  ;;  %v3451_v43 = vsel %vm1144_vm0, %v4085_v49, %v4084_v31  ;;  %v4086_v35 = vld [vmem:[#allocation19_spill] sm:$0xff]  ;;  %v4090_v34 = vld [vmem:[#allocation9_spill] sm:$0xff] }
 0x2a4   :  { %v3445_v25 = vsel %vm4083_vm7, %v4082_v23, %v3239_v12  ;;  %vm4087_vm15 = vcmp.gt.f32.partialorder %v4086_v35, 0.0  ;;  %vm4089_vm13 = vcmp.gt.f32.partialorder %v4088_v0, 0.0  ;;  %vm4091_vm5 = vcmp.gt.f32.partialorder %v4090_v34, 0.0  ;;  %v4093_v26 = vld [vmem:[#allocation13_spill] sm:$0xff]  ;;  %v4108_v23 = vld [vmem:[#allocation8_spill] sm:$0xff] }
 0x2a5   :  { %v3456_v14 = vsel %vm4087_vm15, %v4086_v35, %v1202_v39  ;;  %v3461_v48 = vsel %vm4089_vm13, %v4088_v0, %v1203_v62  ;;  %v3466_v45 = vsel %vm4091_vm5, %v4090_v34, %v1204_v28  ;;  %v3471_v12 = vsel %vm1148_vm1, %v4092_v42, %v1205_v2  ;;  %v4095_v39 = vld [vmem:[#allocation14_spill] sm:$0xff]  ;;  %v4106_v11 = vld [vmem:[#allocation25_spill] sm:$0xff]  ;;  %v4112_v35 = vld [vmem:[#allocation31_spill] sm:$0xff] }
 0x2a6   :  { %vm4094_vm0 = vcmp.gt.f32.partialorder %v4093_v26, 0.0  ;;  %vm4096_vm12 = vcmp.gt.f32.partialorder %v4095_v39, 0.0  ;;  %vm4098_vm14 = vcmp.gt.f32.partialorder %v4097_v15, 0.0  ;;  %v3491_v2 = vsel %vm1152_vm2, %v4099_v22, %v1209_v33  ;;  %v4111_v49 = vld [vmem:[#allocation29_spill] sm:$0xff] }
 0x2a7   :  { %v3476_v17 = vsel %vm4094_vm0, %v4093_v26, %v1206_v16  ;;  %v3481_v62 = vsel %vm4096_vm12, %v4095_v39, %v1207_v4  ;;  %v3486_v28 = vsel %vm4098_vm14, %v4097_v15, %v1208_v52  ;;  %vm4101_vm1 = vcmp.gt.f32.partialorder %v4100_v50, 0.0  ;;  %v4113_v34 = vld [vmem:[#allocation33_spill] sm:$0xff]  ;;  %v4116_v26 = vld [vmem:[#allocation38_spill] sm:$0xff]  ;;  %v4117_v15 = vld [vmem:[#allocation40_spill] sm:$0xff] }
 0x2a8   :  { %v3496_v16 = vsel %vm4101_vm1, %v4100_v50, %v1210_v46  ;;  %vm4103_vm6 = vcmp.gt.f32.partialorder %v4102_v38, 0.0  ;;  %vm4105_vm7 = vcmp.gt.f32.partialorder %v4104_v59, 0.0  ;;  %v3511_v33 = vsel %vm1156_vm3, %v4106_v11, %v1213_v27  ;;  %v4118_v50 = vld [vmem:[#allocation42_spill] sm:$0xff] }
 0x2a9   :  { %v3501_v4 = vsel %vm4103_vm6, %v4102_v38, %v1211_v10  ;;  %v3506_v52 = vsel %vm4105_vm7, %v4104_v59, %v1212_v13  ;;  %vm4107_vm2 = vcmp.gt.f32.partialorder %v4054_v3, 0.0  ;;  %v3521_v10 = vsel %vm1158_vm10, %v4055_v21, %v1215_v53  ;;  %v4110_v53 = vld [vmem:[#allocation28_spill] sm:$0xff] }
 0x2aa   :  { %v3516_v46 = vsel %vm4107_vm2, %v4054_v3, %v1214_v1  ;;  %v3526_v13 = vsel %vm1159_vm11, %v4108_v23, %v1216_v44  ;;  %v3531_v27 = vsel %vm1160_vm4, %v4059_v54, %v1217_v57  ;;  %v3536_v1 = vsel %vm1161_vm8, %v4060_v58, %v1218_v61  ;;  %v4109_v3 = vld [vmem:[#allocation27_spill] sm:$0xff]  ;;  %v4115_v58 = vld [vmem:[#allocation36_spill] sm:$0xff]  ;;  %v4120_v23 = vld [vmem:[#allocation46_spill] sm:$0xff] }
 0x2ab   :  { %v1688_v31 = vpack.c.bf16 %v4109_v3, %v4109_v3  ;;  %v1689_v21 = vpack.c.bf16 %v4110_v53, %v4110_v53  ;;  %v1690_v44 = vpack.c.bf16 %v4111_v49, %v4111_v49  ;;  %v1691_v0 = vpack.c.bf16 %v4112_v35, %v4112_v35  ;;  %v4114_v54 = vld [vmem:[#allocation35_spill] sm:$0xff]  ;;  %v4119_v59 = vld [vmem:[#allocation44_spill] sm:$0xff] }
 0x2ac   :  { %v1692_v57 = vpack.c.bf16 %v4113_v34, %v4113_v34  ;;  %v1693_v42 = vpack.c.bf16 %v4114_v54, %v4114_v54  ;;  %v1694_v61 = vpack.c.bf16 %v4115_v58, %v4115_v58  ;;  %v1695_v39 = vpack.c.bf16 %v4116_v26, %v4116_v26  ;;  %v4121_v53 = vld [vmem:[#allocation47_spill] sm:$0xff]  ;;  %v4122_v35 = vld [vmem:[#allocation48_spill] sm:$0xff] }
 0x2ad   :  { %v1696_v22 = vpack.c.bf16 %v4117_v15, %v4117_v15  ;;  %v1697_v38 = vpack.c.bf16 %v4118_v50, %v4118_v50  ;;  %1506 = vst.msk [vmem:[%s3884_s4] sm:$0xf] %vm1505_vm9, %v1688_v31  ;;  %1507 = vst.msk [vmem:[%s3884_s4 + $0x4] sm:$0xf] %vm1505_vm9, %v1689_v21  ;;  %v1698_v11 = vpack.c.bf16 %v4119_v59, %v4119_v59  ;;  %v4123_v31 = vld [vmem:[#allocation49_spill] sm:$0xff]  ;;  %v4124_v54 = vld [vmem:[#allocation16_spill] sm:$0xff] }
 0x2ae   :  { %v1699_v3 = vpack.c.bf16 %v4120_v23, %v4120_v23  ;;  %v1700_v49 = vpack.c.bf16 %v4121_v53, %v4121_v53  ;;  %v1701_v34 = vpack.c.bf16 %v4122_v35, %v4122_v35  ;;  %1508 = vst.msk [vmem:[%s3884_s4 + $0x8] sm:$0xf] %vm1505_vm9, %v1690_v44  ;;  %1509 = vst.msk [vmem:[%s3884_s4 + $0xc] sm:$0xf] %vm1505_vm9, %v1691_v0  ;;  %vm1562_vm8 = vcmask 516096  }
 0x2af   :  { %1510 = vst.msk [vmem:[%s3884_s4 + $0x10] sm:$0xf] %vm1505_vm9, %v1692_v57  ;;  %1511 = vst.msk [vmem:[%s3884_s4 + $0x14] sm:$0xf] %vm1505_vm9, %v1693_v42  ;;  %v1702_v21 = vpack.c.bf16 %v4123_v31, %v4123_v31  ;;  %v1703_v44 = vpack.c.bf16 %v4124_v54, %v4124_v54  ;;  %v1704_v58 = vpack.c.bf16 %v3311_v41, %v3311_v41 }
 0x2b0   :  { %v1705_v0 = vpack.c.bf16 %v3319_v8, %v3319_v8  ;;  %1512 = vst.msk [vmem:[%s3884_s4 + $0x18] sm:$0xf] %vm1505_vm9, %v1694_v61  ;;  %1513 = vst.msk [vmem:[%s3884_s4 + $0x1c] sm:$0xf] %vm1505_vm9, %v1695_v39  ;;  %v1706_v41 = vpack.c.bf16 %v3325_v60, %v3325_v60  ;;  %v1707_v8 = vpack.c.bf16 %v3331_v30, %v3331_v30 }
 0x2b1   :  { %1514 = vst.msk [vmem:[%s3884_s4 + $0x20] sm:$0xf] %vm1505_vm9, %v1696_v22  ;;  %1515 = vst.msk [vmem:[%s3884_s4 + $0x24] sm:$0xf] %vm1505_vm9, %v1697_v38  ;;  %v1708_v57 = vpack.c.bf16 %v3337_v6, %v3337_v6  ;;  %v1709_v42 = vpack.c.bf16 %v3343_v37, %v3343_v37  ;;  %v1710_v60 = vpack.c.bf16 %v3349_v40, %v3349_v40 }
 0x2b2   :  { %1516 = vst.msk [vmem:[%s3884_s4 + $0x28] sm:$0xf] %vm1505_vm9, %v1698_v11  ;;  %1517 = vst.msk [vmem:[%s3884_s4 + $0x2c] sm:$0xf] %vm1505_vm9, %v1699_v3  ;;  %v1711_v30 = vpack.c.bf16 %v3355_v18, %v3355_v18  ;;  %v1712_v6 = vpack.c.bf16 %v3361_v55, %v3361_v55  ;;  %v1713_v37 = vpack.c.bf16 %v3367_v29, %v3367_v29 }
 0x2b3   :  { %1518 = vst.msk [vmem:[%s3884_s4 + $0x30] sm:$0xf] %vm1505_vm9, %v1700_v49  ;;  %1519 = vst.msk [vmem:[%s3884_s4 + $0x34] sm:$0xf] %vm1505_vm9, %v1701_v34  ;;  %v1714_v40 = vpack.c.bf16 %v3373_v9, %v3373_v9  ;;  %v1715_v18 = vpack.c.bf16 %v3379_v20, %v3379_v20  ;;  %v1716_v55 = vpack.c.bf16 %v3385_v24, %v3385_v24 }
 0x2b4   :  { %1520 = vst.msk [vmem:[%s3884_s4 + $0x38] sm:$0xf] %vm1505_vm9, %v1702_v21  ;;  %1521 = vst.msk [vmem:[%s3884_s4 + $0x3c] sm:$0xf] %vm1505_vm9, %v1703_v44  ;;  %v1717_v29 = vpack.c.bf16 %v3391_v36, %v3391_v36  ;;  %v1718_v9 = vpack.c.bf16 %v3397_v5, %v3397_v5  ;;  %v1719_v20 = vpack.c.bf16 %v3403_v47, %v3403_v47 }
 0x2b5   :  { %1522 = vst.msk [vmem:[%s3884_s4 + $0x40] sm:$0xf] %vm1505_vm9, %v1704_v58  ;;  %1523 = vst.msk [vmem:[%s3884_s4 + $0x44] sm:$0xf] %vm1505_vm9, %v1705_v0  ;;  %v1720_v24 = vpack.c.bf16 %v3409_v51, %v3409_v51  ;;  %v1721_v36 = vpack.c.bf16 %v3415_v56, %v3415_v56  ;;  %v1722_v5 = vpack.c.bf16 %v3421_v63, %v3421_v63 }
 0x2b6   :  { %1524 = vst.msk [vmem:[%s3884_s4 + $0x48] sm:$0xf] %vm1505_vm9, %v1706_v41  ;;  %1525 = vst.msk [vmem:[%s3884_s4 + $0x4c] sm:$0xf] %vm1505_vm9, %v1707_v8  ;;  %v1723_v47 = vpack.c.bf16 %v3427_v7, %v3427_v7  ;;  %v1724_v51 = vpack.c.bf16 %v3433_v32, %v3433_v32  ;;  %v1725_v56 = vpack.c.bf16 %v3439_v19, %v3439_v19 }
 0x2b7   :  { %1526 = vst.msk [vmem:[%s3884_s4 + $0x50] sm:$0xf] %vm1505_vm9, %v1708_v57  ;;  %1527 = vst.msk [vmem:[%s3884_s4 + $0x54] sm:$0xf] %vm1505_vm9, %v1709_v42  ;;  %v1726_v63 = vpack.c.bf16 %v3445_v25, %v3445_v25  ;;  %v1727_v7 = vpack.c.bf16 %v3451_v43, %v3451_v43  ;;  %v1728_v32 = vpack.c.bf16 %v3456_v14, %v3456_v14 }
 0x2b8   :  { %1528 = vst.msk [vmem:[%s3884_s4 + $0x58] sm:$0xf] %vm1505_vm9, %v1710_v60  ;;  %1529 = vst.msk [vmem:[%s3884_s4 + $0x5c] sm:$0xf] %vm1505_vm9, %v1711_v30  ;;  %v1729_v19 = vpack.c.bf16 %v3461_v48, %v3461_v48  ;;  %v1730_v25 = vpack.c.bf16 %v3466_v45, %v3466_v45  ;;  %v1731_v43 = vpack.c.bf16 %v3471_v12, %v3471_v12 }
 0x2b9   :  { %1530 = vst.msk [vmem:[%s3884_s4 + $0x60] sm:$0xf] %vm1505_vm9, %v1712_v6  ;;  %1531 = vst.msk [vmem:[%s3884_s4 + $0x64] sm:$0xf] %vm1505_vm9, %v1713_v37  ;;  %v1732_v14 = vpack.c.bf16 %v3476_v17, %v3476_v17  ;;  %v1733_v48 = vpack.c.bf16 %v3481_v62, %v3481_v62  ;;  %v1734_v45 = vpack.c.bf16 %v3486_v28, %v3486_v28 }
 0x2ba   :  { %1532 = vst.msk [vmem:[%s3884_s4 + $0x68] sm:$0xf] %vm1505_vm9, %v1714_v40  ;;  %1533 = vst.msk [vmem:[%s3884_s4 + $0x6c] sm:$0xf] %vm1505_vm9, %v1715_v18  ;;  %v1735_v12 = vpack.c.bf16 %v3491_v2, %v3491_v2  ;;  %v1736_v17 = vpack.c.bf16 %v3496_v16, %v3496_v16  ;;  %v1737_v62 = vpack.c.bf16 %v3501_v4, %v3501_v4 }
 0x2bb   :  { %1534 = vst.msk [vmem:[%s3884_s4 + $0x70] sm:$0xf] %vm1505_vm9, %v1716_v55  ;;  %1535 = vst.msk [vmem:[%s3884_s4 + $0x74] sm:$0xf] %vm1505_vm9, %v1717_v29  ;;  %v1738_v28 = vpack.c.bf16 %v3506_v52, %v3506_v52  ;;  %v1739_v2 = vpack.c.bf16 %v3511_v33, %v3511_v33  ;;  %v1740_v16 = vpack.c.bf16 %v3516_v46, %v3516_v46 }
 0x2bc   :  { %1536 = vst.msk [vmem:[%s3884_s4 + $0x78] sm:$0xf] %vm1505_vm9, %v1718_v9  ;;  %1537 = vst.msk [vmem:[%s3884_s4 + $0x7c] sm:$0xf] %vm1505_vm9, %v1719_v20  ;;  %v1741_v4 = vpack.c.bf16 %v3521_v10, %v3521_v10  ;;  %v1742_v52 = vpack.c.bf16 %v3526_v13, %v3526_v13  ;;  %v1743_v33 = vpack.c.bf16 %v3531_v27, %v3531_v27 }
 0x2bd   :  { %1538 = vst.msk [vmem:[%s3884_s4 + $0x80] sm:$0xf] %vm1505_vm9, %v1720_v24  ;;  %1539 = vst.msk [vmem:[%s3884_s4 + $0x84] sm:$0xf] %vm1505_vm9, %v1721_v36  ;;  %v1744_v46 = vpack.c.bf16 %v3536_v1, %v3536_v1 }
 0x2be   :  { %1540 = vst.msk [vmem:[%s3884_s4 + $0x88] sm:$0xf] %vm1505_vm9, %v1722_v5  ;;  %1541 = vst.msk [vmem:[%s3884_s4 + $0x8c] sm:$0xf] %vm1505_vm9, %v1723_v47 }
 0x2bf   :  { %1542 = vst.msk [vmem:[%s3884_s4 + $0x90] sm:$0xf] %vm1505_vm9, %v1724_v51  ;;  %1543 = vst.msk [vmem:[%s3884_s4 + $0x94] sm:$0xf] %vm1505_vm9, %v1725_v56 }
 0x2c0   :  { %1544 = vst.msk [vmem:[%s3884_s4 + $0x98] sm:$0xf] %vm1505_vm9, %v1726_v63  ;;  %1545 = vst.msk [vmem:[%s3884_s4 + $0x9c] sm:$0xf] %vm1505_vm9, %v1727_v7 }
 0x2c1   :  { %1546 = vst.msk [vmem:[%s3884_s4 + $0xa0] sm:$0xf] %vm1505_vm9, %v1728_v32  ;;  %1547 = vst.msk [vmem:[%s3884_s4 + $0xa4] sm:$0xf] %vm1505_vm9, %v1729_v19 }
 0x2c2   :  { %1548 = vst.msk [vmem:[%s3884_s4 + $0xa8] sm:$0xf] %vm1505_vm9, %v1730_v25  ;;  %1549 = vst.msk [vmem:[%s3884_s4 + $0xac] sm:$0xf] %vm1505_vm9, %v1731_v43 }
 0x2c3   :  { %1550 = vst.msk [vmem:[%s3884_s4 + $0xb0] sm:$0xf] %vm1505_vm9, %v1732_v14  ;;  %1551 = vst.msk [vmem:[%s3884_s4 + $0xb4] sm:$0xf] %vm1505_vm9, %v1733_v48 }
 0x2c4   :  { %1552 = vst.msk [vmem:[%s3884_s4 + $0xb8] sm:$0xf] %vm1505_vm9, %v1734_v45  ;;  %1553 = vst.msk [vmem:[%s3884_s4 + $0xbc] sm:$0xf] %vm1505_vm9, %v1735_v12 }
 0x2c5   :  { %1554 = vst.msk [vmem:[%s3884_s4 + $0xc0] sm:$0xf] %vm1505_vm9, %v1736_v17  ;;  %1555 = vst.msk [vmem:[%s3884_s4 + $0xc4] sm:$0xf] %vm1505_vm9, %v1737_v62 }
 0x2c6   :  { %1556 = vst.msk [vmem:[%s3884_s4 + $0xc8] sm:$0xf] %vm1505_vm9, %v1738_v28  ;;  %1557 = vst.msk [vmem:[%s3884_s4 + $0xcc] sm:$0xf] %vm1505_vm9, %v1739_v2 }
 0x2c7   :  { %1558 = vst.msk [vmem:[%s3884_s4 + $0xd0] sm:$0xf] %vm1505_vm9, %v1740_v16  ;;  %1559 = vst.msk [vmem:[%s3884_s4 + $0xd4] sm:$0xf] %vm1505_vm9, %v1741_v4 }
 0x2c8   :  { %1560 = vst.msk [vmem:[%s3884_s4 + $0xd8] sm:$0xf] %vm1505_vm9, %v1742_v52  ;;  %1561 = vst.msk [vmem:[%s3884_s4 + $0xdc] sm:$0xf] %vm1505_vm9, %v1743_v33 }
 0x2c9   :  { %1563 = vst.msk [vmem:[%s3884_s4 + $0xe0] sm:$0x1] %vm1562_vm8, %v1744_v46 }
 0x2ca   :  { %1568 = vsyncpa [#allocation3], 1 }
 0x2cb   :  { %1569 = vsyncpa [#allocation5], 1 }

// kernel: _lambda_.4
= control target key start
LH: loop header
LB: loop body
LE: loop exit
PB: predicated region body
PF: predicated region fallthrough
CT: control target
= control target key end

     0   :  { %vm1213_vm0 = vcmask 1041408   ;;  %s2395_s1 = inlined_call_operand.vmem [shape: bf16[1024,128], index: 1, kind: input, shape index: {}]   ;;  %s2396_s0 = inlined_call_operand.vmem [shape: bf16[98,1024], index: 0, kind: input, shape index: {}]   ;;  %s2397_s2 = inlined_call_operand.vmem [shape: f32[1,128], index: 2, kind: input, shape index: {}]   ;;  %s2398_s3 = inlined_call_operand.vmem [shape: f32[1,128], index: 3, kind: input, shape index: {}]   ;;  %s2399_s4 = inlined_call_operand.vmem [shape: bf16[98,128], index: 4, kind: output, shape index: {}]  }
   0x1   :  { %v1835_v0 = vld [vmem:[%s2395_s1 + $0x40] sm:$0xff]   ;;  %v1839_v4 = vld [vmem:[%s2395_s1 + $0x48] sm:$0xff]   ;;  %v1843_v8 = vld [vmem:[%s2395_s1 + $0x50] sm:$0xff]  }
   0x2   :  { %v1836_v1 = vld [vmem:[%s2395_s1 + $0xc0] sm:$0xff]   ;;  %1603 = vmatprep.subr.bf16.mxu0 %v1835_v0  ;;  %v1840_v5 = vld [vmem:[%s2395_s1 + $0xc8] sm:$0xff]   ;;  %v1844_v9 = vld [vmem:[%s2395_s1 + $0xd0] sm:$0xff]  }
   0x3   :  { %v1837_v2 = vld [vmem:[%s2395_s1] sm:$0xff]   ;;  %1661 = vmatprep.subr.bf16.mxu1 %v1836_v1  ;;  %v1841_v6 = vld [vmem:[%s2395_s1 + $0x8] sm:$0xff]   ;;  %v1845_v10 = vld [vmem:[%s2395_s1 + $0x10] sm:$0xff]  }
   0x4   :  { %v1838_v3 = vld [vmem:[%s2395_s1 + $0x80] sm:$0xff]   ;;  %1604 = vmatpush3.bf16.msra.mxu0 %v1837_v2  ;;  %v1842_v7 = vld [vmem:[%s2395_s1 + $0x88] sm:$0xff]   ;;  %v1846_v11 = vld [vmem:[%s2395_s1 + $0x90] sm:$0xff]  }
   0x5   :  { %1662 = vmatpush3.bf16.msra.mxu1 %v1838_v3  ;;  %1605 = vmatprep.subr.bf16.mxu0 %v1839_v4  ;;  %v1847_v12 = vld [vmem:[%s2395_s1 + $0x58] sm:$0xff]   ;;  %v1851_v16 = vld [vmem:[%s2395_s1 + $0x60] sm:$0xff]   ;;  %v1855_v20 = vld [vmem:[%s2395_s1 + $0x68] sm:$0xff]  }
   0x6   :  { %1663 = vmatprep.subr.bf16.mxu1 %v1840_v5  ;;  %v1848_v13 = vld [vmem:[%s2395_s1 + $0xd8] sm:$0xff]   ;;  %v1852_v17 = vld [vmem:[%s2395_s1 + $0xe0] sm:$0xff]   ;;  %v1856_v21 = vld [vmem:[%s2395_s1 + $0xe8] sm:$0xff]  }
   0x7   :  { %v1849_v14 = vld [vmem:[%s2395_s1 + $0x18] sm:$0xff]   ;;  %v1853_v18 = vld [vmem:[%s2395_s1 + $0x20] sm:$0xff]   ;;  %v1857_v22 = vld [vmem:[%s2395_s1 + $0x28] sm:$0xff]  }
   0x8   :  { %1606 = vmatpush3.bf16.msra.mxu0 %v1841_v6  ;;  %v1850_v15 = vld [vmem:[%s2395_s1 + $0x98] sm:$0xff]   ;;  %v1854_v19 = vld [vmem:[%s2395_s1 + $0xa0] sm:$0xff]   ;;  %v1858_v23 = vld [vmem:[%s2395_s1 + $0xa8] sm:$0xff]  }
   0x9   :  { %1664 = vmatpush3.bf16.msra.mxu1 %v1842_v7  ;;  %1607 = vmatprep.subr.bf16.mxu0 %v1843_v8  ;;  %v1859_v24 = vld [vmem:[%s2395_s1 + $0x70] sm:$0xff]   ;;  %v1863_v28 = vld [vmem:[%s2395_s1 + $0x78] sm:$0xff]   ;;  %v18_v32 = vld [vmem:[%s2396_s0] sm:$0xff] }
   0xa   :  { %1665 = vmatprep.subr.bf16.mxu1 %v1844_v9  ;;  %v1860_v25 = vld [vmem:[%s2395_s1 + $0xf0] sm:$0xff]   ;;  %v1864_v29 = vld [vmem:[%s2395_s1 + $0xf8] sm:$0xff]   ;;  %v22_v33 = vld [vmem:[%s2396_s0 + $0x20] sm:$0xff] }
   0xb   :  { %v1861_v26 = vld [vmem:[%s2395_s1 + $0x30] sm:$0xff]   ;;  %v1865_v30 = vld [vmem:[%s2395_s1 + $0x38] sm:$0xff]   ;;  %v19_v34 = vld [vmem:[%s2396_s0 + $0x8] sm:$0xff]  ;;  %v1421_v35 = vcombine.low %v18_v32, %v22_v33  ;;  %v1422_v36 = vcombine.high %v18_v32, %v22_v33 }
   0xc   :  { %1608 = vmatpush3.bf16.msra.mxu0 %v1845_v10  ;;  %v1862_v27 = vld [vmem:[%s2395_s1 + $0xb0] sm:$0xff]   ;;  %v1866_v31 = vld [vmem:[%s2395_s1 + $0xb8] sm:$0xff]   ;;  %v23_v37 = vld [vmem:[%s2396_s0 + $0x28] sm:$0xff] }
   0xd   :  { %1666 = vmatpush3.bf16.msra.mxu1 %v1846_v11  ;;  %1609 = vmatprep.subr.bf16.mxu0 %v1847_v12  ;;  %v1423_v38 = vcombine.low %v19_v34, %v23_v37  ;;  %v1424_v39 = vcombine.high %v19_v34, %v23_v37  ;;  %v1867_v40 = vld [vmem:[%s2395_s1 + $0x140] sm:$0xff]   ;;  %v27_v47 = vld [vmem:[%s2396_s0 + $0x48] sm:$0xff]  ;;  %v1875_v56 = vld [vmem:[%s2395_s1 + $0x150] sm:$0xff]  }
   0xe   :  { %1667 = vmatprep.subr.bf16.mxu1 %v1848_v13  ;;  %882 = vmatprep.mubr.bf16.mxu0 %v1422_v36  ;;  %v1868_v41 = vld [vmem:[%s2395_s1 + $0x100] sm:$0xff]   ;;  %v31_v48 = vld [vmem:[%s2396_s0 + $0x68] sm:$0xff]  ;;  %v1876_v63 = vld [vmem:[%s2395_s1 + $0x110] sm:$0xff]  }
   0xf   :  { %970 = vmatprep.mubr.bf16.mxu1 %v1424_v39  ;;  %v1869_v42 = vld [vmem:[%s2395_s1 + $0x1c0] sm:$0xff]   ;;  %v1432_v49 = vcombine.high %v27_v47, %v31_v48  ;;  %v1871_v50 = vld [vmem:[%s2395_s1 + $0x148] sm:$0xff]   ;;  %v1431_v53 = vcombine.low %v27_v47, %v31_v48  ;;  %v1877_v0 = vld [vmem:[%s2395_s1 + $0x1d0] sm:$0xff]  }
  0x10   :  { %1610 = vmatpush3.bf16.msra.mxu0 %v1849_v14  ;;  %v1870_v43 = vld [vmem:[%s2395_s1 + $0x180] sm:$0xff]   ;;  %v1872_v52 = vld [vmem:[%s2395_s1 + $0x108] sm:$0xff]   ;;  %v1878_v1 = vld [vmem:[%s2395_s1 + $0x190] sm:$0xff]  }
  0x11   :  { %1668 = vmatpush3.bf16.msra.mxu1 %v1850_v15  ;;  %1611 = vmatprep.subr.bf16.mxu0 %v1851_v16  ;;  %v26_v44 = vld [vmem:[%s2396_s0 + $0x40] sm:$0xff]  ;;  %v1873_v54 = vld [vmem:[%s2395_s1 + $0x1c8] sm:$0xff]   ;;  %v1879_v3 = vld [vmem:[%s2395_s1 + $0x158] sm:$0xff]  }
  0x12   :  { %1669 = vmatprep.subr.bf16.mxu1 %v1852_v17  ;;  %v30_v45 = vld [vmem:[%s2396_s0 + $0x60] sm:$0xff]  ;;  %v1874_v55 = vld [vmem:[%s2395_s1 + $0x188] sm:$0xff]   ;;  %v1880_v5 = vld [vmem:[%s2395_s1 + $0x118] sm:$0xff]  }
  0x13   :  { %v1430_v46 = vcombine.high %v26_v44, %v30_v45  ;;  %v1429_v51 = vcombine.low %v26_v44, %v30_v45  ;;  %v34_v57 = vld [vmem:[%s2396_s0 + $0x80] sm:$0xff]  ;;  %v35_v59 = vld [vmem:[%s2396_s0 + $0x88] sm:$0xff]  ;;  %v1881_v12 = vld [vmem:[%s2395_s1 + $0x1d8] sm:$0xff]  }
  0x14   :  { %1612 = vmatpush3.bf16.msra.mxu0 %v1853_v18  ;;  %v38_v58 = vld [vmem:[%s2396_s0 + $0xa0] sm:$0xff]  ;;  %v39_v60 = vld [vmem:[%s2396_s0 + $0xa8] sm:$0xff]  ;;  %v1882_v13 = vld [vmem:[%s2395_s1 + $0x198] sm:$0xff]  }
  0x15   :  { %1670 = vmatpush3.bf16.msra.mxu1 %v1854_v19  ;;  %1613 = vmatprep.subr.bf16.mxu0 %v1855_v20  ;;  %v1438_v61 = vcombine.high %v34_v57, %v38_v58  ;;  %v1440_v62 = vcombine.high %v35_v59, %v39_v60  ;;  %v1437_v2 = vcombine.low %v34_v57, %v38_v58  ;;  %v42_v6 = vld [vmem:[%s2396_s0 + $0xc0] sm:$0xff]  ;;  %v43_v8 = vld [vmem:[%s2396_s0 + $0xc8] sm:$0xff]  ;;  %v1899_v44 = vld [vmem:[%s2395_s1 + $0x178] sm:$0xff]  }
  0x16   :  { %1671 = vmatprep.subr.bf16.mxu1 %v1856_v21  ;;  %v1439_v4 = vcombine.low %v35_v59, %v39_v60  ;;  %v46_v7 = vld [vmem:[%s2396_s0 + $0xe0] sm:$0xff]  ;;  %v47_v10 = vld [vmem:[%s2396_s0 + $0xe8] sm:$0xff]  ;;  %v1900_v45 = vld [vmem:[%s2395_s1 + $0x138] sm:$0xff]  }
  0x17   :  { %v1446_v9 = vcombine.high %v42_v6, %v46_v7  ;;  %v1448_v11 = vcombine.high %v43_v8, %v47_v10  ;;  %v1883_v14 = vld [vmem:[%s2395_s1 + $0x160] sm:$0xff]   ;;  %v1445_v16 = vcombine.low %v42_v6, %v46_v7  ;;  %v1447_v20 = vcombine.low %v43_v8, %v47_v10  ;;  %v59_v32 = vld [vmem:[%s2396_s0 + $0x148] sm:$0xff]  ;;  %v1902_v48 = vld [vmem:[%s2395_s1 + $0x1b8] sm:$0xff]  }
  0x18   :  { %1614 = vmatpush3.bf16.msra.mxu0 %v1857_v22  ;;  %v1884_v15 = vld [vmem:[%s2395_s1 + $0x120] sm:$0xff]   ;;  %v51_v22 = vld [vmem:[%s2396_s0 + $0x108] sm:$0xff]  ;;  %v28_v60 = vld [vmem:[%s2396_s0 + $0x50] sm:$0xff] }
  0x19   :  { %1672 = vmatpush3.bf16.msra.mxu1 %v1858_v23  ;;  %1615 = vmatprep.subr.bf16.mxu0 %v1859_v24  ;;  %v1885_v17 = vld [vmem:[%s2395_s1 + $0x1e0] sm:$0xff]   ;;  %v55_v23 = vld [vmem:[%s2396_s0 + $0x128] sm:$0xff]  ;;  %v37_v6 = vld [vmem:[%s2396_s0 + $0x98] sm:$0xff] }
  0x1a   :  { %1673 = vmatprep.subr.bf16.mxu1 %v1860_v25  ;;  %v50_v18 = vld [vmem:[%s2396_s0 + $0x100] sm:$0xff]  ;;  %v1456_v24 = vcombine.high %v51_v22, %v55_v23  ;;  %v63_v33 = vld [vmem:[%s2396_s0 + $0x168] sm:$0xff]  ;;  %v1455_v36 = vcombine.low %v51_v22, %v55_v23  ;;  %v41_v7 = vld [vmem:[%s2396_s0 + $0xb8] sm:$0xff] }
  0x1b   :  { %v54_v19 = vld [vmem:[%s2396_s0 + $0x120] sm:$0xff]  ;;  %v1464_v39 = vcombine.high %v59_v32, %v63_v33  ;;  %v53_v22 = vld [vmem:[%s2396_s0 + $0x118] sm:$0xff] }
  0x1c   :  { %1616 = vmatpush3.bf16.msra.mxu0 %v1861_v26  ;;  %v1454_v21 = vcombine.high %v50_v18, %v54_v19  ;;  %v1886_v25 = vld [vmem:[%s2395_s1 + $0x1a0] sm:$0xff]   ;;  %v1887_v26 = vld [vmem:[%s2395_s1 + $0x168] sm:$0xff]   ;;  %v1453_v34 = vcombine.low %v50_v18, %v54_v19  ;;  %v57_v23 = vld [vmem:[%s2396_s0 + $0x138] sm:$0xff] }
  0x1d   :  { %1674 = vmatpush3.bf16.msra.mxu1 %v1862_v27  ;;  %1617 = vmatprep.subr.bf16.mxu0 %v1863_v28  ;;  %v1888_v27 = vld [vmem:[%s2395_s1 + $0x128] sm:$0xff]  }
  0x1e   :  { %1675 = vmatprep.subr.bf16.mxu1 %v1864_v29  ;;  %v1889_v28 = vld [vmem:[%s2395_s1 + $0x1e8] sm:$0xff]  }
  0x1f   :  { %v1890_v29 = vld [vmem:[%s2395_s1 + $0x1a8] sm:$0xff]  }
  0x20   :  { %1618 = vmatpush3.bf16.msra.mxu0 %v1865_v30  ;;  %v58_v30 = vld [vmem:[%s2396_s0 + $0x140] sm:$0xff] }
  0x21   :  { %1676 = vmatpush3.bf16.msra.mxu1 %v1866_v31  ;;  %1719 = vmatprep.subr.bf16.mxu0 %v1867_v40  ;;  %v62_v31 = vld [vmem:[%s2396_s0 + $0x160] sm:$0xff]  ;;  %v1893_v40 = vld [vmem:[%s2395_s1 + $0x1f0] sm:$0xff]  }
  0x22   :  { %1777 = vmatprep.subr.bf16.mxu1 %v1869_v42  ;;  %v1462_v37 = vcombine.high %v58_v30, %v62_v31  ;;  %v66_v42 = vld [vmem:[%s2396_s0 + $0x180] sm:$0x11]  ;;  %v1461_v47 = vcombine.low %v58_v30, %v62_v31  ;;  %v61_v30 = vld [vmem:[%s2396_s0 + $0x158] sm:$0xff] }
  0x23   :  { %883 = vmatmul.mubr.bf16.vlgmr.msra.gmra.mrb[0].mxu0 %v1421_v35  ;;  %v1891_v35 = vld [vmem:[%s2395_s1 + $0x170] sm:$0xff]   ;;  %v65_v31 = vld [vmem:[%s2396_s0 + $0x178] sm:$0xff] }
  0x24   :  { %971 = vmatmul.mubr.bf16.vlgmr.msra.gmra.mrb[0].mxu1 %v1423_v38  ;;  %1720 = vmatpush3.bf16.msra.mxu0 %v1868_v41  ;;  %v1892_v38 = vld [vmem:[%s2395_s1 + $0x130] sm:$0xff]  }
  0x25   :  { %1778 = vmatpush3.bf16.msra.mxu1 %v1870_v43  ;;  %890 = vmatprep.mubr.bf16.mxu0 %v1430_v46  ;;  %v1894_v41 = vld [vmem:[%s2395_s1 + $0x1b0] sm:$0xff]   ;;  %v67_v43 = vld [vmem:[%s2396_s0 + $0x188] sm:$0x11]  ;;  %v1901_v46 = vld [vmem:[%s2395_s1 + $0x1f8] sm:$0xff]  }
  0x26   :  { %978 = vmatprep.mubr.bf16.mxu1 %v1432_v49  ;;  %1721 = vmatprep.subr.bf16.mxu0 %v1871_v50  ;;  %v1463_v49 = vcombine.low %v59_v32, %v63_v33  ;;  %v1470_v50 = vcombine.high %v66_v42, %v66_v42  ;;  %v1471_v57 = vcombine.low %v67_v43, %v67_v43 }
  0x27   :  { %1779 = vmatprep.subr.bf16.mxu1 %v1873_v54  ;;  %v21_v54 = vld [vmem:[%s2396_s0 + $0x18] sm:$0xff]  ;;  %v1459_v33 = vcombine.low %v53_v22, %v57_v23 }
  0x28   :  { %1722 = vmatpush3.bf16.msra.mxu0 %v1872_v52  ;;  %v20_v52 = vld [vmem:[%s2396_s0 + $0x10] sm:$0xff] }
  0x29   :  { %1780 = vmatpush3.bf16.msra.mxu1 %v1874_v55  ;;  %1723 = vmatprep.subr.bf16.mxu0 %v1875_v56  ;;  %v25_v55 = vld [vmem:[%s2396_s0 + $0x38] sm:$0xff]  ;;  %v1469_v56 = vcombine.low %v66_v42, %v66_v42 }
  0x2a   :  { %1781 = vmatprep.subr.bf16.mxu1 %v1877_v0  ;;  %v1428_v59 = vcombine.high %v21_v54, %v25_v55 }
  0x2b   :  { %891 = vmatmul.mubr.bf16.gmra.mrb[4].mxu0 %v1429_v51  ;;  %v1472_v51 = vcombine.high %v67_v43, %v67_v43 }
  0x2c   :  { %979 = vmatmul.mubr.bf16.gmra.mrb[4].mxu1 %v1431_v53  ;;  %898 = vmatprep.mubr.bf16.mxu0 %v1438_v61  ;;  %v24_v53 = vld [vmem:[%s2396_s0 + $0x30] sm:$0xff] }
  0x2d   :  { %986 = vmatprep.mubr.bf16.mxu1 %v1440_v62  ;;  %1724 = vmatpush3.bf16.msra.mxu0 %v1876_v63  ;;  %v1426_v58 = vcombine.high %v20_v52, %v24_v53  ;;  %v32_v61 = vld [vmem:[%s2396_s0 + $0x70] sm:$0xff]  ;;  %v29_v62 = vld [vmem:[%s2396_s0 + $0x58] sm:$0xff]  ;;  %v1425_v0 = vcombine.low %v20_v52, %v24_v53 }
  0x2e   :  { %1782 = vmatpush3.bf16.msra.mxu1 %v1878_v1  ;;  %1725 = vmatprep.subr.bf16.mxu0 %v1879_v3  ;;  %v33_v63 = vld [vmem:[%s2396_s0 + $0x78] sm:$0xff]  ;;  %v1427_v1 = vcombine.low %v21_v54, %v25_v55  ;;  %v1433_v8 = vcombine.low %v28_v60, %v32_v61 }
  0x2f   :  { %1783 = vmatprep.subr.bf16.mxu1 %v1881_v12  ;;  %v1436_v3 = vcombine.high %v29_v62, %v33_v63  ;;  %v44_v12 = vld [vmem:[%s2396_s0 + $0xd0] sm:$0xff] }
  0x31   :  { %1726 = vmatpush3.bf16.msra.mxu0 %v1880_v5  ;;  %v40_v5 = vld [vmem:[%s2396_s0 + $0xb0] sm:$0xff] }
  0x32   :  { %1784 = vmatpush3.bf16.msra.mxu1 %v1882_v13  ;;  %1727 = vmatprep.subr.bf16.mxu0 %v1883_v14  ;;  %v48_v13 = vld [vmem:[%s2396_s0 + $0xf0] sm:$0xff]  ;;  %v45_v14 = vld [vmem:[%s2396_s0 + $0xd8] sm:$0xff] }
  0x33   :  { %899 = vmatmul.mubr.bf16.gmra.mrb[8].mxu0 %v1437_v2  ;;  %1785 = vmatprep.subr.bf16.mxu1 %v1885_v17  ;;  %v1434_v2 = vcombine.high %v28_v60, %v32_v61  ;;  %v1443_v17 = vcombine.low %v37_v6, %v41_v7  ;;  %v1450_v18 = vcombine.high %v44_v12, %v48_v13 }
  0x34   :  { %987 = vmatmul.mubr.bf16.gmra.mrb[8].mxu1 %v1439_v4  ;;  %906 = vmatprep.mubr.bf16.mxu0 %v1446_v9  ;;  %v36_v4 = vld [vmem:[%s2396_s0 + $0x90] sm:$0xff]  ;;  %v1435_v9 = vcombine.low %v29_v62, %v33_v63 }
  0x35   :  { %994 = vmatprep.mubr.bf16.mxu1 %v1448_v11  ;;  %1728 = vmatpush3.bf16.msra.mxu0 %v1884_v15  ;;  %v1442_v10 = vcombine.high %v36_v4, %v40_v5  ;;  %v1444_v11 = vcombine.high %v37_v6, %v41_v7  ;;  %v49_v15 = vld [vmem:[%s2396_s0 + $0xf8] sm:$0xff] }
  0x36   :  { %1786 = vmatpush3.bf16.msra.mxu1 %v1886_v25  ;;  %1729 = vmatprep.subr.bf16.mxu0 %v1887_v26  ;;  %v1452_v19 = vcombine.high %v45_v14, %v49_v15  ;;  %v1451_v25 = vcombine.low %v45_v14, %v49_v15 }
  0x37   :  { %1787 = vmatprep.subr.bf16.mxu1 %v1889_v28  ;;  %v60_v28 = vld [vmem:[%s2396_s0 + $0x150] sm:$0xff] }
  0x39   :  { %1730 = vmatpush3.bf16.msra.mxu0 %v1888_v27  ;;  %v1460_v27 = vcombine.high %v53_v22, %v57_v23 }
  0x3a   :  { %1788 = vmatpush3.bf16.msra.mxu1 %v1890_v29  ;;  %1731 = vmatprep.subr.bf16.mxu0 %v1891_v35  ;;  %v64_v29 = vld [vmem:[%s2396_s0 + $0x170] sm:$0xff]  ;;  %v1468_v35 = vcombine.high %v61_v30, %v65_v31 }
  0x3b   :  { %907 = vmatmul.mubr.bf16.gmra.mrb[12].mxu0 %v1445_v16  ;;  %1789 = vmatprep.subr.bf16.mxu1 %v1893_v40  ;;  %v1441_v16 = vcombine.low %v36_v4, %v40_v5 }
  0x3c   :  { %995 = vmatmul.mubr.bf16.gmra.mrb[12].mxu1 %v1447_v20  ;;  %914 = vmatprep.mubr.bf16.mxu0 %v1454_v21  ;;  %v52_v20 = vld [vmem:[%s2396_s0 + $0x110] sm:$0xff] }
  0x3d   :  { %1002 = vmatprep.mubr.bf16.mxu1 %v1456_v24  ;;  %1732 = vmatpush3.bf16.msra.mxu0 %v1892_v38  ;;  %v56_v21 = vld [vmem:[%s2396_s0 + $0x130] sm:$0xff]  ;;  %v1449_v24 = vcombine.low %v44_v12, %v48_v13  ;;  %v1465_v38 = vcombine.low %v60_v28, %v64_v29 }
  0x3e   :  { %1790 = vmatpush3.bf16.msra.mxu1 %v1894_v41  ;;  %1733 = vmatprep.subr.bf16.mxu0 %v1899_v44  ;;  %v1458_v26 = vcombine.high %v52_v20, %v56_v21  ;;  %v1457_v32 = vcombine.low %v52_v20, %v56_v21 }
  0x3f   :  { %1791 = vmatprep.subr.bf16.mxu1 %v1901_v46 }
  0x41   :  { %1734 = vmatpush3.bf16.msra.mxu0 %v1900_v45 }
  0x42   :  { %1792 = vmatpush3.bf16.msra.mxu1 %v1902_v48 }
  0x43   :  { %915 = vmatmul.mubr.bf16.gmra.mrb[16].mxu0 %v1453_v34  ;;  %v1466_v34 = vcombine.high %v60_v28, %v64_v29 }
  0x44   :  { %1003 = vmatmul.mubr.bf16.gmra.mrb[16].mxu1 %v1455_v36  ;;  %922 = vmatprep.mubr.bf16.mxu0 %v1462_v37  ;;  %v68_v36 = vld [vmem:[%s2396_s0 + $0x190] sm:$0x11]  ;;  %v69_v37 = vld [vmem:[%s2396_s0 + $0x198] sm:$0x11] }
  0x45   :  { %1010 = vmatprep.mubr.bf16.mxu1 %v1464_v39  ;;  %v1467_v39 = vcombine.low %v61_v30, %v65_v31  ;;  %v1474_v40 = vcombine.high %v68_v36, %v68_v36  ;;  %v1476_v41 = vcombine.high %v69_v37, %v69_v37  ;;  %v1473_v42 = vcombine.low %v68_v36, %v68_v36 }
  0x46   :  { %v1475_v43 = vcombine.low %v69_v37, %v69_v37 }
  0x4b   :  { %923 = vmatmul.mubr.bf16.gmra.mrb[20].mxu0 %v1461_v47 }
  0x4c   :  { %1011 = vmatmul.mubr.bf16.gmra.mrb[20].mxu1 %v1463_v49  ;;  %930 = vmatprep.mubr.bf16.mxu0 %v1470_v50 }
  0x4d   :  { %1018 = vmatprep.mubr.bf16.mxu1 %v1472_v51 }
  0x53   :  { %931 = vmatmul.mubr.bf16.gmra.mrb[24].mxu0 %v1469_v56 }
  0x54   :  { %1019 = vmatmul.mubr.bf16.gmra.mrb[24].mxu1 %v1471_v57  ;;  %1058 = vmatprep.mubr.bf16.mxu0 %v1426_v58 }
  0x55   :  { %1146 = vmatprep.mubr.bf16.mxu1 %v1428_v59 }
  0x5b   :  { %1059 = vmatmul.mubr.bf16.vlgmr.msra.gmra.mrb[28].mxu0 %v1425_v0 }
  0x5c   :  { %1147 = vmatmul.mubr.bf16.vlgmr.msra.gmra.mrb[28].mxu1 %v1427_v1  ;;  %1066 = vmatprep.mubr.bf16.mxu0 %v1434_v2 }
  0x5d   :  { %1154 = vmatprep.mubr.bf16.mxu1 %v1436_v3 }
  0x63   :  { %1067 = vmatmul.mubr.bf16.gmra.mrb[32].mxu0 %v1433_v8 }
  0x64   :  { %1155 = vmatmul.mubr.bf16.gmra.mrb[32].mxu1 %v1435_v9  ;;  %1074 = vmatprep.mubr.bf16.mxu0 %v1442_v10 }
  0x65   :  { %1162 = vmatprep.mubr.bf16.mxu1 %v1444_v11 }
  0x6b   :  { %1075 = vmatmul.mubr.bf16.gmra.mrb[36].mxu0 %v1441_v16 }
  0x6c   :  { %1163 = vmatmul.mubr.bf16.gmra.mrb[36].mxu1 %v1443_v17  ;;  %1082 = vmatprep.mubr.bf16.mxu0 %v1450_v18 }
  0x6d   :  { %1170 = vmatprep.mubr.bf16.mxu1 %v1452_v19 }
  0x73   :  { %1083 = vmatmul.mubr.bf16.gmra.mrb[40].mxu0 %v1449_v24 }
  0x74   :  { %1171 = vmatmul.mubr.bf16.gmra.mrb[40].mxu1 %v1451_v25  ;;  %1090 = vmatprep.mubr.bf16.mxu0 %v1458_v26 }
  0x75   :  { %1178 = vmatprep.mubr.bf16.mxu1 %v1460_v27 }
  0x7b   :  { %1091 = vmatmul.mubr.bf16.gmra.mrb[44].mxu0 %v1457_v32 }
  0x7c   :  { %1179 = vmatmul.mubr.bf16.gmra.mrb[44].mxu1 %v1459_v33  ;;  %1098 = vmatprep.mubr.bf16.mxu0 %v1466_v34 }
  0x7d   :  { %1186 = vmatprep.mubr.bf16.mxu1 %v1468_v35 }
  0x83   :  { %1099 = vmatmul.mubr.bf16.gmra.mrb[48].mxu0 %v1465_v38 }
  0x84   :  { %1187 = vmatmul.mubr.bf16.gmra.mrb[48].mxu1 %v1467_v39  ;;  %1106 = vmatprep.mubr.bf16.mxu0 %v1474_v40 }
  0x85   :  { %1194 = vmatprep.mubr.bf16.mxu1 %v1476_v41 }
  0x8b   :  { %1107 = vmatmul.mubr.bf16.gmra.mrb[52].mxu0 %v1473_v42 }
  0x8c   :  { %1195 = vmatmul.mubr.bf16.gmra.mrb[52].mxu1 %v1475_v43 }
  0xf6   :  { %v1619_v44 = vpop.f32.mrb[0].mxu0 }
  0xf7   :  { %v1677_v45 = vpop.f32.mrb[0].mxu1  ;;  %v1620_v46 = vpop.f32.mrb[1].mxu0 }
  0xf8   :  { %v1621_v47 = vadd.f32 %v1620_v46, %v1619_v44  ;;  %v1678_v48 = vpop.f32.mrb[1].mxu1  ;;  %v1622_v49 = vpop.f32.mrb[2].mxu0 }
  0xf9   :  { %v1679_v50 = vadd.f32 %v1678_v48, %v1677_v45  ;;  %v1680_v51 = vpop.f32.mrb[2].mxu1  ;;  %v1623_v52 = vpop.f32.mrb[3].mxu0 }
  0xfa   :  { %v1624_v53 = vadd.f32 %v1623_v52, %v1622_v49  ;;  %v1681_v54 = vpop.f32.mrb[3].mxu1 }
  0xfb   :  { %v2282_v55 = vadd.f32 %v1679_v50, %v1621_v47  ;;  %v1682_v56 = vadd.f32 %v1681_v54, %v1680_v51 }
  0xfd   :  { %v2284_v57 = vadd.f32 %v1682_v56, %v1624_v53 }
  0xfe   :  { %v1625_v58 = vpop.f32.mrb[4].mxu0 }
  0xff   :  { %v1683_v59 = vpop.f32.mrb[4].mxu1  ;;  %v1626_v60 = vpop.f32.mrb[5].mxu0 }
 0x100   :  { %v1627_v61 = vadd.f32 %v1626_v60, %v1625_v58  ;;  %v1684_v62 = vpop.f32.mrb[5].mxu1  ;;  %v1628_v63 = vpop.f32.mrb[6].mxu0 }
 0x101   :  { %v1685_v0 = vadd.f32 %v1684_v62, %v1683_v59  ;;  %v1686_v1 = vpop.f32.mrb[6].mxu1  ;;  %v1629_v2 = vpop.f32.mrb[7].mxu0 }
 0x102   :  { %v1630_v3 = vadd.f32 %v1629_v2, %v1628_v63  ;;  %v1687_v4 = vpop.f32.mrb[7].mxu1 }
 0x103   :  { %v2286_v5 = vadd.f32 %v1685_v0, %v1627_v61  ;;  %v1688_v6 = vadd.f32 %v1687_v4, %v1686_v1 }
 0x105   :  { %v2288_v7 = vadd.f32 %v1688_v6, %v1630_v3 }
 0x106   :  { %v1631_v8 = vpop.f32.mrb[8].mxu0 }
 0x107   :  { %v1689_v9 = vpop.f32.mrb[8].mxu1  ;;  %v1632_v10 = vpop.f32.mrb[9].mxu0 }
 0x108   :  { %v1633_v11 = vadd.f32 %v1632_v10, %v1631_v8  ;;  %v1690_v12 = vpop.f32.mrb[9].mxu1  ;;  %v1634_v13 = vpop.f32.mrb[10].mxu0 }
 0x109   :  { %v1691_v14 = vadd.f32 %v1690_v12, %v1689_v9  ;;  %v1692_v15 = vpop.f32.mrb[10].mxu1  ;;  %v1635_v16 = vpop.f32.mrb[11].mxu0 }
 0x10a   :  { %v1636_v17 = vadd.f32 %v1635_v16, %v1634_v13  ;;  %v1693_v18 = vpop.f32.mrb[11].mxu1 }
 0x10b   :  { %v2290_v19 = vadd.f32 %v1691_v14, %v1633_v11  ;;  %v1694_v20 = vadd.f32 %v1693_v18, %v1692_v15 }
 0x10d   :  { %v2292_v21 = vadd.f32 %v1694_v20, %v1636_v17 }
 0x10e   :  { %v1637_v22 = vpop.f32.mrb[12].mxu0 }
 0x10f   :  { %v1695_v23 = vpop.f32.mrb[12].mxu1  ;;  %v1638_v24 = vpop.f32.mrb[13].mxu0 }
 0x110   :  { %v1639_v25 = vadd.f32 %v1638_v24, %v1637_v22  ;;  %v1696_v26 = vpop.f32.mrb[13].mxu1  ;;  %v1640_v27 = vpop.f32.mrb[14].mxu0 }
 0x111   :  { %v1697_v28 = vadd.f32 %v1696_v26, %v1695_v23  ;;  %v1698_v29 = vpop.f32.mrb[14].mxu1  ;;  %v1641_v30 = vpop.f32.mrb[15].mxu0 }
 0x112   :  { %v1642_v31 = vadd.f32 %v1641_v30, %v1640_v27  ;;  %v1699_v32 = vpop.f32.mrb[15].mxu1 }
 0x113   :  { %v2294_v33 = vadd.f32 %v1697_v28, %v1639_v25  ;;  %v1700_v34 = vadd.f32 %v1699_v32, %v1698_v29 }
 0x115   :  { %v2296_v35 = vadd.f32 %v1700_v34, %v1642_v31 }
 0x116   :  { %v1643_v36 = vpop.f32.mrb[16].mxu0 }
 0x117   :  { %v1701_v37 = vpop.f32.mrb[16].mxu1  ;;  %v1644_v38 = vpop.f32.mrb[17].mxu0 }
 0x118   :  { %v1645_v39 = vadd.f32 %v1644_v38, %v1643_v36  ;;  %v1702_v40 = vpop.f32.mrb[17].mxu1  ;;  %v1646_v41 = vpop.f32.mrb[18].mxu0 }
 0x119   :  { %v1703_v42 = vadd.f32 %v1702_v40, %v1701_v37  ;;  %v1704_v43 = vpop.f32.mrb[18].mxu1  ;;  %v1647_v44 = vpop.f32.mrb[19].mxu0 }
 0x11a   :  { %v1648_v45 = vadd.f32 %v1647_v44, %v1646_v41  ;;  %v1705_v46 = vpop.f32.mrb[19].mxu1 }
 0x11b   :  { %v2298_v47 = vadd.f32 %v1703_v42, %v1645_v39  ;;  %v1706_v48 = vadd.f32 %v1705_v46, %v1704_v43 }
 0x11d   :  { %v2300_v49 = vadd.f32 %v1706_v48, %v1648_v45 }
 0x11e   :  { %v1649_v50 = vpop.f32.mrb[20].mxu0 }
 0x11f   :  { %v1707_v51 = vpop.f32.mrb[20].mxu1  ;;  %v1650_v52 = vpop.f32.mrb[21].mxu0 }
 0x120   :  { %v1651_v53 = vadd.f32 %v1650_v52, %v1649_v50  ;;  %v1708_v54 = vpop.f32.mrb[21].mxu1  ;;  %v1652_v56 = vpop.f32.mrb[22].mxu0 }
 0x121   :  { %v1709_v58 = vadd.f32 %v1708_v54, %v1707_v51  ;;  %v1710_v59 = vpop.f32.mrb[22].mxu1  ;;  %v1653_v60 = vpop.f32.mrb[23].mxu0 }
 0x122   :  { %v1654_v61 = vadd.f32 %v1653_v60, %v1652_v56  ;;  %v1711_v62 = vpop.f32.mrb[23].mxu1 }
 0x123   :  { %v2302_v63 = vadd.f32 %v1709_v58, %v1651_v53  ;;  %v1712_v0 = vadd.f32 %v1711_v62, %v1710_v59 }
 0x125   :  { %v2304_v1 = vadd.f32 %v1712_v0, %v1654_v61 }
 0x126   :  { %v1655_v2 = vpop.f32.mrb[24].mxu0 }
 0x127   :  { %v1713_v3 = vpop.f32.mrb[24].mxu1  ;;  %v1656_v4 = vpop.f32.mrb[25].mxu0 }
 0x128   :  { %v1657_v6 = vadd.f32 %v1656_v4, %v1655_v2  ;;  %v1714_v8 = vpop.f32.mrb[25].mxu1  ;;  %v1658_v9 = vpop.f32.mrb[26].mxu0 }
 0x129   :  { %v1715_v10 = vadd.f32 %v1714_v8, %v1713_v3  ;;  %v1716_v11 = vpop.f32.mrb[26].mxu1  ;;  %v1659_v12 = vpop.f32.mrb[27].mxu0 }
 0x12a   :  { %v1717_v13 = vpop.f32.mrb[27].mxu1 }
 0x12b   :  { %v2306_v14 = vadd.f32 %v1715_v10, %v1657_v6 }
 0x12e   :  { %v1735_v15 = vpop.f32.mrb[28].mxu0 }
 0x12f   :  { %v1793_v16 = vpop.f32.mrb[28].mxu1  ;;  %v1736_v17 = vpop.f32.mrb[29].mxu0 }
 0x130   :  { %v1737_v18 = vadd.f32 %v1736_v17, %v1735_v15  ;;  %v1794_v20 = vpop.f32.mrb[29].mxu1  ;;  %v1738_v22 = vpop.f32.mrb[30].mxu0 }
 0x131   :  { %v1795_v23 = vadd.f32 %v1794_v20, %v1793_v16  ;;  %v1796_v24 = vpop.f32.mrb[30].mxu1  ;;  %v1739_v25 = vpop.f32.mrb[31].mxu0 }
 0x132   :  { %v1061_v26 = vadd.f32 %v1737_v18, %v2282_v55  ;;  %v1740_v27 = vadd.f32 %v1739_v25, %v1738_v22  ;;  %v1797_v28 = vpop.f32.mrb[31].mxu1 }
 0x133   :  { %v1798_v29 = vadd.f32 %v1797_v28, %v1796_v24 }
 0x134   :  { %v2309_v30 = vadd.f32 %v1795_v23, %v1061_v26  ;;  %v1064_v31 = vadd.f32 %v1740_v27, %v2284_v57 }
 0x136   :  { %v2312_v32 = vadd.f32 %v1798_v29, %v1064_v31  ;;  %v1741_v34 = vpop.f32.mrb[32].mxu0 }
 0x137   :  { %v1799_v36 = vpop.f32.mrb[32].mxu1  ;;  %v1742_v37 = vpop.f32.mrb[33].mxu0 }
 0x138   :  { %v1202_v38 = vadd.f32 %v2312_v32, %v2309_v30  ;;  %v1743_v39 = vadd.f32 %v1742_v37, %v1741_v34  ;;  %v1800_v40 = vpop.f32.mrb[33].mxu1  ;;  %v1744_v41 = vpop.f32.mrb[34].mxu0 }
 0x139   :  { %v1801_v42 = vadd.f32 %v1800_v40, %v1799_v36  ;;  %v1802_v55 = vpop.f32.mrb[34].mxu1  ;;  %v1745_v43 = vpop.f32.mrb[35].mxu0 }
 0x13a   :  { %v1069_v44 = vadd.f32 %v1743_v39, %v2286_v5  ;;  %v1746_v45 = vadd.f32 %v1745_v43, %v1744_v41  ;;  %v1803_v46 = vpop.f32.mrb[35].mxu1 }
 0x13b   :  { %v1804_v48 = vadd.f32 %v1803_v46, %v1802_v55 }
 0x13c   :  { %v2317_v57 = vadd.f32 %v1801_v42, %v1069_v44  ;;  %v1072_v50 = vadd.f32 %v1746_v45, %v2288_v7 }
 0x13e   :  { %v1203_v51 = vadd.f32 %v1202_v38, %v2317_v57  ;;  %v2321_v52 = vadd.f32 %v1804_v48, %v1072_v50  ;;  %v1747_v53 = vpop.f32.mrb[36].mxu0 }
 0x13f   :  { %v1805_v54 = vpop.f32.mrb[36].mxu1  ;;  %v1748_v56 = vpop.f32.mrb[37].mxu0 }
 0x140   :  { %v1204_v58 = vadd.f32 %v1203_v51, %v2321_v52  ;;  %v1749_v59 = vadd.f32 %v1748_v56, %v1747_v53  ;;  %v1806_v60 = vpop.f32.mrb[37].mxu1  ;;  %v1750_v61 = vpop.f32.mrb[38].mxu0 }
 0x141   :  { %v1807_v5 = vadd.f32 %v1806_v60, %v1805_v54  ;;  %v1808_v62 = vpop.f32.mrb[38].mxu1  ;;  %v1751_v0 = vpop.f32.mrb[39].mxu0 }
 0x142   :  { %v1077_v2 = vadd.f32 %v1749_v59, %v2290_v19  ;;  %v1752_v3 = vadd.f32 %v1751_v0, %v1750_v61  ;;  %v1809_v4 = vpop.f32.mrb[39].mxu1 }
 0x143   :  { %v1810_v7 = vadd.f32 %v1809_v4, %v1808_v62 }
 0x144   :  { %v2325_v6 = vadd.f32 %v1807_v5, %v1077_v2  ;;  %v1080_v8 = vadd.f32 %v1752_v3, %v2292_v21 }
 0x146   :  { %v1205_v9 = vadd.f32 %v1204_v58, %v2325_v6  ;;  %v2329_v10 = vadd.f32 %v1810_v7, %v1080_v8  ;;  %v1753_v11 = vpop.f32.mrb[40].mxu0 }
 0x147   :  { %v1811_v12 = vpop.f32.mrb[40].mxu1  ;;  %v1754_v13 = vpop.f32.mrb[41].mxu0 }
 0x148   :  { %v1206_v15 = vadd.f32 %v1205_v9, %v2329_v10  ;;  %v1755_v16 = vadd.f32 %v1754_v13, %v1753_v11  ;;  %v1812_v17 = vpop.f32.mrb[41].mxu1  ;;  %v1756_v18 = vpop.f32.mrb[42].mxu0 }
 0x149   :  { %v1813_v19 = vadd.f32 %v1812_v17, %v1811_v12  ;;  %v1814_v20 = vpop.f32.mrb[42].mxu1  ;;  %v1757_v22 = vpop.f32.mrb[43].mxu0 }
 0x14a   :  { %v1085_v23 = vadd.f32 %v1755_v16, %v2294_v33  ;;  %v1758_v24 = vadd.f32 %v1757_v22, %v1756_v18  ;;  %v1815_v25 = vpop.f32.mrb[43].mxu1 }
 0x14b   :  { %v1816_v21 = vadd.f32 %v1815_v25, %v1814_v20 }
 0x14c   :  { %v2333_v26 = vadd.f32 %v1813_v19, %v1085_v23  ;;  %v1088_v27 = vadd.f32 %v1758_v24, %v2296_v35 }
 0x14e   :  { %v1207_v28 = vadd.f32 %v1206_v15, %v2333_v26  ;;  %v2337_v29 = vadd.f32 %v1816_v21, %v1088_v27  ;;  %v1759_v31 = vpop.f32.mrb[44].mxu0 }
 0x14f   :  { %v1817_v34 = vpop.f32.mrb[44].mxu1  ;;  %v1760_v36 = vpop.f32.mrb[45].mxu0 }
 0x150   :  { %v1208_v37 = vadd.f32 %v1207_v28, %v2337_v29  ;;  %v1761_v38 = vadd.f32 %v1760_v36, %v1759_v31  ;;  %v1818_v39 = vpop.f32.mrb[45].mxu1  ;;  %v1762_v40 = vpop.f32.mrb[46].mxu0 }
 0x151   :  { %v1819_v33 = vadd.f32 %v1818_v39, %v1817_v34  ;;  %v1820_v41 = vpop.f32.mrb[46].mxu1  ;;  %v1763_v42 = vpop.f32.mrb[47].mxu0 }
 0x152   :  { %v1093_v55 = vadd.f32 %v1761_v38, %v2298_v47  ;;  %v1764_v43 = vadd.f32 %v1763_v42, %v1762_v40  ;;  %v1821_v44 = vpop.f32.mrb[47].mxu1 }
 0x153   :  { %v1822_v35 = vadd.f32 %v1821_v44, %v1820_v41 }
 0x154   :  { %v1181_v45 = vadd.f32 %v1819_v33, %v1093_v55  ;;  %v1096_v46 = vadd.f32 %v1764_v43, %v2300_v49 }
 0x156   :  { %v1209_v48 = vadd.f32 %v1208_v37, %v1181_v45  ;;  %v1184_v50 = vadd.f32 %v1822_v35, %v1096_v46  ;;  %v1765_v51 = vpop.f32.mrb[48].mxu0 }
 0x157   :  { %v1823_v53 = vpop.f32.mrb[48].mxu1  ;;  %v1766_v54 = vpop.f32.mrb[49].mxu0 }
 0x158   :  { %v1210_v56 = vadd.f32 %v1209_v48, %v1184_v50  ;;  %v1767_v58 = vadd.f32 %v1766_v54, %v1765_v51  ;;  %v1824_v59 = vpop.f32.mrb[49].mxu1  ;;  %v1768_v60 = vpop.f32.mrb[50].mxu0 }
 0x159   :  { %v1825_v61 = vadd.f32 %v1824_v59, %v1823_v53  ;;  %v1826_v5 = vpop.f32.mrb[50].mxu1  ;;  %v1769_v62 = vpop.f32.mrb[51].mxu0 }
 0x15a   :  { %v1101_v47 = vadd.f32 %v1767_v58, %v2302_v63  ;;  %v1770_v0 = vadd.f32 %v1769_v62, %v1768_v60  ;;  %v1827_v2 = vpop.f32.mrb[51].mxu1 }
 0x15b   :  { %v1828_v3 = vadd.f32 %v1827_v2, %v1826_v5 }
 0x15c   :  { %v1189_v4 = vadd.f32 %v1825_v61, %v1101_v47  ;;  %v1104_v49 = vadd.f32 %v1770_v0, %v2304_v1 }
 0x15e   :  { %v1211_v7 = vadd.f32 %v1210_v56, %v1189_v4  ;;  %v1192_v8 = vadd.f32 %v1828_v3, %v1104_v49  ;;  %v1771_v9 = vpop.f32.mrb[52].mxu0 }
 0x15f   :  { %v1829_v11 = vpop.f32.mrb[52].mxu1  ;;  %v1772_v12 = vpop.f32.mrb[53].mxu0 }
 0x160   :  { %v1212_v13 = vadd.f32 %v1211_v7, %v1192_v8  ;;  %v1773_v15 = vadd.f32 %v1772_v12, %v1771_v9  ;;  %v1830_v16 = vpop.f32.mrb[53].mxu1  ;;  %v1774_v17 = vpop.f32.mrb[54].mxu0 }
 0x161   :  { %v1831_v18 = vadd.f32 %v1830_v16, %v1829_v11  ;;  %v1832_v19 = vpop.f32.mrb[54].mxu1  ;;  %v1775_v20 = vpop.f32.mrb[55].mxu0  ;;  %v1274_v16 = vlaneseq }
 0x162   :  { %v1109_v63 = vadd.f32 %v1773_v15, %v2306_v14  ;;  %v1833_v22 = vpop.f32.mrb[55].mxu1 }
 0x163   :  { %v1275_v17 = vshrl.u32 %v1274_v16, 7 }
 0x164   :  { %v1197_v23 = vadd.f32 %v1831_v18, %v1109_v63  ;;  %v1269_v18 = vld [vmem:[%s2397_s2] sm:$0x1] }
 0x165   :  { %v1276_v19 = vsub.s32 0, %v1275_v17 }
 0x166   :  { %v1214_v24 = vsel %vm1213_vm0, %v1197_v23, 0.0 }
 0x167   :  { %v1215_v1 = vadd.f32 %v1214_v24, %v1212_v13 }
 0x169   :  { %v1216_v25 = vrot.slane %v1215_v1, 4 }
 0x16b   :  { %v1217_v21 = vadd.f32 %v1216_v25, %v1215_v1 }
 0x16d   :  { %v1218_v27 = vrot.slane %v1217_v21, 2 }
 0x16f   :  { %v1219_v28 = vadd.f32 %v1218_v27, %v1217_v21  ;;  %v1541_v21 = vld [vmem:[%s2398_s3] ss:$0 sm:$0xff] }
 0x171   :  { %v1220_v31 = vrot.slane %v1219_v28, 1 }
 0x173   :  { %v1221_v34 = vadd.f32 %v1220_v31, %v1219_v28 }
 0x175   :  { %v1222_v36 = vmul.f32 0.010204081, %v1221_v34 }
 0x177   :  { %v1223_v37 = vsub.f32 %v2309_v30, %v1222_v36  ;;  %v1224_v38 = vsub.f32 %v2312_v32, %v1222_v36  ;;  %v1225_v39 = vsub.f32 %v2317_v57, %v1222_v36  ;;  %v1226_v14 = vsub.f32 %v2321_v52, %v1222_v36 }
 0x178   :  { %v1227_v40 = vsub.f32 %v2325_v6, %v1222_v36  ;;  %v1228_v33 = vsub.f32 %v2329_v10, %v1222_v36  ;;  %v1229_v41 = vsub.f32 %v2333_v26, %v1222_v36  ;;  %v1230_v42 = vsub.f32 %v2337_v29, %v1222_v36 }
 0x179   :  { %v1231_v55 = vsub.f32 %v1181_v45, %v1222_v36  ;;  %v1232_v43 = vsub.f32 %v1184_v50, %v1222_v36  ;;  %v1233_v44 = vsub.f32 %v1189_v4, %v1222_v36  ;;  %v1234_v35 = vsub.f32 %v1192_v8, %v1222_v36 }
 0x17a   :  { %v1235_v46 = vsub.f32 %v1197_v23, %v1222_v36  ;;  %v1236_v30 = vmul.f32 %v1223_v37, %v1223_v37  ;;  %v1237_v48 = vmul.f32 %v1224_v38, %v1224_v38  ;;  %v1238_v32 = vmul.f32 %v1225_v39, %v1225_v39 }
 0x17b   :  { %v1239_v57 = vmul.f32 %v1226_v14, %v1226_v14  ;;  %v1240_v52 = vmul.f32 %v1227_v40, %v1227_v40  ;;  %v1241_v6 = vmul.f32 %v1228_v33, %v1228_v33  ;;  %v1242_v10 = vmul.f32 %v1229_v41, %v1229_v41 }
 0x17c   :  { %v1249_v51 = vadd.f32 %v1237_v48, %v1236_v30  ;;  %v1243_v26 = vmul.f32 %v1230_v42, %v1230_v42  ;;  %v1244_v29 = vmul.f32 %v1231_v55, %v1231_v55  ;;  %v1245_v50 = vmul.f32 %v1232_v43, %v1232_v43 }
 0x17d   :  { %v1246_v61 = vmul.f32 %v1233_v44, %v1233_v44  ;;  %v1248_v62 = vmul.f32 %v1235_v46, %v1235_v46  ;;  %v1247_v47 = vmul.f32 %v1234_v35, %v1234_v35 }
 0x17e   :  { %v1250_v53 = vadd.f32 %v1249_v51, %v1238_v32 }
 0x17f   :  { %v1260_v3 = vsel %vm1213_vm0, %v1248_v62, 0.0 }
 0x180   :  { %v1251_v54 = vadd.f32 %v1250_v53, %v1239_v57 }
 0x182   :  { %v1252_v56 = vadd.f32 %v1251_v54, %v1240_v52 }
 0x184   :  { %v1253_v58 = vadd.f32 %v1252_v56, %v1241_v6 }
 0x186   :  { %v1254_v59 = vadd.f32 %v1253_v58, %v1242_v10 }
 0x188   :  { %v1255_v45 = vadd.f32 %v1254_v59, %v1243_v26 }
 0x18a   :  { %v1256_v60 = vadd.f32 %v1255_v45, %v1244_v29 }
 0x18c   :  { %v1257_v5 = vadd.f32 %v1256_v60, %v1245_v50 }
 0x18e   :  { %v1258_v0 = vadd.f32 %v1257_v5, %v1246_v61 }
 0x190   :  { %v1259_v2 = vadd.f32 %v1258_v0, %v1247_v47 }
 0x192   :  { %v1261_v4 = vadd.f32 %v1260_v3, %v1259_v2 }
 0x194   :  { %v1262_v49 = vrot.slane %v1261_v4, 4 }
 0x196   :  { %v1263_v7 = vadd.f32 %v1262_v49, %v1261_v4 }
 0x198   :  { %v1264_v8 = vrot.slane %v1263_v7, 2 }
 0x19a   :  { %v1265_v9 = vadd.f32 %v1264_v8, %v1263_v7 }
 0x19c   :  { %v1266_v11 = vrot.slane %v1265_v9, 1 }
 0x19e   :  { %v1267_v12 = vadd.f32 %v1266_v11, %v1265_v9 }
 0x1a0   :  { %v1268_v13 = vmul.f32 0.010204081, %v1267_v12 }
 0x1a2   :  { %v1270_v15 = vadd.f32 1e-05, %v1268_v13 }
 0x1a4   :  { %1907 = vrsqrt.f32 %v1270_v15 }
 0x1ae   :  { %v1908_v20 = vpop.eup %1907 }
 0x1af   :  { %v1272_v63 = vmul.f32 %v1908_v20, %v1269_v18 }
 0x1b1   :  { %v1277_v22 = vrot.slane %v1272_v63, %v1276_v19 }
 0x1b3   :  { %v1279_v23 = vmul.f32 %v1277_v22, %v1223_v37  ;;  %v1280_v24 = vmul.f32 %v1277_v22, %v1224_v38  ;;  %v1281_v1 = vmul.f32 %v1277_v22, %v1225_v39  ;;  %v1282_v25 = vmul.f32 %v1277_v22, %v1226_v14 }
 0x1b4   :  { %v1283_v27 = vmul.f32 %v1277_v22, %v1227_v40  ;;  %v1284_v28 = vmul.f32 %v1277_v22, %v1228_v33  ;;  %v1285_v31 = vmul.f32 %v1277_v22, %v1229_v41  ;;  %v1286_v34 = vmul.f32 %v1277_v22, %v1230_v42 }
 0x1b5   :  { %v1287_v36 = vmul.f32 %v1277_v22, %v1231_v55  ;;  %v1288_v30 = vmul.f32 %v1277_v22, %v1232_v43  ;;  %v1289_v48 = vmul.f32 %v1277_v22, %v1233_v44  ;;  %v1290_v32 = vmul.f32 %v1277_v22, %v1234_v35 }
 0x1b6   :  { %v1291_v51 = vmul.f32 %v1277_v22, %v1235_v46  ;;  %v1299_v57 = vadd.f32 %v1541_v21, %v1279_v23  ;;  %v1300_v53 = vadd.f32 %v1541_v21, %v1280_v24  ;;  %v1301_v52 = vadd.f32 %v1541_v21, %v1281_v1 }
 0x1b7   :  { %v1302_v37 = vadd.f32 %v1541_v21, %v1282_v25  ;;  %v1303_v38 = vadd.f32 %v1541_v21, %v1283_v27  ;;  %v1304_v39 = vadd.f32 %v1541_v21, %v1284_v28  ;;  %v1305_v14 = vadd.f32 %v1541_v21, %v1285_v31 }
 0x1b8   :  { %v1306_v54 = vadd.f32 %v1541_v21, %v1286_v34  ;;  %v1307_v6 = vadd.f32 %v1541_v21, %v1287_v36  ;;  %v1308_v56 = vadd.f32 %v1541_v21, %v1288_v30  ;;  %v1309_v10 = vadd.f32 %v1541_v21, %v1289_v48 }
 0x1b9   :  { %v1310_v40 = vadd.f32 %v1541_v21, %v1290_v32  ;;  %v1311_v33 = vadd.f32 %v1541_v21, %v1291_v51  ;;  %vm1312_vm1 = vcmp.gt.f32.partialorder %v1299_v57, 0.0  ;;  %vm1313_vm2 = vcmp.gt.f32.partialorder %v1300_v53, 0.0 }
 0x1ba   :  { %vm1314_vm3 = vcmp.gt.f32.partialorder %v1301_v52, 0.0  ;;  %vm1315_vm4 = vcmp.gt.f32.partialorder %v1302_v37, 0.0  ;;  %vm1316_vm5 = vcmp.gt.f32.partialorder %v1303_v38, 0.0  ;;  %vm1317_vm6 = vcmp.gt.f32.partialorder %v1304_v39, 0.0 }
 0x1bb   :  { %vm1318_vm7 = vcmp.gt.f32.partialorder %v1305_v14, 0.0  ;;  %vm1319_vm8 = vcmp.gt.f32.partialorder %v1306_v54, 0.0  ;;  %vm1320_vm9 = vcmp.gt.f32.partialorder %v1307_v6, 0.0  ;;  %vm1321_vm10 = vcmp.gt.f32.partialorder %v1308_v56, 0.0 }
 0x1bc   :  { %vm1322_vm11 = vcmp.gt.f32.partialorder %v1309_v10, 0.0  ;;  %vm1323_vm12 = vcmp.gt.f32.partialorder %v1310_v40, 0.0  ;;  %vm1324_vm13 = vcmp.gt.f32.partialorder %v1311_v33, 0.0  ;;  %v1325_v41 = vmul.f32 0.2, %v1299_v57 }
 0x1bd   :  { %v1326_v42 = vmul.f32 0.2, %v1300_v53  ;;  %v1327_v55 = vmul.f32 0.2, %v1301_v52  ;;  %v1328_v43 = vmul.f32 0.2, %v1302_v37 }
 0x1be   :  { %v1329_v44 = vmul.f32 0.2, %v1303_v38  ;;  %v1330_v35 = vmul.f32 0.2, %v1304_v39  ;;  %v1331_v46 = vmul.f32 0.2, %v1305_v14  ;;  %v1338_v58 = vsel %vm1312_vm1, %v1299_v57, %v1325_v41 }
 0x1bf   :  { %v1332_v26 = vmul.f32 0.2, %v1306_v54  ;;  %v1333_v59 = vmul.f32 0.2, %v1307_v6  ;;  %v1334_v29 = vmul.f32 0.2, %v1308_v56  ;;  %v1339_v45 = vsel %vm1313_vm2, %v1300_v53, %v1326_v42 }
 0x1c0   :  { %v1335_v50 = vmul.f32 0.2, %v1309_v10  ;;  %v1336_v60 = vmul.f32 0.2, %v1310_v40  ;;  %v1337_v61 = vmul.f32 0.2, %v1311_v33  ;;  %v1340_v5 = vsel %vm1314_vm3, %v1301_v52, %v1327_v55 }
 0x1c1   :  { %v1341_v62 = vsel %vm1315_vm4, %v1302_v37, %v1328_v43  ;;  %v1342_v47 = vsel %vm1316_vm5, %v1303_v38, %v1329_v44  ;;  %v1343_v0 = vsel %vm1317_vm6, %v1304_v39, %v1330_v35  ;;  %v1344_v2 = vsel %vm1318_vm7, %v1305_v14, %v1331_v46 }
 0x1c2   :  { %v1345_v3 = vsel %vm1319_vm8, %v1306_v54, %v1332_v26  ;;  %v1346_v4 = vsel %vm1320_vm9, %v1307_v6, %v1333_v59  ;;  %v1347_v49 = vsel %vm1321_vm10, %v1308_v56, %v1334_v29  ;;  %v1348_v7 = vsel %vm1322_vm11, %v1309_v10, %v1335_v50 }
 0x1c3   :  { %v1349_v8 = vsel %vm1323_vm12, %v1310_v40, %v1336_v60  ;;  %v1350_v9 = vsel %vm1324_vm13, %v1311_v33, %v1337_v61  ;;  %v1571_v11 = vpack.c.bf16 %v1339_v45, %v1338_v58  ;;  %v1576_v12 = vpack.c.bf16 %v1341_v62, %v1340_v5 }
 0x1c4   :  { %v1567_v13 = vpack.c.bf16 %v1350_v9, %v1350_v9  ;;  %v1581_v15 = vpack.c.bf16 %v1343_v0, %v1342_v47  ;;  %v1586_v16 = vpack.c.bf16 %v1345_v3, %v1344_v2  ;;  %v1591_v17 = vpack.c.bf16 %v1347_v49, %v1346_v4 }
 0x1c5   :  { %1572 = vst [vmem:[%s2399_s4] sm:$0xff] %v1571_v11   ;;  %1598 = vst [vmem:[%s2399_s4 + $0x8] sm:$0xff] %v1576_v12   ;;  %v1596_v18 = vpack.c.bf16 %v1349_v8, %v1348_v7 }
 0x1c6   :  { %1599 = vst [vmem:[%s2399_s4 + $0x10] sm:$0xff] %v1581_v15   ;;  %1600 = vst [vmem:[%s2399_s4 + $0x18] sm:$0xff] %v1586_v16  }
 0x1c7   :  { %1601 = vst [vmem:[%s2399_s4 + $0x20] sm:$0xff] %v1591_v17   ;;  %1416 = vst [vmem:[%s2399_s4 + $0x30] sm:$0x1] %v1567_v13 }
 0x1c8   :  { %1602 = vst [vmem:[%s2399_s4 + $0x28] sm:$0xff] %v1596_v18  }

// kernel: _lambda_.5
= control target key start
LH: loop header
LB: loop body
LE: loop exit
PB: predicated region body
PF: predicated region fallthrough
CT: control target
= control target key end

     0   :  { %s4735_s0 = inlined_call_operand.vmem [shape: bf16[18,2048], index: 0, kind: input, shape index: {}]   ;;  %s4736_s1 = inlined_call_operand.vmem [shape: bf16[2048,256], index: 1, kind: input, shape index: {}]   ;;  %s4737_s2 = inlined_call_operand.vmem [shape: f32[1,256], index: 2, kind: input, shape index: {}]   ;;  %s4738_s3 = inlined_call_operand.vmem [shape: f32[1,256], index: 3, kind: input, shape index: {}]   ;;  %s4739_s4 = inlined_call_operand.vmem [shape: bf16[9,2,256], index: 4, kind: input, shape index: {}]   ;;  %s4740_s5 = inlined_call_operand.vmem [shape: f32[1,2], index: 5, kind: input, shape index: {}]   ;;  %s4741_s6 = inlined_call_operand.hbm [shape: f32[2,2], index: 6, kind: output, shape index: {}]  }
   0x1   :  { %v3288_v0 = vld [vmem:[%s4736_s1 + $0x4] ss:$8 sps:$4 sm:$0xff]   ;;  %v3292_v2 = vld [vmem:[%s4736_s1] ss:$8 sps:$4 sm:$0xff]   ;;  %v3294_v4 = vld [vmem:[%s4736_s1 + $0x14] ss:$8 sps:$4 sm:$0xff]  }
   0x2   :  { %v3290_v1 = vld [vmem:[%s4736_s1 + $0x304] ss:$8 sps:$4 sm:$0xff]   ;;  %1721 = vmatprep.subr.bf16.mxu1 %v3288_v0  ;;  %v3293_v3 = vld [vmem:[%s4736_s1 + $0x300] ss:$8 sps:$4 sm:$0xff]   ;;  %v3296_v5 = vld [vmem:[%s4736_s1 + $0x314] ss:$8 sps:$4 sm:$0xff]  }
   0x3   :  { %1874 = vmatprep.subr.bf16.mxu0 %v3290_v1  ;;  %1722 = vmatpush1.bf16.msra.mxu1 %v3292_v2  ;;  %v3298_v6 = vld [vmem:[%s4736_s1 + $0x10] ss:$8 sps:$4 sm:$0xff]   ;;  %v3300_v8 = vld [vmem:[%s4736_s1 + $0x24] ss:$8 sps:$4 sm:$0xff]   ;;  %v3304_v10 = vld [vmem:[%s4736_s1 + $0x20] ss:$8 sps:$4 sm:$0xff]  }
   0x4   :  { %1875 = vmatpush1.bf16.msra.mxu0 %v3293_v3  ;;  %1723 = vmatprep.subr.bf16.mxu1 %v3294_v4  ;;  %v3299_v7 = vld [vmem:[%s4736_s1 + $0x310] ss:$8 sps:$4 sm:$0xff]   ;;  %v3302_v9 = vld [vmem:[%s4736_s1 + $0x324] ss:$8 sps:$4 sm:$0xff]   ;;  %v3305_v11 = vld [vmem:[%s4736_s1 + $0x320] ss:$8 sps:$4 sm:$0xff]  }
   0x5   :  { %1876 = vmatprep.subr.bf16.mxu0 %v3296_v5  ;;  %v3306_v12 = vld [vmem:[%s4736_s1 + $0x34] ss:$8 sps:$4 sm:$0xff]   ;;  %v3310_v14 = vld [vmem:[%s4736_s1 + $0x30] ss:$8 sps:$4 sm:$0xff]   ;;  %v3312_v16 = vld [vmem:[%s4736_s1 + $0x44] ss:$8 sps:$4 sm:$0xff]  }
   0x6   :  { %v3308_v13 = vld [vmem:[%s4736_s1 + $0x334] ss:$8 sps:$4 sm:$0xff]   ;;  %v3311_v15 = vld [vmem:[%s4736_s1 + $0x330] ss:$8 sps:$4 sm:$0xff]   ;;  %v3314_v17 = vld [vmem:[%s4736_s1 + $0x344] ss:$8 sps:$4 sm:$0xff]  }
   0x7   :  { %1724 = vmatpush1.bf16.msra.mxu1 %v3298_v6  ;;  %v3316_v18 = vld [vmem:[%s4736_s1 + $0x40] ss:$8 sps:$4 sm:$0xff]   ;;  %v3318_v20 = vld [vmem:[%s4736_s1 + $0x54] ss:$8 sps:$4 sm:$0xff]   ;;  %v3322_v22 = vld [vmem:[%s4736_s1 + $0x50] ss:$8 sps:$4 sm:$0xff]  }
   0x8   :  { %1877 = vmatpush1.bf16.msra.mxu0 %v3299_v7  ;;  %1725 = vmatprep.subr.bf16.mxu1 %v3300_v8  ;;  %v3317_v19 = vld [vmem:[%s4736_s1 + $0x340] ss:$8 sps:$4 sm:$0xff]   ;;  %v3320_v21 = vld [vmem:[%s4736_s1 + $0x354] ss:$8 sps:$4 sm:$0xff]   ;;  %v3323_v23 = vld [vmem:[%s4736_s1 + $0x350] ss:$8 sps:$4 sm:$0xff]  }
   0x9   :  { %1878 = vmatprep.subr.bf16.mxu0 %v3302_v9  ;;  %v3324_v24 = vld [vmem:[%s4736_s1 + $0x64] ss:$8 sps:$4 sm:$0xff]   ;;  %v3328_v26 = vld [vmem:[%s4736_s1 + $0x60] ss:$8 sps:$4 sm:$0xff]   ;;  %v3330_v28 = vld [vmem:[%s4736_s1 + $0x74] ss:$8 sps:$4 sm:$0xff]  }
   0xa   :  { %v3326_v25 = vld [vmem:[%s4736_s1 + $0x364] ss:$8 sps:$4 sm:$0xff]   ;;  %v3329_v27 = vld [vmem:[%s4736_s1 + $0x360] ss:$8 sps:$4 sm:$0xff]   ;;  %v3332_v29 = vld [vmem:[%s4736_s1 + $0x374] ss:$8 sps:$4 sm:$0xff]  }
   0xb   :  { %1726 = vmatpush1.bf16.msra.mxu1 %v3304_v10  ;;  %v3334_v30 = vld [vmem:[%s4736_s1 + $0x70] ss:$8 sps:$4 sm:$0xff]   ;;  %v3336_v32 = vld [vmem:[%s4736_s1 + $0x84] ss:$8 sps:$4 sm:$0xff]   ;;  %v3340_v34 = vld [vmem:[%s4736_s1 + $0x80] ss:$8 sps:$4 sm:$0xff]  }
   0xc   :  { %1879 = vmatpush1.bf16.msra.mxu0 %v3305_v11  ;;  %1727 = vmatprep.subr.bf16.mxu1 %v3306_v12  ;;  %v3335_v31 = vld [vmem:[%s4736_s1 + $0x370] ss:$8 sps:$4 sm:$0xff]   ;;  %v3338_v33 = vld [vmem:[%s4736_s1 + $0x384] ss:$8 sps:$4 sm:$0xff]   ;;  %v3341_v35 = vld [vmem:[%s4736_s1 + $0x380] ss:$8 sps:$4 sm:$0xff]  }
   0xd   :  { %1880 = vmatprep.subr.bf16.mxu0 %v3308_v13  ;;  %v3342_v36 = vld [vmem:[%s4736_s1 + $0x94] ss:$8 sps:$4 sm:$0xff]   ;;  %v3346_v38 = vld [vmem:[%s4736_s1 + $0x90] ss:$8 sps:$4 sm:$0xff]   ;;  %v3348_v40 = vld [vmem:[%s4736_s1 + $0xa4] ss:$8 sps:$4 sm:$0xff]  }
   0xe   :  { %v3344_v37 = vld [vmem:[%s4736_s1 + $0x394] ss:$8 sps:$4 sm:$0xff]   ;;  %v3347_v39 = vld [vmem:[%s4736_s1 + $0x390] ss:$8 sps:$4 sm:$0xff]   ;;  %v3350_v41 = vld [vmem:[%s4736_s1 + $0x3a4] ss:$8 sps:$4 sm:$0xff]  }
   0xf   :  { %1728 = vmatpush1.bf16.msra.mxu1 %v3310_v14  ;;  %v3352_v42 = vld [vmem:[%s4736_s1 + $0xa0] ss:$8 sps:$4 sm:$0xff]   ;;  %v3354_v44 = vld [vmem:[%s4736_s1 + $0xb4] ss:$8 sps:$4 sm:$0xff]   ;;  %v3358_v46 = vld [vmem:[%s4736_s1 + $0xb0] ss:$8 sps:$4 sm:$0xff]  }
  0x10   :  { %1881 = vmatpush1.bf16.msra.mxu0 %v3311_v15  ;;  %1729 = vmatprep.subr.bf16.mxu1 %v3312_v16  ;;  %v3353_v43 = vld [vmem:[%s4736_s1 + $0x3a0] ss:$8 sps:$4 sm:$0xff]   ;;  %v3356_v45 = vld [vmem:[%s4736_s1 + $0x3b4] ss:$8 sps:$4 sm:$0xff]   ;;  %v3359_v47 = vld [vmem:[%s4736_s1 + $0x3b0] ss:$8 sps:$4 sm:$0xff]  }
  0x11   :  { %1882 = vmatprep.subr.bf16.mxu0 %v3314_v17  ;;  %v25_v48 = vld [vmem:[%s4735_s0] sm:$0xff]  ;;  %v28_v53 = vld [vmem:[%s4735_s0 + $0x18] sm:$0xff] }
  0x12   :  { %v33_v49 = vld [vmem:[%s4735_s0 + $0x40] sm:$0xff]  ;;  %v36_v54 = vld [vmem:[%s4735_s0 + $0x58] sm:$0xff] }
  0x13   :  { %1730 = vmatpush1.bf16.msra.mxu1 %v3316_v18  ;;  %v3360_v50 = vld [vmem:[%s4736_s1 + $0xc4] ss:$8 sps:$4 sm:$0xff]   ;;  %v2927_v52 = vcombine.high %v25_v48, %v33_v49  ;;  %v2933_v55 = vcombine.high %v28_v53, %v36_v54  ;;  %v3364_v56 = vld [vmem:[%s4736_s1 + $0xc0] ss:$8 sps:$4 sm:$0xff]   ;;  %v3366_v58 = vld [vmem:[%s4736_s1 + $0xd4] ss:$8 sps:$4 sm:$0xff]   ;;  %v2926_v8 = vcombine.low %v25_v48, %v33_v49  ;;  %v2932_v10 = vcombine.low %v28_v53, %v36_v54 }
  0x14   :  { %1883 = vmatpush1.bf16.msra.mxu0 %v3317_v19  ;;  %1731 = vmatprep.subr.bf16.mxu1 %v3318_v20  ;;  %v3362_v51 = vld [vmem:[%s4736_s1 + $0x3c4] ss:$8 sps:$4 sm:$0xff]   ;;  %v3365_v57 = vld [vmem:[%s4736_s1 + $0x3c0] ss:$8 sps:$4 sm:$0xff]   ;;  %v3368_v59 = vld [vmem:[%s4736_s1 + $0x3d4] ss:$8 sps:$4 sm:$0xff]  }
  0x15   :  { %1884 = vmatprep.subr.bf16.mxu0 %v3320_v21  ;;  %1753 = vmatprep.mubr.bf16.mxu1 %v2927_v52  ;;  %v3370_v60 = vld [vmem:[%s4736_s1 + $0xd0] ss:$8 sps:$4 sm:$0xff]   ;;  %v3372_v62 = vld [vmem:[%s4736_s1 + $0xe4] ss:$8 sps:$4 sm:$0xff]   ;;  %v3376_v0 = vld [vmem:[%s4736_s1 + $0xe0] ss:$8 sps:$4 sm:$0xff]  }
  0x16   :  { %1906 = vmatprep.mubr.bf16.mxu0 %v2933_v55  ;;  %v3371_v61 = vld [vmem:[%s4736_s1 + $0x3d0] ss:$8 sps:$4 sm:$0xff]   ;;  %v3374_v63 = vld [vmem:[%s4736_s1 + $0x3e4] ss:$8 sps:$4 sm:$0xff]   ;;  %v3377_v1 = vld [vmem:[%s4736_s1 + $0x3e0] ss:$8 sps:$4 sm:$0xff]  }
  0x17   :  { %1732 = vmatpush1.bf16.msra.mxu1 %v3322_v22  ;;  %v3378_v2 = vld [vmem:[%s4736_s1 + $0xf4] ss:$8 sps:$4 sm:$0xff]   ;;  %v3382_v4 = vld [vmem:[%s4736_s1 + $0xf0] ss:$8 sps:$4 sm:$0xff]   ;;  %v3386_v6 = vld [vmem:[%s4736_s1 + $0x104] ss:$8 sps:$4 sm:$0xff]  }
  0x18   :  { %1885 = vmatpush1.bf16.msra.mxu0 %v3323_v23  ;;  %1733 = vmatprep.subr.bf16.mxu1 %v3324_v24  ;;  %v3380_v3 = vld [vmem:[%s4736_s1 + $0x3f4] ss:$8 sps:$4 sm:$0xff]   ;;  %v3383_v5 = vld [vmem:[%s4736_s1 + $0x3f0] ss:$8 sps:$4 sm:$0xff]   ;;  %v3389_v7 = vld [vmem:[%s4736_s1 + $0x404] ss:$8 sps:$4 sm:$0xff]  }
  0x19   :  { %1886 = vmatprep.subr.bf16.mxu0 %v3326_v25  ;;  %v3384_v9 = vld [vmem:[%s4736_s1 + $0x100] ss:$8 sps:$4 sm:$0xff]   ;;  %v3392_v12 = vld [vmem:[%s4736_s1 + $0x114] ss:$8 sps:$4 sm:$0xff]   ;;  %v3390_v14 = vld [vmem:[%s4736_s1 + $0x110] ss:$8 sps:$4 sm:$0xff]  }
  0x1a   :  { %v3387_v11 = vld [vmem:[%s4736_s1 + $0x400] ss:$8 sps:$4 sm:$0xff]   ;;  %v3395_v13 = vld [vmem:[%s4736_s1 + $0x414] ss:$8 sps:$4 sm:$0xff]   ;;  %v3393_v15 = vld [vmem:[%s4736_s1 + $0x410] ss:$8 sps:$4 sm:$0xff]  }
  0x1b   :  { %1734 = vmatpush1.bf16.msra.mxu1 %v3328_v26  ;;  %v3398_v16 = vld [vmem:[%s4736_s1 + $0x124] ss:$8 sps:$4 sm:$0xff]   ;;  %v3396_v18 = vld [vmem:[%s4736_s1 + $0x120] ss:$8 sps:$4 sm:$0xff]   ;;  %v3404_v20 = vld [vmem:[%s4736_s1 + $0x134] ss:$8 sps:$4 sm:$0xff]  }
  0x1c   :  { %1887 = vmatpush1.bf16.msra.mxu0 %v3329_v27  ;;  %1735 = vmatprep.subr.bf16.mxu1 %v3330_v28  ;;  %v3401_v17 = vld [vmem:[%s4736_s1 + $0x424] ss:$8 sps:$4 sm:$0xff]   ;;  %v3399_v19 = vld [vmem:[%s4736_s1 + $0x420] ss:$8 sps:$4 sm:$0xff]   ;;  %v3407_v21 = vld [vmem:[%s4736_s1 + $0x434] ss:$8 sps:$4 sm:$0xff]  }
  0x1d   :  { %1888 = vmatprep.subr.bf16.mxu0 %v3332_v29  ;;  %v3402_v22 = vld [vmem:[%s4736_s1 + $0x130] ss:$8 sps:$4 sm:$0xff]   ;;  %v3410_v24 = vld [vmem:[%s4736_s1 + $0x144] ss:$8 sps:$4 sm:$0xff]   ;;  %v3408_v26 = vld [vmem:[%s4736_s1 + $0x140] ss:$8 sps:$4 sm:$0xff]  }
  0x1e   :  { %v3405_v23 = vld [vmem:[%s4736_s1 + $0x430] ss:$8 sps:$4 sm:$0xff]   ;;  %v3413_v25 = vld [vmem:[%s4736_s1 + $0x444] ss:$8 sps:$4 sm:$0xff]   ;;  %v3411_v27 = vld [vmem:[%s4736_s1 + $0x440] ss:$8 sps:$4 sm:$0xff]  }
  0x1f   :  { %1736 = vmatpush1.bf16.msra.mxu1 %v3334_v30  ;;  %v3416_v28 = vld [vmem:[%s4736_s1 + $0x154] ss:$8 sps:$4 sm:$0xff]   ;;  %v41_v30 = vld [vmem:[%s4735_s0 + $0x80] sm:$0x11] }
  0x20   :  { %1889 = vmatpush1.bf16.msra.mxu0 %v3335_v31  ;;  %1737 = vmatprep.subr.bf16.mxu1 %v3336_v32  ;;  %v3419_v29 = vld [vmem:[%s4736_s1 + $0x454] ss:$8 sps:$4 sm:$0xff]   ;;  %v2943_v31 = vcombine.high %v41_v30, %v41_v30  ;;  %v4073_v48 = vld [vmem:[%s4735_s0 + $0x60] sm:$0xff] }
  0x21   :  { %1890 = vmatprep.subr.bf16.mxu0 %v3338_v33  ;;  %v44_v32 = vld [vmem:[%s4735_s0 + $0x98] sm:$0x11]  ;;  %v2942_v33 = vcombine.low %v41_v30, %v41_v30  ;;  %v3434_v52 = vld [vmem:[%s4736_s1 + $0x184] ss:$8 sps:$4 sm:$0xff]   ;;  %v3432_v54 = vld [vmem:[%s4736_s1 + $0x180] ss:$8 sps:$4 sm:$0xff]  }
  0x22   :  { %v3437_v53 = vld [vmem:[%s4736_s1 + $0x484] ss:$8 sps:$4 sm:$0xff]   ;;  %v3435_v55 = vld [vmem:[%s4736_s1 + $0x480] ss:$8 sps:$4 sm:$0xff]  }
  0x23   :  { %1738 = vmatpush1.bf16.msra.mxu1 %v3340_v34  ;;  %v3414_v34 = vld [vmem:[%s4736_s1 + $0x150] ss:$8 sps:$4 sm:$0xff]  }
  0x24   :  { %1891 = vmatpush1.bf16.msra.mxu0 %v3341_v35  ;;  %1739 = vmatprep.subr.bf16.mxu1 %v3342_v36  ;;  %v3417_v35 = vld [vmem:[%s4736_s1 + $0x450] ss:$8 sps:$4 sm:$0xff]   ;;  %v2949_v36 = vcombine.high %v44_v32, %v44_v32 }
  0x25   :  { %1892 = vmatprep.subr.bf16.mxu0 %v3344_v37  ;;  %v2948_v37 = vcombine.low %v44_v32, %v44_v32  ;;  %v3490_v32 = vld [vmem:[%s4736_s1 + $0x210] ss:$8 sps:$4 sm:$0xff]  }
  0x27   :  { %1740 = vmatpush1.bf16.msra.mxu1 %v3346_v38  ;;  %v3422_v38 = vld [vmem:[%s4736_s1 + $0x164] ss:$8 sps:$4 sm:$0xff]  }
  0x28   :  { %1893 = vmatpush1.bf16.msra.mxu0 %v3347_v39  ;;  %1741 = vmatprep.subr.bf16.mxu1 %v3348_v40  ;;  %v3425_v39 = vld [vmem:[%s4736_s1 + $0x464] ss:$8 sps:$4 sm:$0xff]   ;;  %v3420_v40 = vld [vmem:[%s4736_s1 + $0x160] ss:$8 sps:$4 sm:$0xff]  }
  0x29   :  { %1894 = vmatprep.subr.bf16.mxu0 %v3350_v41  ;;  %v3423_v41 = vld [vmem:[%s4736_s1 + $0x460] ss:$8 sps:$4 sm:$0xff]  }
  0x2b   :  { %1742 = vmatpush1.bf16.msra.mxu1 %v3352_v42  ;;  %v4050_v42 = vld [vmem:[%s4735_s0 + $0x8] sm:$0xff] }
  0x2c   :  { %1895 = vmatpush1.bf16.msra.mxu0 %v3353_v43  ;;  %1743 = vmatprep.subr.bf16.mxu1 %v3354_v44  ;;  %v4055_v43 = vld [vmem:[%s4735_s0 + $0x48] sm:$0xff]  ;;  %v3428_v44 = vld [vmem:[%s4736_s1 + $0x174] ss:$8 sps:$4 sm:$0xff]  }
  0x2d   :  { %1896 = vmatprep.subr.bf16.mxu0 %v3356_v45  ;;  %v2929_v45 = vcombine.high %v4050_v42, %v4055_v43 }
  0x2f   :  { %1744 = vmatpush1.bf16.msra.mxu1 %v3358_v46  ;;  %v3431_v46 = vld [vmem:[%s4736_s1 + $0x474] ss:$8 sps:$4 sm:$0xff]  }
  0x30   :  { %1897 = vmatpush1.bf16.msra.mxu0 %v3359_v47  ;;  %1745 = vmatprep.subr.bf16.mxu1 %v3360_v50  ;;  %v4068_v47 = vld [vmem:[%s4735_s0 + $0x20] sm:$0xff]  ;;  %v3426_v50 = vld [vmem:[%s4736_s1 + $0x170] ss:$8 sps:$4 sm:$0xff]  }
  0x31   :  { %1898 = vmatprep.subr.bf16.mxu0 %v3362_v51  ;;  %v2935_v49 = vcombine.high %v4068_v47, %v4073_v48  ;;  %v3429_v51 = vld [vmem:[%s4736_s1 + $0x470] ss:$8 sps:$4 sm:$0xff]  }
  0x33   :  { %1746 = vmatpush1.bf16.msra.mxu1 %v3364_v56  ;;  %v3440_v56 = vld [vmem:[%s4736_s1 + $0x194] ss:$8 sps:$4 sm:$0xff]  }
  0x34   :  { %1899 = vmatpush1.bf16.msra.mxu0 %v3365_v57  ;;  %1747 = vmatprep.subr.bf16.mxu1 %v3366_v58  ;;  %v3443_v57 = vld [vmem:[%s4736_s1 + $0x494] ss:$8 sps:$4 sm:$0xff]   ;;  %v3438_v58 = vld [vmem:[%s4736_s1 + $0x190] ss:$8 sps:$4 sm:$0xff]  }
  0x35   :  { %1900 = vmatprep.subr.bf16.mxu0 %v3368_v59  ;;  %v3441_v59 = vld [vmem:[%s4736_s1 + $0x490] ss:$8 sps:$4 sm:$0xff]  }
  0x37   :  { %1748 = vmatpush1.bf16.msra.mxu1 %v3370_v60  ;;  %v3446_v60 = vld [vmem:[%s4736_s1 + $0x1a4] ss:$8 sps:$4 sm:$0xff]  }
  0x38   :  { %1901 = vmatpush1.bf16.msra.mxu0 %v3371_v61  ;;  %1749 = vmatprep.subr.bf16.mxu1 %v3372_v62  ;;  %v3449_v61 = vld [vmem:[%s4736_s1 + $0x4a4] ss:$8 sps:$4 sm:$0xff]   ;;  %v3444_v62 = vld [vmem:[%s4736_s1 + $0x1a0] ss:$8 sps:$4 sm:$0xff]  }
  0x39   :  { %1902 = vmatprep.subr.bf16.mxu0 %v3374_v63  ;;  %v3447_v63 = vld [vmem:[%s4736_s1 + $0x4a0] ss:$8 sps:$4 sm:$0xff]  }
  0x3b   :  { %1750 = vmatpush1.bf16.msra.mxu1 %v3376_v0  ;;  %v3452_v0 = vld [vmem:[%s4736_s1 + $0x1b4] ss:$8 sps:$4 sm:$0xff]  }
  0x3c   :  { %1903 = vmatpush1.bf16.msra.mxu0 %v3377_v1  ;;  %1751 = vmatprep.subr.bf16.mxu1 %v3378_v2  ;;  %v3455_v1 = vld [vmem:[%s4736_s1 + $0x4b4] ss:$8 sps:$4 sm:$0xff]   ;;  %v3450_v2 = vld [vmem:[%s4736_s1 + $0x1b0] ss:$8 sps:$4 sm:$0xff]  }
  0x3d   :  { %1904 = vmatprep.subr.bf16.mxu0 %v3380_v3  ;;  %v3453_v3 = vld [vmem:[%s4736_s1 + $0x4b0] ss:$8 sps:$4 sm:$0xff]  }
  0x3f   :  { %1752 = vmatpush1.bf16.msra.mxu1 %v3382_v4  ;;  %v3458_v4 = vld [vmem:[%s4736_s1 + $0x1c4] ss:$8 sps:$4 sm:$0xff]  }
  0x40   :  { %1905 = vmatpush1.bf16.msra.mxu0 %v3383_v5  ;;  %1772 = vmatprep.subr.bf16.mxu1 %v3386_v6  ;;  %v3461_v5 = vld [vmem:[%s4736_s1 + $0x4c4] ss:$8 sps:$4 sm:$0xff]   ;;  %v3456_v6 = vld [vmem:[%s4736_s1 + $0x1c0] ss:$8 sps:$4 sm:$0xff]  }
  0x41   :  { %1925 = vmatprep.subr.bf16.mxu0 %v3389_v7  ;;  %v3459_v7 = vld [vmem:[%s4736_s1 + $0x4c0] ss:$8 sps:$4 sm:$0xff]  }
  0x42   :  { %1754 = vmatmul.mubr.bf16.vlgmr.msra.gmra.mrb[0].mxu1 %v2926_v8  ;;  %v3464_v8 = vld [vmem:[%s4736_s1 + $0x1d4] ss:$8 sps:$4 sm:$0xff]  }
  0x43   :  { %1907 = vmatmul.mubr.bf16.vlgmr.msra.gmra.mrb[0].mxu0 %v2932_v10  ;;  %1773 = vmatpush1.bf16.msra.mxu1 %v3384_v9  ;;  %v3467_v9 = vld [vmem:[%s4736_s1 + $0x4d4] ss:$8 sps:$4 sm:$0xff]   ;;  %v3462_v10 = vld [vmem:[%s4736_s1 + $0x1d0] ss:$8 sps:$4 sm:$0xff]  }
  0x44   :  { %1926 = vmatpush1.bf16.msra.mxu0 %v3387_v11  ;;  %1774 = vmatprep.subr.bf16.mxu1 %v3392_v12  ;;  %v3465_v11 = vld [vmem:[%s4736_s1 + $0x4d0] ss:$8 sps:$4 sm:$0xff]   ;;  %v3471_v12 = vld [vmem:[%s4736_s1 + $0x1e4] ss:$8 sps:$4 sm:$0xff]  }
  0x45   :  { %1927 = vmatprep.subr.bf16.mxu0 %v3395_v13  ;;  %1763 = vmatprep.mubr.bf16.mxu1 %v2943_v31  ;;  %v3475_v13 = vld [vmem:[%s4736_s1 + $0x4e4] ss:$8 sps:$4 sm:$0xff]  }
  0x46   :  { %1916 = vmatprep.mubr.bf16.mxu0 %v2949_v36  ;;  %v3496_v36 = vld [vmem:[%s4736_s1 + $0x220] ss:$8 sps:$4 sm:$0xff]  }
  0x47   :  { %1775 = vmatpush1.bf16.msra.mxu1 %v3390_v14  ;;  %v3469_v14 = vld [vmem:[%s4736_s1 + $0x1e0] ss:$8 sps:$4 sm:$0xff]  }
  0x48   :  { %1928 = vmatpush1.bf16.msra.mxu0 %v3393_v15  ;;  %1776 = vmatprep.subr.bf16.mxu1 %v3398_v16  ;;  %v3473_v15 = vld [vmem:[%s4736_s1 + $0x4e0] ss:$8 sps:$4 sm:$0xff]   ;;  %v3480_v16 = vld [vmem:[%s4736_s1 + $0x1f4] ss:$8 sps:$4 sm:$0xff]  }
  0x49   :  { %1929 = vmatprep.subr.bf16.mxu0 %v3401_v17  ;;  %v3483_v17 = vld [vmem:[%s4736_s1 + $0x4f4] ss:$8 sps:$4 sm:$0xff]  }
  0x4a   :  { %1764 = vmatmul.mubr.bf16.gmra.mrb[4].mxu1 %v2942_v33  ;;  %v3493_v33 = vld [vmem:[%s4736_s1 + $0x510] ss:$8 sps:$4 sm:$0xff]  }
  0x4b   :  { %1777 = vmatpush1.bf16.msra.mxu1 %v3396_v18  ;;  %1917 = vmatmul.mubr.bf16.gmra.mrb[4].mxu0 %v2948_v37  ;;  %v3478_v18 = vld [vmem:[%s4736_s1 + $0x1f0] ss:$8 sps:$4 sm:$0xff]   ;;  %v3499_v37 = vld [vmem:[%s4736_s1 + $0x520] ss:$8 sps:$4 sm:$0xff]  }
  0x4c   :  { %1930 = vmatpush1.bf16.msra.mxu0 %v3399_v19  ;;  %1778 = vmatprep.subr.bf16.mxu1 %v3404_v20  ;;  %v3481_v19 = vld [vmem:[%s4736_s1 + $0x4f0] ss:$8 sps:$4 sm:$0xff]   ;;  %v3486_v20 = vld [vmem:[%s4736_s1 + $0x204] ss:$8 sps:$4 sm:$0xff]  }
  0x4d   :  { %1931 = vmatprep.subr.bf16.mxu0 %v3407_v21  ;;  %1804 = vmatprep.mubr.bf16.mxu1 %v2929_v45  ;;  %v3489_v21 = vld [vmem:[%s4736_s1 + $0x504] ss:$8 sps:$4 sm:$0xff]   ;;  %v3507_v45 = vld [vmem:[%s4736_s1 + $0x534] ss:$8 sps:$4 sm:$0xff]  }
  0x4e   :  { %1957 = vmatprep.mubr.bf16.mxu0 %v2935_v49  ;;  %v3505_v49 = vld [vmem:[%s4736_s1 + $0x530] ss:$8 sps:$4 sm:$0xff]  }
  0x4f   :  { %1779 = vmatpush1.bf16.msra.mxu1 %v3402_v22  ;;  %v3484_v22 = vld [vmem:[%s4736_s1 + $0x200] ss:$8 sps:$4 sm:$0xff]  }
  0x50   :  { %1932 = vmatpush1.bf16.msra.mxu0 %v3405_v23  ;;  %1780 = vmatprep.subr.bf16.mxu1 %v3410_v24  ;;  %v2928_v23 = vcombine.low %v4050_v42, %v4055_v43  ;;  %v2934_v24 = vcombine.low %v4068_v47, %v4073_v48  ;;  %v4238_v42 = vld [vmem:[%s4735_s0 + $0x28] sm:$0xff]  ;;  %v3502_v48 = vld [vmem:[%s4736_s1 + $0x230] ss:$8 sps:$4 sm:$0xff]  }
  0x51   :  { %1933 = vmatprep.subr.bf16.mxu0 %v3413_v25  ;;  %v3487_v25 = vld [vmem:[%s4736_s1 + $0x500] ss:$8 sps:$4 sm:$0xff]  }
  0x52   :  { %v4243_v43 = vld [vmem:[%s4735_s0 + $0x68] sm:$0xff] }
  0x53   :  { %1781 = vmatpush1.bf16.msra.mxu1 %v3408_v26  ;;  %v42_v26 = vld [vmem:[%s4735_s0 + $0x88] sm:$0x11]  ;;  %v2937_v47 = vcombine.high %v4238_v42, %v4243_v43 }
  0x54   :  { %1934 = vmatpush1.bf16.msra.mxu0 %v3411_v27  ;;  %1782 = vmatprep.subr.bf16.mxu1 %v3416_v28  ;;  %v45_v27 = vld [vmem:[%s4735_s0 + $0xa0] sm:$0x11]  ;;  %v3492_v28 = vld [vmem:[%s4736_s1 + $0x214] ss:$8 sps:$4 sm:$0xff]   ;;  %v2945_v30 = vcombine.high %v42_v26, %v42_v26 }
  0x55   :  { %1935 = vmatprep.subr.bf16.mxu0 %v3419_v29  ;;  %v3495_v29 = vld [vmem:[%s4736_s1 + $0x514] ss:$8 sps:$4 sm:$0xff]   ;;  %v2951_v31 = vcombine.high %v45_v27, %v45_v27 }
  0x57   :  { %1783 = vmatpush1.bf16.msra.mxu1 %v3414_v34  ;;  %v3498_v34 = vld [vmem:[%s4736_s1 + $0x224] ss:$8 sps:$4 sm:$0xff]  }
  0x58   :  { %1936 = vmatpush1.bf16.msra.mxu0 %v3417_v35  ;;  %1784 = vmatprep.subr.bf16.mxu1 %v3422_v38  ;;  %v3501_v35 = vld [vmem:[%s4736_s1 + $0x524] ss:$8 sps:$4 sm:$0xff]   ;;  %v4228_v38 = vld [vmem:[%s4735_s0 + $0x10] sm:$0xff] }
  0x59   :  { %1937 = vmatprep.subr.bf16.mxu0 %v3425_v39  ;;  %v4233_v39 = vld [vmem:[%s4735_s0 + $0x50] sm:$0xff] }
  0x5b   :  { %1785 = vmatpush1.bf16.msra.mxu1 %v3420_v40  ;;  %v2944_v40 = vcombine.low %v42_v26, %v42_v26 }
  0x5c   :  { %1938 = vmatpush1.bf16.msra.mxu0 %v3423_v41  ;;  %1786 = vmatprep.subr.bf16.mxu1 %v3428_v44  ;;  %v2950_v41 = vcombine.low %v45_v27, %v45_v27  ;;  %v3504_v44 = vld [vmem:[%s4736_s1 + $0x234] ss:$8 sps:$4 sm:$0xff]  }
  0x5d   :  { %1939 = vmatprep.subr.bf16.mxu0 %v3431_v46  ;;  %v2931_v46 = vcombine.high %v4228_v38, %v4233_v39 }
  0x5f   :  { %1787 = vmatpush1.bf16.msra.mxu1 %v3426_v50  ;;  %v3510_v50 = vld [vmem:[%s4736_s1 + $0x244] ss:$8 sps:$4 sm:$0xff]  }
  0x60   :  { %1940 = vmatpush1.bf16.msra.mxu0 %v3429_v51  ;;  %1788 = vmatprep.subr.bf16.mxu1 %v3434_v52  ;;  %v3513_v51 = vld [vmem:[%s4736_s1 + $0x544] ss:$8 sps:$4 sm:$0xff]   ;;  %v3508_v52 = vld [vmem:[%s4736_s1 + $0x240] ss:$8 sps:$4 sm:$0xff]  }
  0x61   :  { %1941 = vmatprep.subr.bf16.mxu0 %v3437_v53  ;;  %v3511_v53 = vld [vmem:[%s4736_s1 + $0x540] ss:$8 sps:$4 sm:$0xff]  }
  0x63   :  { %1789 = vmatpush1.bf16.msra.mxu1 %v3432_v54  ;;  %v3516_v54 = vld [vmem:[%s4736_s1 + $0x254] ss:$8 sps:$4 sm:$0xff]  }
  0x64   :  { %1942 = vmatpush1.bf16.msra.mxu0 %v3435_v55  ;;  %1790 = vmatprep.subr.bf16.mxu1 %v3440_v56  ;;  %v3519_v55 = vld [vmem:[%s4736_s1 + $0x554] ss:$8 sps:$4 sm:$0xff]   ;;  %v3514_v56 = vld [vmem:[%s4736_s1 + $0x250] ss:$8 sps:$4 sm:$0xff]  }
  0x65   :  { %1943 = vmatprep.subr.bf16.mxu0 %v3443_v57  ;;  %v3517_v57 = vld [vmem:[%s4736_s1 + $0x550] ss:$8 sps:$4 sm:$0xff]  }
  0x67   :  { %1791 = vmatpush1.bf16.msra.mxu1 %v3438_v58  ;;  %v3522_v58 = vld [vmem:[%s4736_s1 + $0x264] ss:$8 sps:$4 sm:$0xff]  }
  0x68   :  { %1944 = vmatpush1.bf16.msra.mxu0 %v3441_v59  ;;  %1792 = vmatprep.subr.bf16.mxu1 %v3446_v60  ;;  %v3525_v59 = vld [vmem:[%s4736_s1 + $0x564] ss:$8 sps:$4 sm:$0xff]   ;;  %v3520_v60 = vld [vmem:[%s4736_s1 + $0x260] ss:$8 sps:$4 sm:$0xff]  }
  0x69   :  { %1945 = vmatprep.subr.bf16.mxu0 %v3449_v61  ;;  %v3523_v61 = vld [vmem:[%s4736_s1 + $0x560] ss:$8 sps:$4 sm:$0xff]  }
  0x6b   :  { %1793 = vmatpush1.bf16.msra.mxu1 %v3444_v62  ;;  %v3528_v62 = vld [vmem:[%s4736_s1 + $0x274] ss:$8 sps:$4 sm:$0xff]  }
  0x6c   :  { %1946 = vmatpush1.bf16.msra.mxu0 %v3447_v63  ;;  %1794 = vmatprep.subr.bf16.mxu1 %v3452_v0  ;;  %v3531_v63 = vld [vmem:[%s4736_s1 + $0x574] ss:$8 sps:$4 sm:$0xff]   ;;  %v3526_v0 = vld [vmem:[%s4736_s1 + $0x270] ss:$8 sps:$4 sm:$0xff]  }
  0x6d   :  { %1947 = vmatprep.subr.bf16.mxu0 %v3455_v1  ;;  %v3529_v1 = vld [vmem:[%s4736_s1 + $0x570] ss:$8 sps:$4 sm:$0xff]  }
  0x6f   :  { %1795 = vmatpush1.bf16.msra.mxu1 %v3450_v2  ;;  %v3534_v2 = vld [vmem:[%s4736_s1 + $0x284] ss:$8 sps:$4 sm:$0xff]  }
  0x70   :  { %1948 = vmatpush1.bf16.msra.mxu0 %v3453_v3  ;;  %1796 = vmatprep.subr.bf16.mxu1 %v3458_v4  ;;  %v3537_v3 = vld [vmem:[%s4736_s1 + $0x584] ss:$8 sps:$4 sm:$0xff]   ;;  %v3532_v4 = vld [vmem:[%s4736_s1 + $0x280] ss:$8 sps:$4 sm:$0xff]  }
  0x71   :  { %1949 = vmatprep.subr.bf16.mxu0 %v3461_v5  ;;  %v3535_v5 = vld [vmem:[%s4736_s1 + $0x580] ss:$8 sps:$4 sm:$0xff]  }
  0x73   :  { %1797 = vmatpush1.bf16.msra.mxu1 %v3456_v6  ;;  %v3540_v6 = vld [vmem:[%s4736_s1 + $0x294] ss:$8 sps:$4 sm:$0xff]  }
  0x74   :  { %1950 = vmatpush1.bf16.msra.mxu0 %v3459_v7  ;;  %1798 = vmatprep.subr.bf16.mxu1 %v3464_v8  ;;  %v3543_v7 = vld [vmem:[%s4736_s1 + $0x594] ss:$8 sps:$4 sm:$0xff]   ;;  %v3538_v8 = vld [vmem:[%s4736_s1 + $0x290] ss:$8 sps:$4 sm:$0xff]  }
  0x75   :  { %1951 = vmatprep.subr.bf16.mxu0 %v3467_v9  ;;  %v3541_v9 = vld [vmem:[%s4736_s1 + $0x590] ss:$8 sps:$4 sm:$0xff]  }
  0x77   :  { %1799 = vmatpush1.bf16.msra.mxu1 %v3462_v10  ;;  %v3546_v10 = vld [vmem:[%s4736_s1 + $0x2a4] ss:$8 sps:$4 sm:$0xff]  }
  0x78   :  { %1952 = vmatpush1.bf16.msra.mxu0 %v3465_v11  ;;  %1800 = vmatprep.subr.bf16.mxu1 %v3471_v12  ;;  %v3549_v11 = vld [vmem:[%s4736_s1 + $0x5a4] ss:$8 sps:$4 sm:$0xff]   ;;  %v3544_v12 = vld [vmem:[%s4736_s1 + $0x2a0] ss:$8 sps:$4 sm:$0xff]  }
  0x79   :  { %1953 = vmatprep.subr.bf16.mxu0 %v3475_v13  ;;  %v3547_v13 = vld [vmem:[%s4736_s1 + $0x5a0] ss:$8 sps:$4 sm:$0xff]  }
  0x7b   :  { %1801 = vmatpush1.bf16.msra.mxu1 %v3469_v14  ;;  %v3552_v14 = vld [vmem:[%s4736_s1 + $0x2b4] ss:$8 sps:$4 sm:$0xff]  }
  0x7c   :  { %1954 = vmatpush1.bf16.msra.mxu0 %v3473_v15  ;;  %1802 = vmatprep.subr.bf16.mxu1 %v3480_v16  ;;  %v3555_v15 = vld [vmem:[%s4736_s1 + $0x5b4] ss:$8 sps:$4 sm:$0xff]   ;;  %v3550_v16 = vld [vmem:[%s4736_s1 + $0x2b0] ss:$8 sps:$4 sm:$0xff]  }
  0x7d   :  { %1955 = vmatprep.subr.bf16.mxu0 %v3483_v17  ;;  %v3553_v17 = vld [vmem:[%s4736_s1 + $0x5b0] ss:$8 sps:$4 sm:$0xff]  }
  0x7f   :  { %1803 = vmatpush1.bf16.msra.mxu1 %v3478_v18  ;;  %v3558_v18 = vld [vmem:[%s4736_s1 + $0x2c4] ss:$8 sps:$4 sm:$0xff]  }
  0x80   :  { %1956 = vmatpush1.bf16.msra.mxu0 %v3481_v19  ;;  %1823 = vmatprep.subr.bf16.mxu1 %v3486_v20  ;;  %v3561_v19 = vld [vmem:[%s4736_s1 + $0x5c4] ss:$8 sps:$4 sm:$0xff]  }
  0x81   :  { %1976 = vmatprep.subr.bf16.mxu0 %v3489_v21 }
  0x82   :  { %1805 = vmatmul.mubr.bf16.vlgmr.msra.gmra.mrb[0].mxu1 %v2928_v23 }
  0x83   :  { %1958 = vmatmul.mubr.bf16.vlgmr.msra.gmra.mrb[0].mxu0 %v2934_v24  ;;  %1824 = vmatpush1.bf16.msra.mxu1 %v3484_v22 }
  0x84   :  { %1977 = vmatpush1.bf16.msra.mxu0 %v3487_v25  ;;  %1825 = vmatprep.subr.bf16.mxu1 %v3492_v28 }
  0x85   :  { %1978 = vmatprep.subr.bf16.mxu0 %v3495_v29  ;;  %1814 = vmatprep.mubr.bf16.mxu1 %v2945_v30 }
  0x86   :  { %1967 = vmatprep.mubr.bf16.mxu0 %v2951_v31 }
  0x87   :  { %1826 = vmatpush1.bf16.msra.mxu1 %v3490_v32 }
  0x88   :  { %1979 = vmatpush1.bf16.msra.mxu0 %v3493_v33  ;;  %1827 = vmatprep.subr.bf16.mxu1 %v3498_v34 }
  0x89   :  { %1980 = vmatprep.subr.bf16.mxu0 %v3501_v35 }
  0x8a   :  { %1815 = vmatmul.mubr.bf16.gmra.mrb[4].mxu1 %v2944_v40 }
  0x8b   :  { %1968 = vmatmul.mubr.bf16.gmra.mrb[4].mxu0 %v2950_v41  ;;  %1828 = vmatpush1.bf16.msra.mxu1 %v3496_v36 }
  0x8c   :  { %1981 = vmatpush1.bf16.msra.mxu0 %v3499_v37  ;;  %1829 = vmatprep.subr.bf16.mxu1 %v3504_v44 }
  0x8d   :  { %1982 = vmatprep.subr.bf16.mxu0 %v3507_v45  ;;  %1855 = vmatprep.mubr.bf16.mxu1 %v2931_v46 }
  0x8e   :  { %2008 = vmatprep.mubr.bf16.mxu0 %v2937_v47 }
  0x8f   :  { %1830 = vmatpush1.bf16.msra.mxu1 %v3502_v48 }
  0x90   :  { %1983 = vmatpush1.bf16.msra.mxu0 %v3505_v49  ;;  %1831 = vmatprep.subr.bf16.mxu1 %v3510_v50 }
  0x91   :  { %1984 = vmatprep.subr.bf16.mxu0 %v3513_v51 }
  0x93   :  { %1832 = vmatpush1.bf16.msra.mxu1 %v3508_v52 }
  0x94   :  { %1985 = vmatpush1.bf16.msra.mxu0 %v3511_v53  ;;  %1833 = vmatprep.subr.bf16.mxu1 %v3516_v54 }
  0x95   :  { %1986 = vmatprep.subr.bf16.mxu0 %v3519_v55 }
  0x97   :  { %1834 = vmatpush1.bf16.msra.mxu1 %v3514_v56 }
  0x98   :  { %1987 = vmatpush1.bf16.msra.mxu0 %v3517_v57  ;;  %1835 = vmatprep.subr.bf16.mxu1 %v3522_v58 }
  0x99   :  { %1988 = vmatprep.subr.bf16.mxu0 %v3525_v59 }
  0x9b   :  { %1836 = vmatpush1.bf16.msra.mxu1 %v3520_v60 }
  0x9c   :  { %1989 = vmatpush1.bf16.msra.mxu0 %v3523_v61  ;;  %1837 = vmatprep.subr.bf16.mxu1 %v3528_v62 }
  0x9d   :  { %1990 = vmatprep.subr.bf16.mxu0 %v3531_v63 }
  0x9f   :  { %1838 = vmatpush1.bf16.msra.mxu1 %v3526_v0 }
  0xa0   :  { %1991 = vmatpush1.bf16.msra.mxu0 %v3529_v1  ;;  %1839 = vmatprep.subr.bf16.mxu1 %v3534_v2 }
  0xa1   :  { %1992 = vmatprep.subr.bf16.mxu0 %v3537_v3 }
  0xa3   :  { %1840 = vmatpush1.bf16.msra.mxu1 %v3532_v4 }
  0xa4   :  { %1993 = vmatpush1.bf16.msra.mxu0 %v3535_v5  ;;  %1841 = vmatprep.subr.bf16.mxu1 %v3540_v6 }
  0xa5   :  { %1994 = vmatprep.subr.bf16.mxu0 %v3543_v7 }
  0xa7   :  { %1842 = vmatpush1.bf16.msra.mxu1 %v3538_v8 }
  0xa8   :  { %1995 = vmatpush1.bf16.msra.mxu0 %v3541_v9  ;;  %1843 = vmatprep.subr.bf16.mxu1 %v3546_v10 }
  0xa9   :  { %1996 = vmatprep.subr.bf16.mxu0 %v3549_v11 }
  0xab   :  { %1844 = vmatpush1.bf16.msra.mxu1 %v3544_v12 }
  0xac   :  { %1997 = vmatpush1.bf16.msra.mxu0 %v3547_v13  ;;  %1845 = vmatprep.subr.bf16.mxu1 %v3552_v14 }
  0xad   :  { %1998 = vmatprep.subr.bf16.mxu0 %v3555_v15 }
  0xae   :  { %11 = vsyncpa [#allocation3], 0  ;;  %v3556_v20 = vld [vmem:[%s4736_s1 + $0x2c0] ss:$8 sps:$4 sm:$0xff]   ;;  %v3564_v22 = vld [vmem:[%s4736_s1 + $0x2d4] ss:$8 sps:$4 sm:$0xff]   ;;  %v2930_v37 = vcombine.low %v4228_v38, %v4233_v39  ;;  %v2936_v40 = vcombine.low %v4238_v42, %v4243_v43 }
  0xaf   :  { %1846 = vmatpush1.bf16.msra.mxu1 %v3550_v16  ;;  %v3559_v21 = vld [vmem:[%s4736_s1 + $0x5c0] ss:$8 sps:$4 sm:$0xff]   ;;  %v3567_v23 = vld [vmem:[%s4736_s1 + $0x5d4] ss:$8 sps:$4 sm:$0xff]   ;;  %v3562_v24 = vld [vmem:[%s4736_s1 + $0x2d0] ss:$8 sps:$4 sm:$0xff]  }
  0xb0   :  { %1999 = vmatpush1.bf16.msra.mxu0 %v3553_v17  ;;  %1847 = vmatprep.subr.bf16.mxu1 %v3558_v18  ;;  %v3565_v25 = vld [vmem:[%s4736_s1 + $0x5d0] ss:$8 sps:$4 sm:$0xff]   ;;  %v3572_v26 = vld [vmem:[%s4736_s1 + $0x2e4] ss:$8 sps:$4 sm:$0xff]   ;;  %v3570_v28 = vld [vmem:[%s4736_s1 + $0x2e0] ss:$8 sps:$4 sm:$0xff]  }
  0xb1   :  { %2000 = vmatprep.subr.bf16.mxu0 %v3561_v19  ;;  %v3576_v27 = vld [vmem:[%s4736_s1 + $0x5e4] ss:$8 sps:$4 sm:$0xff]   ;;  %v3574_v29 = vld [vmem:[%s4736_s1 + $0x5e0] ss:$8 sps:$4 sm:$0xff]   ;;  %v3580_v30 = vld [vmem:[%s4736_s1 + $0x2f4] ss:$8 sps:$4 sm:$0xff]  }
  0xb2   :  { %v3583_v31 = vld [vmem:[%s4736_s1 + $0x5f4] ss:$8 sps:$4 sm:$0xff]   ;;  %v3578_v32 = vld [vmem:[%s4736_s1 + $0x2f0] ss:$8 sps:$4 sm:$0xff]   ;;  %v3586_v34 = vld [vmem:[%s4736_s1 + $0x604] ss:$8 sps:$4 sm:$0xff]  }
  0xb3   :  { %1848 = vmatpush1.bf16.msra.mxu1 %v3556_v20  ;;  %v3581_v33 = vld [vmem:[%s4736_s1 + $0x5f0] ss:$8 sps:$4 sm:$0xff]   ;;  %v46_v36 = vld [vmem:[%s4735_s0 + $0xa8] sm:$0x11]  ;;  %v3589_v45 = vld [vmem:[%s4736_s1 + $0x614] ss:$8 sps:$4 sm:$0xff]  }
  0xb4   :  { %2001 = vmatpush1.bf16.msra.mxu0 %v3559_v21  ;;  %1849 = vmatprep.subr.bf16.mxu1 %v3564_v22  ;;  %v43_v35 = vld [vmem:[%s4735_s0 + $0x90] sm:$0x11]  ;;  %v3584_v41 = vld [vmem:[%s4736_s1 + $0x600] ss:$8 sps:$4 sm:$0xff]   ;;  %v2953_v46 = vcombine.high %v46_v36, %v46_v36  ;;  %v3592_v39 = vld [vmem:[%s4736_s1 + $0x624] ss:$8 sps:$4 sm:$0xff]   ;;  %v2952_v48 = vcombine.low %v46_v36, %v46_v36 }
  0xb5   :  { %2002 = vmatprep.subr.bf16.mxu0 %v3567_v23  ;;  %v2947_v44 = vcombine.high %v43_v35, %v43_v35  ;;  %v3587_v38 = vld [vmem:[%s4736_s1 + $0x610] ss:$8 sps:$4 sm:$0xff]   ;;  %v2946_v47 = vcombine.low %v43_v35, %v43_v35  ;;  %v3590_v49 = vld [vmem:[%s4736_s1 + $0x620] ss:$8 sps:$4 sm:$0xff]   ;;  %v3595_v51 = vld [vmem:[%s4736_s1 + $0x634] ss:$8 sps:$4 sm:$0xff]  }
  0xb6   :  { %v4433_v42 = vld [vmem:[%s4735_s0 + $0x30] sm:$0xff]  ;;  %v3598_v53 = vld [vmem:[%s4736_s1 + $0x644] ss:$8 sps:$4 sm:$0xff]   ;;  %v3596_v54 = vld [vmem:[%s4736_s1 + $0x640] ss:$8 sps:$4 sm:$0xff]   ;;  %vm2130_vm0 = vcmask 1041408  }
  0xb7   :  { %1850 = vmatpush1.bf16.msra.mxu1 %v3562_v24  ;;  %v4438_v43 = vld [vmem:[%s4735_s0 + $0x70] sm:$0xff]  ;;  %v3604_v57 = vld [vmem:[%s4736_s1 + $0x664] ss:$8 sps:$4 sm:$0xff]   ;;  %v3602_v58 = vld [vmem:[%s4736_s1 + $0x660] ss:$8 sps:$4 sm:$0xff]   ;;  %s3717_s24 = smov [#allocation2]  }
  0xb8   :  { %2003 = vmatpush1.bf16.msra.mxu0 %v3565_v25  ;;  %1851 = vmatprep.subr.bf16.mxu1 %v3572_v26  ;;  %v2939_v50 = vcombine.high %v4433_v42, %v4438_v43  ;;  %v3593_v52 = vld [vmem:[%s4736_s1 + $0x630] ss:$8 sps:$4 sm:$0xff]   ;;  %v3601_v55 = vld [vmem:[%s4736_s1 + $0x654] ss:$8 sps:$4 sm:$0xff]   ;;  %v3610_v61 = vld [vmem:[%s4736_s1 + $0x684] ss:$8 sps:$4 sm:$0xff]   ;;  %v2938_v15 = vcombine.low %v4433_v42, %v4438_v43 }
  0xb9   :  { %2004 = vmatprep.subr.bf16.mxu0 %v3576_v27  ;;  %v3599_v56 = vld [vmem:[%s4736_s1 + $0x650] ss:$8 sps:$4 sm:$0xff]   ;;  %v3607_v59 = vld [vmem:[%s4736_s1 + $0x674] ss:$8 sps:$4 sm:$0xff]   ;;  %v3608_v62 = vld [vmem:[%s4736_s1 + $0x680] ss:$8 sps:$4 sm:$0xff]  }
  0xba   :  { %v3605_v60 = vld [vmem:[%s4736_s1 + $0x670] ss:$8 sps:$4 sm:$0xff]   ;;  %v3613_v63 = vld [vmem:[%s4736_s1 + $0x694] ss:$8 sps:$4 sm:$0xff]   ;;  %v3616_v1 = vld [vmem:[%s4736_s1 + $0x6a4] ss:$8 sps:$4 sm:$0xff]  }
  0xbb   :  { %1852 = vmatpush1.bf16.msra.mxu1 %v3570_v28  ;;  %v3611_v0 = vld [vmem:[%s4736_s1 + $0x690] ss:$8 sps:$4 sm:$0xff]   ;;  %v3614_v2 = vld [vmem:[%s4736_s1 + $0x6a0] ss:$8 sps:$4 sm:$0xff]   ;;  %v3619_v3 = vld [vmem:[%s4736_s1 + $0x6b4] ss:$8 sps:$4 sm:$0xff]  }
  0xbc   :  { %2005 = vmatpush1.bf16.msra.mxu0 %v3574_v29  ;;  %1853 = vmatprep.subr.bf16.mxu1 %v3580_v30  ;;  %v3617_v4 = vld [vmem:[%s4736_s1 + $0x6b0] ss:$8 sps:$4 sm:$0xff]   ;;  %v3622_v5 = vld [vmem:[%s4736_s1 + $0x6c4] ss:$8 sps:$4 sm:$0xff]   ;;  %v3620_v6 = vld [vmem:[%s4736_s1 + $0x6c0] ss:$8 sps:$4 sm:$0xff]  }
  0xbd   :  { %2006 = vmatprep.subr.bf16.mxu0 %v3583_v31  ;;  %v3625_v7 = vld [vmem:[%s4736_s1 + $0x6d4] ss:$8 sps:$4 sm:$0xff]   ;;  %v3623_v8 = vld [vmem:[%s4736_s1 + $0x6d0] ss:$8 sps:$4 sm:$0xff]   ;;  %v3631_v9 = vld [vmem:[%s4736_s1 + $0x6e4] ss:$8 sps:$4 sm:$0xff]  }
  0xbe   :  { %v3629_v10 = vld [vmem:[%s4736_s1 + $0x6e0] ss:$8 sps:$4 sm:$0xff]   ;;  %v3635_v11 = vld [vmem:[%s4736_s1 + $0x6f4] ss:$8 sps:$4 sm:$0xff]   ;;  %v3633_v12 = vld [vmem:[%s4736_s1 + $0x6f0] ss:$8 sps:$4 sm:$0xff]  }
  0xbf   :  { %1854 = vmatpush1.bf16.msra.mxu1 %v3578_v32  ;;  %v3638_v13 = vld [vmem:[%s4736_s1 + $0x704] ss:$8 sps:$4 sm:$0xff]   ;;  %v47_v14 = vld [vmem:[%s4735_s0 + $0xb0] sm:$0x11]  ;;  %v3636_v16 = vld [vmem:[%s4736_s1 + $0x700] ss:$8 sps:$4 sm:$0xff]  }
  0xc0   :  { %2007 = vmatpush1.bf16.msra.mxu0 %v3581_v33  ;;  %v2955_v17 = vcombine.high %v47_v14, %v47_v14  ;;  %v3641_v18 = vld [vmem:[%s4736_s1 + $0x714] ss:$8 sps:$4 sm:$0xff]   ;;  %v3639_v19 = vld [vmem:[%s4736_s1 + $0x710] ss:$8 sps:$4 sm:$0xff]   ;;  %v3644_v20 = vld [vmem:[%s4736_s1 + $0x724] ss:$8 sps:$4 sm:$0xff]   ;;  %v2954_v23 = vcombine.low %v47_v14, %v47_v14 }
  0xc1   :  { %2027 = vmatprep.subr.bf16.mxu0 %v3586_v34  ;;  %v4546_v21 = vld [vmem:[%s4735_s0 + $0x38] sm:$0xff]  ;;  %v3642_v24 = vld [vmem:[%s4736_s1 + $0x720] ss:$8 sps:$4 sm:$0xff]   ;;  %v3650_v28 = vld [vmem:[%s4736_s1 + $0x744] ss:$8 sps:$4 sm:$0xff]   ;;  %s2918_s25 = sshll.u32 %s3717_s24, 4  ;;  %s2919_s25 = int_to_ptr.vmem [resolvable:$true] %s2918_s25 }
  0xc2   :  { %1856 = vmatmul.mubr.bf16.vlgmr.msra.gmra.mrb[0].mxu1 %v2930_v37  ;;  %v4551_v22 = vld [vmem:[%s4735_s0 + $0x78] sm:$0xff]  ;;  %v3648_v29 = vld [vmem:[%s4736_s1 + $0x740] ss:$8 sps:$4 sm:$0xff]   ;;  %v3656_v32 = vld [vmem:[%s4736_s1 + $0x764] ss:$8 sps:$4 sm:$0xff]   ;;  %vm2910_vm7 = vcmask 9216   ;;  %p3697_p1 = scmp.lt.s32.totalorder %s2919_s25, %s2919_s25 }
  0xc3   :  { %2009 = vmatmul.mubr.bf16.vlgmr.msra.gmra.mrb[0].mxu0 %v2936_v40  ;;  %1865 = vmatprep.mubr.bf16.mxu1 %v2947_v44  ;;  %v2941_v25 = vcombine.high %v4546_v21, %v4551_v22  ;;  %v3647_v26 = vld [vmem:[%s4736_s1 + $0x734] ss:$8 sps:$4 sm:$0xff]   ;;  %v3645_v27 = vld [vmem:[%s4736_s1 + $0x730] ss:$8 sps:$4 sm:$0xff]   ;;  %v3654_v33 = vld [vmem:[%s4736_s1 + $0x760] ss:$8 sps:$4 sm:$0xff]  }
  0xc4   :  { %2028 = vmatpush1.bf16.msra.mxu0 %v3584_v41  ;;  %2018 = vmatprep.mubr.bf16.mxu0 %v2953_v46  ;;  %v3653_v30 = vld [vmem:[%s4736_s1 + $0x754] ss:$8 sps:$4 sm:$0xff]   ;;  %v3651_v31 = vld [vmem:[%s4736_s1 + $0x750] ss:$8 sps:$4 sm:$0xff]   ;;  %v3662_v36 = vld [vmem:[%s4736_s1 + $0x784] ss:$8 sps:$4 sm:$0xff]  }
  0xc5   :  { %2029 = vmatprep.subr.bf16.mxu0 %v3589_v45  ;;  %v3659_v34 = vld [vmem:[%s4736_s1 + $0x774] ss:$8 sps:$4 sm:$0xff]   ;;  %v3657_v35 = vld [vmem:[%s4736_s1 + $0x770] ss:$8 sps:$4 sm:$0xff]   ;;  %v3660_v37 = vld [vmem:[%s4736_s1 + $0x780] ss:$8 sps:$4 sm:$0xff]  }
  0xc6   :  { %v3665_v40 = vld [vmem:[%s4736_s1 + $0x794] ss:$8 sps:$4 sm:$0xff]   ;;  %v3663_v41 = vld [vmem:[%s4736_s1 + $0x790] ss:$8 sps:$4 sm:$0xff]   ;;  %v3668_v44 = vld [vmem:[%s4736_s1 + $0x7a4] ss:$8 sps:$4 sm:$0xff]  }
  0xc7   :  { %v3666_v45 = vld [vmem:[%s4736_s1 + $0x7a0] ss:$8 sps:$4 sm:$0xff]   ;;  %v3671_v46 = vld [vmem:[%s4736_s1 + $0x7b4] ss:$8 sps:$4 sm:$0xff]   ;;  %s3692_s26 = scalar_lea.vmem %s2919_s25, 32 }
  0xc8   :  { %2030 = vmatpush1.bf16.msra.mxu0 %v3587_v38  ;;  %v3669_v38 = vld [vmem:[%s4736_s1 + $0x7b0] ss:$8 sps:$4 sm:$0xff]   ;;  %v3672_v42 = vld [vmem:[%s4736_s1 + $0x7c0] ss:$8 sps:$4 sm:$0xff]   ;;  %v3677_v43 = vld [vmem:[%s4736_s1 + $0x7d4] ss:$8 sps:$4 sm:$0xff]   ;;  %p3693_p0 = scmp.ne.s32.totalorder %s2919_s25, %s3692_s26  ;;  %p3698_p2 = scmp.lt.s32.totalorder %s3692_s26, %s3692_s26 }
  0xc9   :  { %2031 = vmatprep.subr.bf16.mxu0 %v3592_v39  ;;  %v3674_v39 = vld [vmem:[%s4736_s1 + $0x7c4] ss:$8 sps:$4 sm:$0xff]  }
  0xca   :  { %1866 = vmatmul.mubr.bf16.gmra.mrb[4].mxu1 %v2946_v47  ;;  %v3675_v47 = vld [vmem:[%s4736_s1 + $0x7d0] ss:$8 sps:$4 sm:$0xff]   ;;  %p3699_p3 = por %p3698_p2, %p3697_p1 }
  0xcb   :  { %2019 = vmatmul.mubr.bf16.gmra.mrb[4].mxu0 %v2952_v48  ;;  %v3682_v48 = vld [vmem:[%s4736_s1 + $0x7e4] ss:$8 sps:$4 sm:$0xff]  }
  0xcc   :  { %2032 = vmatpush1.bf16.msra.mxu0 %v3590_v49  ;;  %2059 = vmatprep.mubr.bf16.mxu0 %v2939_v50  ;;  %v3680_v49 = vld [vmem:[%s4736_s1 + $0x7e0] ss:$8 sps:$4 sm:$0xff]   ;;  %v3685_v50 = vld [vmem:[%s4736_s1 + $0x7f4] ss:$8 sps:$4 sm:$0xff]   ;;  %p3700_p4 = pnand %p3699_p3, %p3693_p0 }
  0xcd   :  { %2033 = vmatprep.subr.bf16.mxu0 %v3595_v51  ;;  %v3683_v51 = vld [vmem:[%s4736_s1 + $0x7f0] ss:$8 sps:$4 sm:$0xff]  }
  0xd0   :  { %2034 = vmatpush1.bf16.msra.mxu0 %v3593_v52  ;;  %v48_v52 = vld [vmem:[%s4735_s0 + $0xb8] sm:$0x11] }
  0xd1   :  { %2035 = vmatprep.subr.bf16.mxu0 %v3598_v53  ;;  %v2940_v53 = vcombine.low %v4546_v21, %v4551_v22 }
  0xd4   :  { %2036 = vmatpush1.bf16.msra.mxu0 %v3596_v54  ;;  %v2957_v54 = vcombine.high %v48_v52, %v48_v52 }
  0xd5   :  { %2037 = vmatprep.subr.bf16.mxu0 %v3601_v55  ;;  %v2956_v55 = vcombine.low %v48_v52, %v48_v52 }
  0xd8   :  { %2038 = vmatpush1.bf16.msra.mxu0 %v3599_v56 }
  0xd9   :  { %2039 = vmatprep.subr.bf16.mxu0 %v3604_v57 }
  0xdc   :  { %2040 = vmatpush1.bf16.msra.mxu0 %v3602_v58 }
  0xdd   :  { %2041 = vmatprep.subr.bf16.mxu0 %v3607_v59 }
  0xe0   :  { %2042 = vmatpush1.bf16.msra.mxu0 %v3605_v60 }
  0xe1   :  { %2043 = vmatprep.subr.bf16.mxu0 %v3610_v61 }
  0xe4   :  { %2044 = vmatpush1.bf16.msra.mxu0 %v3608_v62 }
  0xe5   :  { %2045 = vmatprep.subr.bf16.mxu0 %v3613_v63 }
  0xe8   :  { %2046 = vmatpush1.bf16.msra.mxu0 %v3611_v0  ;;  %v3716_v0 = vmov 1966171168  }
  0xe9   :  { %2047 = vmatprep.subr.bf16.mxu0 %v3616_v1  ;;  %v2191_v1 = vunpack.c.l.s4 %v3716_v0 }
  0xec   :  { %2048 = vmatpush1.bf16.msra.mxu0 %v3614_v2  ;;  %v2193_v2 = vlaneseq }
  0xed   :  { %2049 = vmatprep.subr.bf16.mxu0 %v3619_v3  ;;  %v2192_v3 = vunpack.c.0.s8 %v2191_v1 }
  0xf0   :  { %2050 = vmatpush1.bf16.msra.mxu0 %v3617_v4  ;;  %v4641_v4 = vshrl.u32 %v2193_v2, 7 }
  0xf1   :  { %2051 = vmatprep.subr.bf16.mxu0 %v3622_v5  ;;  %v3215_v5 = vld.sshfl [vmem:[%s4739_s4 + $0x2] sm:$0x11 pattern:$0x75316420] }
  0xf4   :  { %2052 = vmatpush1.bf16.msra.mxu0 %v3620_v6  ;;  %v4647_v6 = vsub.s32 %v2192_v3, %v4641_v4 }
  0xf5   :  { %2053 = vmatprep.subr.bf16.mxu0 %v3625_v7  ;;  %v2278_v7 = vcombine.high %v3215_v5, %v3215_v5 }
  0xf8   :  { %2054 = vmatpush1.bf16.msra.mxu0 %v3623_v8  ;;  %v2292_v8 = vrot.slane %v2278_v7, %v4647_v6 }
  0xf9   :  { %2055 = vmatprep.subr.bf16.mxu0 %v3631_v9  ;;  %v2285_v9 = vrot.slane %v3215_v5, %v4647_v6 }
  0xfa   :  { %2295 = vmatprep.subr.bf16.mxu1 %v2292_v8 }
  0xfb   :  { %2296 = vmatpush1.bf16.xpose.msra.mxu1 %v2285_v9 }
  0xfc   :  { %2056 = vmatpush1.bf16.msra.mxu0 %v3629_v10  ;;  %v4654_v10 = vld.sshfl [vmem:[%s4739_s4] sm:$0x11 pattern:$0x75316420] }
  0xfd   :  { %2057 = vmatprep.subr.bf16.mxu0 %v3635_v11  ;;  %v2343_v11 = vcombine.high %v4654_v10, %v4654_v10 }
 0x100   :  { %2058 = vmatpush1.bf16.msra.mxu0 %v3633_v12  ;;  %v2357_v12 = vrot.slane %v2343_v11, %v4647_v6 }
 0x101   :  { %2078 = vmatprep.subr.bf16.mxu0 %v3638_v13 }
 0x102   :  { %2360 = vmatprep.subr.bf16.mxu1 %v2357_v12 }
 0x103   :  { %2060 = vmatmul.mubr.bf16.vlgmr.msra.gmra.mrb[0].mxu0 %v2938_v15 }
 0x104   :  { %2079 = vmatpush1.bf16.msra.mxu0 %v3636_v16  ;;  %2069 = vmatprep.mubr.bf16.mxu0 %v2955_v17 }
 0x105   :  { %2080 = vmatprep.subr.bf16.mxu0 %v3641_v18 }
 0x108   :  { %2081 = vmatpush1.bf16.msra.mxu0 %v3639_v19 }
 0x109   :  { %2082 = vmatprep.subr.bf16.mxu0 %v3644_v20 }
 0x10b   :  { %2070 = vmatmul.mubr.bf16.gmra.mrb[4].mxu0 %v2954_v23 }
 0x10c   :  { %2083 = vmatpush1.bf16.msra.mxu0 %v3642_v24  ;;  %2110 = vmatprep.mubr.bf16.mxu0 %v2941_v25 }
 0x10d   :  { %2084 = vmatprep.subr.bf16.mxu0 %v3647_v26 }
 0x110   :  { %2085 = vmatpush1.bf16.msra.mxu0 %v3645_v27 }
 0x111   :  { %2086 = vmatprep.subr.bf16.mxu0 %v3650_v28 }
 0x114   :  { %2087 = vmatpush1.bf16.msra.mxu0 %v3648_v29 }
 0x115   :  { %2088 = vmatprep.subr.bf16.mxu0 %v3653_v30 }
 0x118   :  { %2089 = vmatpush1.bf16.msra.mxu0 %v3651_v31 }
 0x119   :  { %2090 = vmatprep.subr.bf16.mxu0 %v3656_v32 }
 0x11c   :  { %2091 = vmatpush1.bf16.msra.mxu0 %v3654_v33 }
 0x11d   :  { %2092 = vmatprep.subr.bf16.mxu0 %v3659_v34 }
 0x120   :  { %2093 = vmatpush1.bf16.msra.mxu0 %v3657_v35 }
 0x121   :  { %2094 = vmatprep.subr.bf16.mxu0 %v3662_v36 }
 0x124   :  { %2095 = vmatpush1.bf16.msra.mxu0 %v3660_v37 }
 0x125   :  { %2096 = vmatprep.subr.bf16.mxu0 %v3665_v40 }
 0x128   :  { %2097 = vmatpush1.bf16.msra.mxu0 %v3663_v41 }
 0x129   :  { %2098 = vmatprep.subr.bf16.mxu0 %v3668_v44 }
 0x12c   :  { %2099 = vmatpush1.bf16.msra.mxu0 %v3666_v45 }
 0x12d   :  { %2100 = vmatprep.subr.bf16.mxu0 %v3671_v46 }
 0x130   :  { %2101 = vmatpush1.bf16.msra.mxu0 %v3669_v38 }
 0x131   :  { %2102 = vmatprep.subr.bf16.mxu0 %v3674_v39 }
 0x134   :  { %2103 = vmatpush1.bf16.msra.mxu0 %v3672_v42 }
 0x135   :  { %2104 = vmatprep.subr.bf16.mxu0 %v3677_v43 }
 0x138   :  { %2105 = vmatpush1.bf16.msra.mxu0 %v3675_v47 }
 0x139   :  { %2106 = vmatprep.subr.bf16.mxu0 %v3682_v48 }
 0x13c   :  { %2107 = vmatpush1.bf16.msra.mxu0 %v3680_v49 }
 0x13d   :  { %2108 = vmatprep.subr.bf16.mxu0 %v3685_v50 }
 0x140   :  { %2109 = vmatpush1.bf16.msra.mxu0 %v3683_v51 }
 0x143   :  { %2111 = vmatmul.mubr.bf16.vlgmr.msra.gmra.mrb[0].mxu0 %v2940_v53 }
 0x144   :  { %2120 = vmatprep.mubr.bf16.mxu0 %v2957_v54 }
 0x14b   :  { %2121 = vmatmul.mubr.bf16.gmra.mrb[4].mxu0 %v2956_v55 }
 0x195   :  { %v1857_v56 = vpop.f32.mrb[0].mxu1 }
 0x196   :  { %v1859_v57 = vpop.f32.mrb[1].mxu1 }
 0x197   :  { %v1861_v58 = vpop.f32.mrb[2].mxu1 }
 0x198   :  { %v1863_v59 = vpop.f32.mrb[3].mxu1 }
 0x19d   :  { %v1867_v60 = vpop.f32.mrb[4].mxu1 }
 0x19e   :  { %v1869_v61 = vpop.f32.mrb[5].mxu1 }
 0x19f   :  { %v1871_v62 = vpop.f32.mrb[6].mxu1 }
 0x1a0   :  { %v1872_v63 = vpop.f32.mrb[7].mxu1 }
 0x216   :  { %v2112_v13 = vpop.f32.mrb[0].mxu0 }
 0x217   :  { %v3232_v14 = vadd.f32 %v2112_v13, %v1857_v56  ;;  %v2114_v15 = vpop.f32.mrb[1].mxu0 }
 0x218   :  { %v3233_v16 = vadd.f32 %v2114_v15, %v1859_v57  ;;  %v2116_v17 = vpop.f32.mrb[2].mxu0 }
 0x219   :  { %v3234_v18 = vadd.f32 %v2116_v17, %v1861_v58  ;;  %v2118_v19 = vpop.f32.mrb[3].mxu0 }
 0x21a   :  { %v3235_v20 = vadd.f32 %v2118_v19, %v1863_v59 }
 0x21b   :  { %v2129_v21 = vadd.f32 %v3234_v18, %v3232_v14 }
 0x21c   :  { %v2139_v22 = vadd.f32 %v3235_v20, %v3233_v16 }
 0x21e   :  { %v2122_v23 = vpop.f32.mrb[4].mxu0 }
 0x21f   :  { %v3236_v24 = vadd.f32 %v2122_v23, %v1867_v60  ;;  %v2124_v25 = vpop.f32.mrb[5].mxu0 }
 0x220   :  { %v3237_v26 = vadd.f32 %v2124_v25, %v1869_v61  ;;  %v2126_v27 = vpop.f32.mrb[6].mxu0 }
 0x221   :  { %v2131_v28 = vsel %vm2130_vm0, %v3236_v24, 0.0  ;;  %v2127_v29 = vpop.f32.mrb[7].mxu0  ;;  %v2213_v27 = vsub.s32 1, %v4641_v4 }
 0x222   :  { %v2132_v30 = vadd.f32 %v2131_v28, %v2129_v21  ;;  %v2140_v31 = vsel %vm2130_vm0, %v3237_v26, 0.0  ;;  %v2223_v28 = vld [vmem:[%s4738_s3] sm:$0x3] }
 0x223   :  { %v2141_v32 = vadd.f32 %v2140_v31, %v2139_v22 }
 0x224   :  { %v2133_v33 = vrot.slane %v2132_v30, 4 }
 0x225   :  { %v2142_v34 = vrot.slane %v2141_v32, 4 }
 0x226   :  { %v2134_v35 = vadd.f32 %v2133_v33, %v2132_v30  ;;  %v2232_v33 = vrot.slane %v2223_v28, %v2213_v27 }
 0x227   :  { %v2143_v36 = vadd.f32 %v2142_v34, %v2141_v32 }
 0x228   :  { %v2135_v37 = vrot.slane %v2134_v35, 2 }
 0x229   :  { %v2144_v40 = vrot.slane %v2143_v36, 2 }
 0x22a   :  { %v2136_v41 = vadd.f32 %v2135_v37, %v2134_v35 }
 0x22b   :  { %v2145_v44 = vadd.f32 %v2144_v40, %v2143_v36 }
 0x22c   :  { %v2137_v45 = vrot.slane %v2136_v41, 1 }
 0x22d   :  { %v2146_v46 = vrot.slane %v2145_v44, 1 }
 0x22e   :  { %v2138_v38 = vadd.f32 %v2137_v45, %v2136_v41 }
 0x22f   :  { %v2147_v39 = vadd.f32 %v2146_v46, %v2145_v44 }
 0x230   :  { %v2148_v42 = vmul.f32 0.055555556, %v2138_v38  ;;  %v3218_v38 = vld.sshfl [vmem:[%s4739_s4 + $0x4] sm:$0x11 pattern:$0x75316420] }
 0x231   :  { %v2149_v43 = vmul.f32 0.055555556, %v2147_v39 }
 0x232   :  { %v2150_v47 = vsub.f32 %v3232_v14, %v2148_v42  ;;  %v2152_v48 = vsub.f32 %v3234_v18, %v2148_v42  ;;  %v2154_v49 = vsub.f32 %v3236_v24, %v2148_v42  ;;  %v2182_v24 = vld [vmem:[%s4737_s2] sm:$0x3] }
 0x233   :  { %v2151_v50 = vsub.f32 %v3233_v16, %v2149_v43  ;;  %v2153_v51 = vsub.f32 %v3235_v20, %v2149_v43  ;;  %v2155_v52 = vsub.f32 %v3237_v26, %v2149_v43  ;;  %v2209_v26 = vsub.s32 0, %v4641_v4 }
 0x234   :  { %v2156_v53 = vmul.f32 %v2150_v47, %v2150_v47  ;;  %v2158_v54 = vmul.f32 %v2152_v48, %v2152_v48  ;;  %v2160_v55 = vmul.f32 %v2154_v49, %v2154_v49 }
 0x235   :  { %v2157_v56 = vmul.f32 %v2151_v50, %v2151_v50  ;;  %v2159_v57 = vmul.f32 %v2153_v51, %v2153_v51  ;;  %v2161_v58 = vmul.f32 %v2155_v52, %v2155_v52  ;;  %v2228_v32 = vrot.slane %v2223_v28, %v2209_v26  ;;  %v3230_v28 = vld.sshfl [vmem:[%s4739_s4 + $0x10] sm:$0x11 pattern:$0x75316420] }
 0x236   :  { %v2162_v59 = vadd.f32 %v2158_v54, %v2156_v53  ;;  %v2163_v60 = vsel %vm2130_vm0, %v2160_v55, 0.0  ;;  %v2350_v55 = vrot.slane %v4654_v10, %v4647_v6  ;;  %v3222_v10 = vld.sshfl [vmem:[%s4739_s4 + $0x8] sm:$0x11 pattern:$0x75316420] }
 0x237   :  { %v2171_v61 = vadd.f32 %v2159_v57, %v2157_v56  ;;  %v2172_v62 = vsel %vm2130_vm0, %v2161_v58, 0.0  ;;  %v3220_v57 = vld.sshfl [vmem:[%s4739_s4 + $0x6] sm:$0x11 pattern:$0x75316420] }
 0x238   :  { %v2164_v63 = vadd.f32 %v2163_v60, %v2162_v59  ;;  %v2486_v58 = vcombine.high %v3220_v57, %v3220_v57  ;;  %v2421_v59 = vrot.slane %v3218_v38, %v4647_v6 }
 0x239   :  { %v2173_v0 = vadd.f32 %v2172_v62, %v2171_v61  ;;  %v2556_v62 = vcombine.high %v3222_v10, %v3222_v10 }
 0x23a   :  { %v2165_v1 = vrot.slane %v2164_v63, 4  ;;  %v2500_v60 = vrot.slane %v2486_v58, %v4647_v6 }
 0x23b   :  { %v2174_v2 = vrot.slane %v2173_v0, 4 }
 0x23c   :  { %v2166_v3 = vadd.f32 %v2165_v1, %v2164_v63  ;;  %v2493_v63 = vrot.slane %v3220_v57, %v4647_v6  ;;  %v2570_v1 = vrot.slane %v2556_v62, %v4647_v6 }
 0x23d   :  { %v2175_v5 = vadd.f32 %v2174_v2, %v2173_v0 }
 0x23e   :  { %v2167_v7 = vrot.slane %v2166_v3, 2 }
 0x23f   :  { %v2176_v8 = vrot.slane %v2175_v5, 2 }
 0x240   :  { %v2168_v9 = vadd.f32 %v2167_v7, %v2166_v3  ;;  %v3224_v3 = vld.sshfl [vmem:[%s4739_s4 + $0xa] sm:$0x11 pattern:$0x75316420] }
 0x241   :  { %v2177_v11 = vadd.f32 %v2176_v8, %v2175_v5  ;;  %v2630_v7 = vcombine.high %v3224_v3, %v3224_v3 }
 0x242   :  { %v2169_v12 = vrot.slane %v2168_v9, 1 }
 0x243   :  { %v2178_v13 = vrot.slane %v2177_v11, 1 }
 0x244   :  { %v2170_v14 = vadd.f32 %v2169_v12, %v2168_v9  ;;  %v2563_v9 = vrot.slane %v3222_v10, %v4647_v6  ;;  %v2644_v12 = vrot.slane %v2630_v7, %v4647_v6 }
 0x245   :  { %v2179_v15 = vadd.f32 %v2178_v13, %v2177_v11 }
 0x246   :  { %v2180_v16 = vmul.f32 0.055555556, %v2170_v14 }
 0x247   :  { %v2181_v17 = vmul.f32 0.055555556, %v2179_v15  ;;  %v3226_v15 = vld.sshfl [vmem:[%s4739_s4 + $0xc] sm:$0x11 pattern:$0x75316420] }
 0x248   :  { %v2183_v18 = vadd.f32 1e-05, %v2180_v16  ;;  %v2702_v16 = vcombine.high %v3226_v15, %v3226_v15 }
 0x249   :  { %v2184_v19 = vadd.f32 1e-05, %v2181_v17 }
 0x24a   :  { %3688 = vrsqrt.f32 %v2183_v18  ;;  %v2637_v18 = vrot.slane %v3224_v3, %v4647_v6 }
 0x24b   :  { %3690 = vrsqrt.f32 %v2184_v19 }
 0x254   :  { %v3689_v20 = vpop.eup %3688 }
 0x255   :  { %v3691_v21 = vpop.eup %3690 }
 0x256   :  { %v2189_v22 = vcombine.low %v3689_v20, %v3691_v21  ;;  %v2716_v20 = vrot.slane %v2702_v16, %v4647_v6 }
 0x258   :  { %v2196_v23 = vrot.slane %v2189_v22, %v4647_v6  ;;  %v3228_v22 = vld.sshfl [vmem:[%s4739_s4 + $0xe] sm:$0x11 pattern:$0x75316420] }
 0x25a   :  { %v2203_v25 = vrot.slane %v2196_v23, %v4647_v6  ;;  %v2774_v23 = vcombine.high %v3228_v22, %v3228_v22 }
 0x25c   :  { %v2205_v29 = vmul.f32 %v2203_v25, %v2182_v24  ;;  %v2709_v24 = vrot.slane %v3226_v15, %v4647_v6 }
 0x25e   :  { %v2210_v30 = vrot.slane %v2205_v29, %v2209_v26  ;;  %v2214_v31 = vrot.slane %v2205_v29, %v2213_v27  ;;  %v2788_v26 = vrot.slane %v2774_v23, %v4647_v6  ;;  %v2844_v29 = vcombine.high %v3230_v28, %v3230_v28 }
 0x260   :  { %v2217_v34 = vmul.f32 %v2210_v30, %v2150_v47  ;;  %v2218_v35 = vmul.f32 %v2214_v31, %v2151_v50  ;;  %v2220_v36 = vmul.f32 %v2214_v31, %v2153_v51  ;;  %v2222_v37 = vmul.f32 %v2214_v31, %v2155_v52 }
 0x261   :  { %v2219_v40 = vmul.f32 %v2210_v30, %v2152_v48  ;;  %v2221_v41 = vmul.f32 %v2210_v30, %v2154_v49  ;;  %v2414_v48 = vcombine.high %v3218_v38, %v3218_v38  ;;  %v2781_v30 = vrot.slane %v3228_v22, %v4647_v6 }
 0x262   :  { %v2235_v44 = vadd.f32 %v2228_v32, %v2217_v34  ;;  %v2236_v45 = vadd.f32 %v2232_v33, %v2218_v35  ;;  %v4673_v46 = vadd.f32 %v2232_v33, %v2222_v37  ;;  %v2238_v4 = vadd.f32 %v2232_v33, %v2220_v36 }
 0x263   :  { %v2237_v39 = vadd.f32 %v2228_v32, %v2219_v40  ;;  %v4678_v42 = vadd.f32 %v2228_v32, %v2221_v41  ;;  %v2428_v56 = vrot.slane %v2414_v48, %v4647_v6  ;;  %v2858_v32 = vrot.slane %v2844_v29, %v4647_v6 }
 0x264   :  { %vm2241_vm1 = vcmp.gt.f32.partialorder %v2235_v44, 0.0  ;;  %v2247_v43 = vmul.f32 0.2, %v2235_v44  ;;  %vm2242_vm2 = vcmp.gt.f32.partialorder %v2236_v45, 0.0  ;;  %v2248_v47 = vmul.f32 0.2, %v2236_v45 }
 0x265   :  { %v2250_v5 = vmul.f32 0.2, %v2238_v4  ;;  %vm2244_vm3 = vcmp.gt.f32.partialorder %v2238_v4, 0.0  ;;  %v2249_v14 = vmul.f32 0.2, %v2237_v39  ;;  %vm2243_vm4 = vcmp.gt.f32.partialorder %v2237_v39, 0.0 }
 0x266   :  { %v2254_v50 = vsel %vm2242_vm2, %v2236_v45, %v2248_v47  ;;  %v2253_v51 = vsel %vm2241_vm1, %v2235_v44, %v2247_v43  ;;  %v2252_v34 = vmul.f32 0.2, %v4673_v46  ;;  %vm2246_vm5 = vcmp.gt.f32.partialorder %v4673_v46, 0.0 }
 0x267   :  { %v2260_v49 = vpack.c.bf16 %v2254_v50, %v2254_v50  ;;  %v2259_v52 = vpack.c.bf16 %v2253_v51, %v2253_v51  ;;  %v2256_v8 = vsel %vm2244_vm3, %v2238_v4, %v2250_v5  ;;  %v2255_v17 = vsel %vm2243_vm4, %v2237_v39, %v2249_v14 }
 0x268   :  { %v2545_v13 = vpack.c.bf16 %v2256_v8, %v2256_v8  ;;  %v2544_v19 = vpack.c.bf16 %v2255_v17, %v2255_v17  ;;  %v2258_v35 = vsel %vm2246_vm5, %v4673_v46, %v2252_v34  ;;  %v2851_v36 = vrot.slane %v3230_v28, %v4647_v6 }
 0x269   :  { %v2267_v53 = vrot.slane %v2260_v49, 1  ;;  %v2266_v54 = vrot.slane %v2259_v52, 1  ;;  %v2403_v61 = vrot.slane %v2260_v49, 2  ;;  %v2402_v0 = vrot.slane %v2259_v52, 2 }
 0x26a   :  { %v2475_v2 = vrot.slane %v2260_v49, 3  ;;  %v2474_v11 = vrot.slane %v2259_v52, 3  ;;  %v2619_v21 = vrot.slane %v2545_v13, 1  ;;  %v2618_v25 = vrot.slane %v2544_v19, 1 }
 0x26b   :  { %2327 = vmatprep.mubr.bf16.mxu1 %v2267_v53  ;;  %v2691_v27 = vrot.slane %v2545_v13, 2  ;;  %v2690_v31 = vrot.slane %v2544_v19, 2  ;;  %v2763_v33 = vrot.slane %v2545_v13, 3  ;;  %v2762_v37 = vrot.slane %v2544_v19, 3 }
 0x26c   :  { %2328 = vmatmul.mubr.bf16.vlgmr.msra.gmra.mrb[8].mxu1 %v2266_v54  ;;  %v2833_v40 = vpack.c.bf16 %v2258_v35, %v2258_v35  ;;  %v2251_v41 = vmul.f32 0.2, %v4678_v42  ;;  %vm2245_vm6 = vcmp.gt.f32.partialorder %v4678_v42, 0.0 }
 0x26d   :  { %2361 = vmatpush1.bf16.xpose.msra.mxu1 %v2350_v55  ;;  %2392 = vmatprep.mubr.bf16.mxu1 %v2260_v49 }
 0x26e   :  { %2431 = vmatprep.subr.bf16.mxu1 %v2428_v56  ;;  %v2257_v44 = vsel %vm2245_vm6, %v4678_v42, %v2251_v41 }
 0x26f   :  { %v2832_v45 = vpack.c.bf16 %v2257_v44, %v2257_v44 }
 0x274   :  { %2393 = vmatmul.mubr.bf16.vlgmr.msra.gmra.mrb[12].mxu1 %v2259_v52 }
 0x275   :  { %2432 = vmatpush1.bf16.xpose.msra.mxu1 %v2421_v59  ;;  %2463 = vmatprep.mubr.bf16.mxu1 %v2403_v61 }
 0x276   :  { %2503 = vmatprep.subr.bf16.mxu1 %v2500_v60 }
 0x27c   :  { %2464 = vmatmul.mubr.bf16.vlgmr.msra.gmra.mrb[16].mxu1 %v2402_v0 }
 0x27d   :  { %2504 = vmatpush1.bf16.xpose.msra.mxu1 %v2493_v63  ;;  %2535 = vmatprep.mubr.bf16.mxu1 %v2475_v2 }
 0x27e   :  { %2573 = vmatprep.subr.bf16.mxu1 %v2570_v1 }
 0x284   :  { %2536 = vmatmul.mubr.bf16.vlgmr.msra.gmra.mrb[20].mxu1 %v2474_v11 }
 0x285   :  { %2574 = vmatpush1.bf16.xpose.msra.mxu1 %v2563_v9  ;;  %2605 = vmatprep.mubr.bf16.mxu1 %v2545_v13 }
 0x286   :  { %2647 = vmatprep.subr.bf16.mxu1 %v2644_v12 }
 0x28c   :  { %2606 = vmatmul.mubr.bf16.vlgmr.msra.gmra.mrb[24].mxu1 %v2544_v19 }
 0x28d   :  { %2648 = vmatpush1.bf16.xpose.msra.mxu1 %v2637_v18  ;;  %2679 = vmatprep.mubr.bf16.mxu1 %v2619_v21  ;;  %v3231_v18 = vld [vmem:[%s4740_s5] ss:$0 sm:$0xff] }
 0x28e   :  { %2719 = vmatprep.subr.bf16.mxu1 %v2716_v20 }
 0x294   :  { %2680 = vmatmul.mubr.bf16.vlgmr.msra.gmra.mrb[28].mxu1 %v2618_v25 }
 0x295   :  { %2720 = vmatpush1.bf16.xpose.msra.mxu1 %v2709_v24  ;;  %2751 = vmatprep.mubr.bf16.mxu1 %v2691_v27 }
 0x296   :  { %2791 = vmatprep.subr.bf16.mxu1 %v2788_v26 }
 0x29c   :  { %2752 = vmatmul.mubr.bf16.vlgmr.msra.gmra.mrb[32].mxu1 %v2690_v31 }
 0x29d   :  { %2792 = vmatpush1.bf16.xpose.msra.mxu1 %v2781_v30  ;;  %2823 = vmatprep.mubr.bf16.mxu1 %v2763_v33 }
 0x29e   :  { %2861 = vmatprep.subr.bf16.mxu1 %v2858_v32 }
 0x2a4   :  { %2824 = vmatmul.mubr.bf16.vlgmr.msra.gmra.mrb[36].mxu1 %v2762_v37 }
 0x2a5   :  { %2862 = vmatpush1.bf16.xpose.msra.mxu1 %v2851_v36  ;;  %2893 = vmatprep.mubr.bf16.mxu1 %v2833_v40 }
 0x2ac   :  { %2894 = vmatmul.mubr.bf16.vlgmr.msra.gmra.mrb[40].mxu1 %v2832_v45 }
 0x33f   :  { %v2329_v4 = vpop.f32.mrb[8].mxu1 }
 0x340   :  { %v2331_v38 = vpop.f32.mrb[9].mxu1 }
 0x341   :  { %v2332_v39 = vpop.f32.mrb[10].mxu1 }
 0x342   :  { %v2333_v43 = vpop.f32.mrb[11].mxu1 }
 0x347   :  { %v2394_v46 = vpop.f32.mrb[12].mxu1 }
 0x348   :  { %v2395_v47 = vadd.f32 %v2394_v46, %v2329_v4  ;;  %v2396_v6 = vpop.f32.mrb[13].mxu1 }
 0x349   :  { %v2397_v50 = vpop.f32.mrb[14].mxu1 }
 0x34a   :  { %v2398_v51 = vpop.f32.mrb[15].mxu1 }
 0x34f   :  { %v2465_v48 = vpop.f32.mrb[16].mxu1 }
 0x350   :  { %v2471_v49 = vadd.f32 %v2465_v48, %v2395_v47  ;;  %v2467_v52 = vpop.f32.mrb[17].mxu1 }
 0x351   :  { %v2468_v53 = vpop.f32.mrb[18].mxu1 }
 0x352   :  { %v2469_v54 = vpop.f32.mrb[19].mxu1 }
 0x357   :  { %v2537_v55 = vpop.f32.mrb[20].mxu1 }
 0x358   :  { %v2543_v56 = vadd.f32 %v2537_v55, %v2471_v49  ;;  %v2539_v57 = vpop.f32.mrb[21].mxu1 }
 0x359   :  { %v2540_v42 = vpop.f32.mrb[22].mxu1 }
 0x35a   :  { %v2541_v58 = vpop.f32.mrb[23].mxu1 }
 0x35f   :  { %v2607_v59 = vpop.f32.mrb[24].mxu1 }
 0x360   :  { %v2613_v60 = vadd.f32 %v2607_v59, %v2543_v56  ;;  %v2609_v61 = vpop.f32.mrb[25].mxu1 }
 0x361   :  { %v2610_v10 = vpop.f32.mrb[26].mxu1 }
 0x362   :  { %v2611_v62 = vpop.f32.mrb[27].mxu1 }
 0x367   :  { %v2681_v63 = vpop.f32.mrb[28].mxu1 }
 0x368   :  { %v2687_v0 = vadd.f32 %v2681_v63, %v2613_v60  ;;  %v2683_v1 = vpop.f32.mrb[29].mxu1 }
 0x369   :  { %v2684_v2 = vpop.f32.mrb[30].mxu1 }
 0x36a   :  { %v2685_v3 = vpop.f32.mrb[31].mxu1 }
 0x36f   :  { %v2753_v5 = vpop.f32.mrb[32].mxu1 }
 0x370   :  { %v2759_v7 = vadd.f32 %v2753_v5, %v2687_v0  ;;  %v2755_v8 = vpop.f32.mrb[33].mxu1 }
 0x371   :  { %v2756_v9 = vpop.f32.mrb[34].mxu1 }
 0x372   :  { %v2757_v11 = vpop.f32.mrb[35].mxu1 }
 0x377   :  { %v2825_v12 = vpop.f32.mrb[36].mxu1 }
 0x378   :  { %v2831_v13 = vadd.f32 %v2825_v12, %v2759_v7  ;;  %v2827_v14 = vpop.f32.mrb[37].mxu1 }
 0x379   :  { %v2828_v15 = vpop.f32.mrb[38].mxu1 }
 0x37a   :  { %v2829_v16 = vpop.f32.mrb[39].mxu1 }
 0x37f   :  { %v2895_v17 = vpop.f32.mrb[40].mxu1 }
 0x380   :  { %v2901_v19 = vadd.f32 %v2895_v17, %v2831_v13  ;;  %v2897_v20 = vpop.f32.mrb[41].mxu1 }
 0x381   :  { %v2898_v21 = vpop.f32.mrb[42].mxu1 }
 0x382   :  { %v2909_v22 = vadd.f32 %v3231_v18, %v2901_v19  ;;  %v2899_v23 = vpop.f32.mrb[43].mxu1 }
 0x384   :  { %2911 = vst.msk [vmem:[#allocation2] sm:$0x3] %vm2910_vm7, %v2909_v22 }
 0x385   :  { %3703 = shalt.err (!%p3700_p4)
}
 0x386   :  { %s3704_s5 = scalar_lea.hbm %s4741_s6, 32 }
 0x387   :  { %p3705_p5 = scmp.ne.s32.totalorder %s4741_s6, %s3704_s5  ;;  %p3708_p6 = scmp.lt.u32.totalorder %s3704_s5, %s4741_s6 }
 0x389   :  { %p3710_p7 = pnand %p3708_p6, %p3705_p5 }
 0x38b   :  { %3713 = shalt.err (!%p3710_p7)
}
 0x38c   :  { %2921 = dma.vmem_to_hbm [thread:$0]  %s2919_s25, 32, %s4741_s6, [#allocation3]  }
 0x38d   :  { %3714 = dma.done.wait [#allocation3], 32  }
 0x38e   :  { %3715 = vsyncadd [#allocation3], 4294967264 }
 0x38f   :  { %2925 = vsyncpa [#allocation3], 1 }

</bundles_post_ra>
